<compile_context>
chip_gen: v7x
topology: tpu7x:2x2x1
jax: 0.10.0
libtpu: 0.0.40
codegen_flags: <defaults>
</compile_context>

<pallas_src>
import functools
import math

import jax
import jax.numpy as jnp
from jax import lax
from jax.experimental import pallas as pl
from jax.experimental.pallas import tpu as pltpu


# ------------------------- in-kernel helper functions ------------------------

def _shift_rows(x, offset):
    """Row shift within a per-batch (R, C) block: result[t] = x[t - offset],
    zero padded (implements conv zero padding).  Blocks hold a single batch
    element, so no cross-batch masking is needed."""
    if offset == 0:
        return x
    R, C = x.shape
    if abs(offset) >= R:
        return jnp.zeros_like(x)
    z = jnp.zeros((abs(offset), C), x.dtype)
    if offset > 0:
        return jnp.concatenate([z, x[:R - offset, :]], axis=0)
    return jnp.concatenate([x[-offset:, :], z], axis=0)


def _taps_dot(taps, w, b):
    """Lane-concatenate conv taps into one operand, cast to bf16 once, and run a
    single deep MXU contraction against the pre-flattened (K*Cin, Cout) weight."""
    op = taps[0] if len(taps) == 1 else jnp.concatenate(taps, axis=1)
    return jnp.dot(op.astype(jnp.bfloat16), w,
                   preferred_element_type=jnp.float32) + b


def _conv_s1(x, w, b, K, dil, relu_in=False, relu_out=False):
    """Stride-1 'same' 1-D conv on a per-batch (R, Cin) block.
    w: (K*Cin, Cout) bf16, b: (1, Cout) f32."""
    xin = jnp.maximum(x, 0.0) if relu_in else x
    if K == 1:
        acc = _taps_dot([xin], w, b)
    else:
        pad = dil * (K - 1) // 2
        acc = _taps_dot([_shift_rows(xin, pad - k * dil) for k in range(K)], w, b)
    return jnp.maximum(acc, 0.0) if relu_out else acc


def _res_block(h, wa, ba, wb, bb, dil):
    """ResConv1DBlock: relu -> conv(k3, dilated) -> relu -> conv(k1) -> + residual."""
    r = _conv_s1(h, wa, ba, 3, dil, relu_in=True)
    r = _conv_s1(r, wb, bb, 1, 1, relu_in=True)
    return h + r


# --------------------------------- kernels -----------------------------------

def _enc_level_kernel(*refs, depth, first, last, rate):
    """One encoder resolution level for one batch element, fully fused:
       [stem Conv1d(k3,p1)+ReLU if first] -> strided Conv1d(k4,s2,p1)
       -> depth x ResConv1DBlock -> [Conv1d(k3,p1) to out_width if last].
       Input: per-batch "pairs" block (rows, 2*Cin); output (rows, Cout)."""
    it = iter(refs)
    x_ref = next(it)
    if first:
        sw_ref, sb_ref = next(it), next(it)
    dw_ref, db_ref = next(it), next(it)
    res_refs = [(next(it), next(it), next(it), next(it)) for _ in range(depth)]
    if last:
        ow_ref, ob_ref = next(it), next(it)
    o_ref = next(it)

    xp = x_ref[...]                                   # (rows, 2*Cin) f32
    C = xp.shape[1] // 2
    even, odd = xp[:, :C], xp[:, C:]                  # x[2t], x[2t+1]

    if first:
        # Stem conv (k3, pad 1) + ReLU in two phases on the pairs layout so its
        # output feeds the strided conv without re-interleaving.
        sw, sb = sw_ref[...], sb_ref[...]
        he = jnp.maximum(_taps_dot([_shift_rows(odd, 1), even, odd], sw, sb), 0.0)
        ho = jnp.maximum(_taps_dot([even, odd, _shift_rows(even, -1)], sw, sb), 0.0)
    else:
        he, ho = even, odd

    # Strided downsampling conv Conv1d(w, w, 4, 2, 1):
    #   out[t] = h[2t-1] w0 + h[2t] w1 + h[2t+1] w2 + h[2t+2] w3  (zero padded)
    dw, db = dw_ref[...], db_ref[...]
    h = _taps_dot([_shift_rows(ho, 1), he, ho, _shift_rows(he, -1)], dw, db)

    for d, (wa_ref, ba_ref, wb_ref, bb_ref) in enumerate(res_refs):
        h = _res_block(h, wa_ref[...], ba_ref[...], wb_ref[...], bb_ref[...],
                       rate ** d)

    if last:
        h = _conv_s1(h, ow_ref[...], ob_ref[...], 3, 1)
    o_ref[...] = h


def _dec_level_kernel(*refs, depth, first, rate):
    """One decoder resolution level for one batch element, fully fused:
       [Conv1d(code_dim,w,k3,p1)+ReLU if first] -> depth x ResConv1DBlock (reverse
       dilation order) -> fused Upsample(2,'nearest')+Conv1d(k3,p1).
       Output packs the upsampled result as [even | odd] along lanes (folded
       even/odd weights), stored directly into 128-aligned lane slices."""
    it = iter(refs)
    x_ref = next(it)
    if first:
        iw_ref, ib_ref = next(it), next(it)
    res_refs = [(next(it), next(it), next(it), next(it)) for _ in range(depth)]
    uwe_ref, uwo_ref, ub_ref = next(it), next(it), next(it)
    o_ref = next(it)

    h = x_ref[...]
    if first:
        h = _conv_s1(h, iw_ref[...], ib_ref[...], 3, 1, relu_out=True)
    # weights were passed in application order (dilation rate**(depth-1) ... rate**0)
    for j, (wa_ref, ba_ref, wb_ref, bb_ref) in enumerate(res_refs):
        h = _res_block(h, wa_ref[...], ba_ref[...], wb_ref[...], bb_ref[...],
                       rate ** (depth - 1 - j))

    # Fused 2x nearest upsample + Conv1d(k3, p1) with pre-folded phase weights:
    #   out[2t]   = h[t-1] w0 + h[t] (w1+w2)   -> [prev_h | h]  @ [w0; w1+w2]
    #   out[2t+1] = h[t] (w0+w1) + h[t+1] w2   -> [h | next_h]  @ [w0+w1; w2]
    W = o_ref.shape[1] // 2
    ub = ub_ref[...]
    prev_h = _shift_rows(h, 1)
    next_h = _shift_rows(h, -1)
    o_ref[:, :W] = _taps_dot([prev_h, h], uwe_ref[...], ub)
    o_ref[:, W:] = _taps_dot([h, next_h], uwo_ref[...], ub)


def _dec_head_kernel(x_ref, mw_ref, mb_ref, ow_ref, ob_ref, o_ref):
    """Decoder head (per batch element): Conv1d(w,w,k3,p1)+ReLU -> Conv1d(w,input_dim,k3,p1)."""
    h = x_ref[...]
    h = _conv_s1(h, mw_ref[...], mb_ref[...], 3, 1, relu_out=True)
    o_ref[...] = _conv_s1(h, ow_ref[...], ob_ref[...], 3, 1)


def _rvq_kernel(x_ref, cb_ref, c2_ref, xq_ref, sse_ref, hist_ref, *, nq):
    """Fused ResidualVQ eval forward, tiled over the flattened (B*T) axis.
    Per tile: loop over all nq quantizers in VMEM (residual + quantized sum stay
    resident), nearest code + dequantize; emit per-tile SSE / histogram partials
    so the grid axis stays 'parallel'."""
    x = x_ref[...]                                     # (tm, D) f32
    tm, D = x.shape
    Kc = cb_ref.shape[1]
    iota_k = lax.broadcasted_iota(jnp.int32, (tm, Kc), 1)

    residual = x
    quant_out = jnp.zeros_like(x)
    sse_cols, hist_cols = [], []
    for q in range(nq):
        cb = cb_ref[q]                                 # (Kc, D) f32 (resident)
        c2 = c2_ref[q]                                 # (1, Kc) = sum(cb^2, -1)
        r2 = jnp.sum(residual * residual, axis=-1, keepdims=True)
        # Distance cross-term in bf16 (single MXU pass); argmin is robust to the
        # rounding except at exact ties.
        xc = lax.dot_general(residual.astype(jnp.bfloat16), cb.astype(jnp.bfloat16),
                             (((1,), (1,)), ((), ())),
                             preferred_element_type=jnp.float32)   # x @ cb.T
        dist = r2 - 2.0 * xc + c2
        dmin = jnp.min(dist, axis=-1, keepdims=True)
        # first-index argmin (matches torch.min tie-breaking)
        idx = jnp.min(jnp.where(dist <= dmin, iota_k, Kc), axis=-1, keepdims=True)
        onehot = (iota_k == idx).astype(jnp.float32)
        # Dequantize with an f32 matmul: one-hot rows are exact, so the result is
        # the exact codebook row (precision choice documented; no bf16 downcast of cb).
        xq = jnp.dot(onehot, cb, preferred_element_type=jnp.float32)
        residual = residual - xq
        quant_out = quant_out + xq
        sse_cols.append(jnp.sum(residual * residual, keepdims=True))      # (1, 1)
        hist_cols.append(jnp.sum(onehot, axis=0, keepdims=True))          # (1, Kc)

    xq_ref[...] = quant_out
    sse_ref[...] = jnp.concatenate(sse_cols, axis=1)                      # (1, nq)
    hist_ref[...] = jnp.concatenate(hist_cols, axis=1)                    # (1, nq*Kc)


# ------------------------------ kernel wrappers -------------------------------

def _const_spec(a):
    """Full-array block with a constant index map (weights stay resident)."""
    nd = a.ndim
    return pl.BlockSpec(a.shape, lambda b: (0,) * nd)


def _vmem_limit(weight_arrays, act_block_bytes):
    """Explicit scoped-VMEM budget: double-buffered weights + activation blocks
    + headroom for in-kernel temporaries; clamped so it also fits v7x (64 MiB)."""
    w_bytes = sum(int(a.size) * a.dtype.itemsize for a in weight_arrays)
    need = 2 * w_bytes + 8 * int(act_block_bytes) + (4 << 20)
    return int(min(max(need, 32 << 20), 48 << 20))


def enc_level_call(hp, params, cfg, *, level, rows, first, last, batch):
    depth, rate, width = cfg['depth'], cfg['rate'], cfg['width']
    out_c = cfg['out_width'] if last else width
    weights = []
    if first:
        weights += list(params['enc_in'])
    weights += list(params[f'enc_down{level}'])
    for d in range(depth):
        weights += list(params[f'enc_res{level}_{d}_a'])
        weights += list(params[f'enc_res{level}_{d}_b'])
    if last:
        weights += list(params['enc_out'])
    M, Cp = hp.shape
    kernel = functools.partial(_enc_level_kernel, depth=depth,
                               first=first, last=last, rate=rate)
    return pl.pallas_call(
        kernel,
        out_shape=jax.ShapeDtypeStruct((M, out_c), jnp.float32),
        grid=(batch,),
        in_specs=[pl.BlockSpec((rows, Cp), lambda b: (b, 0))]
                 + [_const_spec(a) for a in weights],
        out_specs=pl.BlockSpec((rows, out_c), lambda b: (b, 0)),
        compiler_params=pltpu.CompilerParams(
            dimension_semantics=("parallel",),
            vmem_limit_bytes=_vmem_limit(weights, rows * (Cp + out_c) * 4)),
    )(hp, *weights)


def dec_level_call(h, params, cfg, *, level, rows, first, batch):
    depth, rate, width = cfg['depth'], cfg['rate'], cfg['width']
    weights = []
    if first:
        weights += list(params['dec_in'])
    for d in reversed(range(depth)):          # reverse_dilation=True application order
        weights += list(params[f'dec_res{level}_{d}_a'])
        weights += list(params[f'dec_res{level}_{d}_b'])
    weights += list(params[f'dec_up{level}'])          # (w_even, w_odd, b)
    M, C = h.shape
    kernel = functools.partial(_dec_level_kernel, depth=depth,
                               first=first, rate=rate)
    return pl.pallas_call(
        kernel,
        out_shape=jax.ShapeDtypeStruct((M, 2 * width), jnp.float32),
        grid=(batch,),
        in_specs=[pl.BlockSpec((rows, C), lambda b: (b, 0))]
                 + [_const_spec(a) for a in weights],
        out_specs=pl.BlockSpec((rows, 2 * width), lambda b: (b, 0)),
        compiler_params=pltpu.CompilerParams(
            dimension_semantics=("parallel",),
            vmem_limit_bytes=_vmem_limit(weights, rows * (C + 2 * width) * 4)),
    )(h, *weights)


def dec_head_call(h, params, cfg, *, rows, batch):
    M, C = h.shape
    out_c = cfg['input_dim']
    weights = list(params['dec_mid']) + list(params['dec_out'])
    return pl.pallas_call(
        _dec_head_kernel,
        out_shape=jax.ShapeDtypeStruct((M, out_c), jnp.float32),
        grid=(batch,),
        in_specs=[pl.BlockSpec((rows, C), lambda b: (b, 0))]
                 + [_const_spec(a) for a in weights],
        out_specs=pl.BlockSpec((rows, out_c), lambda b: (b, 0)),
        compiler_params=pltpu.CompilerParams(
            dimension_semantics=("parallel",),
            vmem_limit_bytes=_vmem_limit(weights, rows * (C + out_c) * 4)),
    )(h, *weights)


def residual_vq_forward(x_flat, codebooks):
    """Fused ResidualVQ (eval): all nq quantizers in one pallas_call, M-tiled,
    'parallel' grid with per-tile SSE / histogram partials reduced outside."""
    nq, Kc, D = codebooks.shape
    M = x_flat.shape[0]
    tm = M
    for cand in (1024, 512, 256, 128, 64, 32, 16, 8):
        if M % cand == 0:
            tm = cand
            break
    grid_m = M // tm
    c2 = jnp.sum(codebooks * codebooks, axis=-1).reshape(nq, 1, Kc)
    kernel = functools.partial(_rvq_kernel, nq=nq)
    act_bytes = tm * (D * 4 * 4 + Kc * 4 * 4)          # tile temporaries (dist/onehot/..)
    xq, sse_p, hist_p = pl.pallas_call(
        kernel,
        out_shape=(jax.ShapeDtypeStruct((M, D), jnp.float32),
                   jax.ShapeDtypeStruct((grid_m, nq), jnp.float32),
                   jax.ShapeDtypeStruct((grid_m, nq * Kc), jnp.float32)),
        grid=(grid_m,),
        in_specs=[pl.BlockSpec((tm, D), lambda i: (i, 0)),
                  pl.BlockSpec((nq, Kc, D), lambda i: (0, 0, 0)),
                  pl.BlockSpec((nq, 1, Kc), lambda i: (0, 0, 0))],
        out_specs=(pl.BlockSpec((tm, D), lambda i: (i, 0)),
                   pl.BlockSpec((1, nq), lambda i: (i, 0)),
                   pl.BlockSpec((1, nq * Kc), lambda i: (i, 0))),
        compiler_params=pltpu.CompilerParams(
            dimension_semantics=("parallel",),
            vmem_limit_bytes=_vmem_limit([codebooks, c2], act_bytes)),
    )(x_flat, codebooks, c2)

    sse = jnp.sum(sse_p, axis=0)                                   # (nq,)
    commit_loss = sse / float(M * D)                               # per-layer MSE(x, x_d)
    hist = jnp.sum(hist_p.reshape(grid_m, nq, Kc), axis=0)         # (nq, Kc)
    prob = hist / float(M)
    perplexity = jnp.exp(-jnp.sum(prob * jnp.log(prob + 1e-7), axis=-1))
    return xq, commit_loss, perplexity


# ------------------------- parameter construction ----------------------------

def init_params(key, cfg):
    keys = iter(jax.random.split(key, 256))

    def conv_p(K, cin, cout):
        k1, k2 = jax.random.split(next(keys))
        w = (jax.random.normal(k1, (K, cin, cout), jnp.float32)
             / math.sqrt(K * cin))
        b = 0.01 * jax.random.normal(k2, (1, cout), jnp.float32)
        # pre-flatten taps so the kernel issues a single (M, K*Cin)@(K*Cin, Cout) dot
        return w.reshape(K * cin, cout).astype(jnp.bfloat16), b

    def upconv_p(cin, cout):
        # Upsample(2,'nearest') + Conv1d(k3,p1) exactly folded into even/odd phases.
        k1, k2 = jax.random.split(next(keys))
        w = (jax.random.normal(k1, (3, cin, cout), jnp.float32)
             / math.sqrt(3 * cin))
        b = 0.01 * jax.random.normal(k2, (1, cout), jnp.float32)
        w_even = jnp.concatenate([w[0], w[1] + w[2]], axis=0).astype(jnp.bfloat16)
        w_odd = jnp.concatenate([w[0] + w[1], w[2]], axis=0).astype(jnp.bfloat16)
        return w_even, w_odd, b

    p = {}
    p['enc_in'] = conv_p(3, cfg['input_dim'], cfg['width'])
    for i in range(cfg['down_t']):
        p[f'enc_down{i}'] = conv_p(2 * cfg['stride_t'], cfg['width'], cfg['width'])
        for d in range(cfg['depth']):
            p[f'enc_res{i}_{d}_a'] = conv_p(3, cfg['width'], cfg['width'])
            p[f'enc_res{i}_{d}_b'] = conv_p(1, cfg['width'], cfg['width'])
    p['enc_out'] = conv_p(3, cfg['width'], cfg['out_width'])
    # per-quantizer codebooks (shared_codebook=False)
    p['codebooks'] = jax.random.normal(
        next(keys), (cfg['num_quantizers'], cfg['nb_code'], cfg['code_dim']),
        jnp.float32)
    p['dec_in'] = conv_p(3, cfg['code_dim'], cfg['width'])
    for i in range(cfg['down_t']):
        for d in range(cfg['depth']):
            p[f'dec_res{i}_{d}_a'] = conv_p(3, cfg['width'], cfg['width'])
            p[f'dec_res{i}_{d}_b'] = conv_p(1, cfg['width'], cfg['width'])
        p[f'dec_up{i}'] = upconv_p(cfg['width'], cfg['width'])
    p['dec_mid'] = conv_p(3, cfg['width'], cfg['width'])
    p['dec_out'] = conv_p(3, cfg['width'], cfg['input_dim'])
    return p


# ------------------------------ forward pass ---------------------------------

def rvqvae_forward(params, cfg, x):
    """x: (N, T, input_dim) motion -> (x_out, commit_loss, perplexity,
    [contrastive_loss, mlm_loss]).  Channels-last layout is kept end-to-end, so
    preprocess()/postprocess() permutes are folded away."""
    assert cfg['out_width'] == cfg['code_dim']
    assert cfg['stride_t'] == 2
    B, T, Cm = x.shape
    down_t = cfg['down_t']
    assert T % (2 ** down_t) == 0
    rows_q = T // (2 ** down_t)
    # per-batch time blocks must be sublane-aligned (or B == 1)
    assert B == 1 or rows_q % 8 == 0
    x_in = x.astype(jnp.float32)                       # preprocess(): .float()

    # ---- Encoder: one fused, batch-tiled kernel per resolution level ----
    h = x_in.reshape(B * T, Cm)
    rows = T
    for i in range(down_t):
        M, C = h.shape
        hp = h.reshape(M // 2, 2 * C)                  # free, contiguous "pairs" view
        rows //= 2
        h = enc_level_call(hp, params, cfg, level=i, rows=rows,
                           first=(i == 0), last=(i == down_t - 1), batch=B)
    x_encoder = h                                      # (B*Tq, code_dim)

    # ---- Residual VQ (eval; straight-through value == quantized sum) ----
    x_quantized, commit_loss, perplexity = residual_vq_forward(
        x_encoder, params['codebooks'])

    # ---- Decoder: one fused, batch-tiled kernel per level + fused head ----
    h = x_quantized
    for i in range(down_t):
        h2 = dec_level_call(h, params, cfg, level=i, rows=rows,
                            first=(i == 0), batch=B)
        h = h2.reshape(h.shape[0] * 2, cfg['width'])   # free un-interleave of [even|odd]
        rows *= 2
    x_out = dec_head_call(h, params, cfg, rows=rows,
                          batch=B).reshape(B, T, cfg['input_dim'])

    zero = jnp.zeros((), jnp.float32)                  # lgvq == 0 branch zeros
    return x_out, commit_loss, perplexity, [zero, zero]


# ---------------------------------- main --------------------------------------

if __name__ == "__main__":
    # Small demo shapes consistent with the module structure (real model uses
    # 263/512/512/1024); channel dims chosen as multiples of 128 for lane-dense
    # stores, T chosen so per-batch time blocks stay sublane-aligned at every level.
    cfg = dict(input_dim=128,    # motion feature dim (263 for 't2m' in the original)
               width=128, out_width=128, code_dim=128, nb_code=128,
               down_t=2, stride_t=2, depth=2, rate=3, num_quantizers=2)
    B, T = 2, 32

    key = jax.random.PRNGKey(0)
    kp, kx = jax.random.split(key)
    params = init_params(kp, cfg)
    x = jax.random.normal(kx, (B, T, cfg['input_dim']), jnp.float32)

    fwd = jax.jit(lambda p, xx: rvqvae_forward(p, cfg, xx))
    x_out, commit_loss, perplexity, lgvq_losses = fwd(params, x)
    jax.block_until_ready((x_out, commit_loss, perplexity,
                           lgvq_losses[0], lgvq_losses[1]))

    assert x_out.shape == (B, T, cfg['input_dim'])
    assert x_out.dtype == jnp.float32
    assert commit_loss.shape == (cfg['num_quantizers'],)
    assert perplexity.shape == (cfg['num_quantizers'],)
    assert bool(jnp.all(jnp.isfinite(x_out)))
    assert bool(jnp.all(jnp.isfinite(commit_loss)))
    assert bool(jnp.all(jnp.isfinite(perplexity)))
    print("KERNEL_OK")
</pallas_src>

<mosaic_0001>
module attributes {stable_mosaic.version = 11 : i64} {
  func.func @_enc_level_kernel(%arg0: i32, %arg1: memref<16x256xf32, #tpu.memory_space<vmem>>, %arg2: memref<384x128xbf16, #tpu.memory_space<vmem>>, %arg3: memref<1x128xf32, #tpu.memory_space<vmem>>, %arg4: memref<512x128xbf16, #tpu.memory_space<vmem>>, %arg5: memref<1x128xf32, #tpu.memory_space<vmem>>, %arg6: memref<384x128xbf16, #tpu.memory_space<vmem>>, %arg7: memref<1x128xf32, #tpu.memory_space<vmem>>, %arg8: memref<128x128xbf16, #tpu.memory_space<vmem>>, %arg9: memref<1x128xf32, #tpu.memory_space<vmem>>, %arg10: memref<384x128xbf16, #tpu.memory_space<vmem>>, %arg11: memref<1x128xf32, #tpu.memory_space<vmem>>, %arg12: memref<128x128xbf16, #tpu.memory_space<vmem>>, %arg13: memref<1x128xf32, #tpu.memory_space<vmem>>, %arg14: memref<16x128xf32, #tpu.memory_space<vmem>>) attributes {dimension_semantics = [#tpu.dimension_semantics<parallel>], iteration_bounds = array<i64: 2>, scalar_prefetch = 0 : i64, scratch_operands = 0 : i64, tpu.core_type = #tpu.core_type<tc>, window_params = [{transform_indices = @transform_0, window_bounds = array<i64: 16, 256>}, {pipeline_mode = #tpu.pipeline_mode<synchronous>, transform_indices = @transform_1, window_bounds = array<i64: 384, 128>}, {pipeline_mode = #tpu.pipeline_mode<synchronous>, transform_indices = @transform_2, window_bounds = array<i64: 1, 128>}, {pipeline_mode = #tpu.pipeline_mode<synchronous>, transform_indices = @transform_3, window_bounds = array<i64: 512, 128>}, {pipeline_mode = #tpu.pipeline_mode<synchronous>, transform_indices = @transform_4, window_bounds = array<i64: 1, 128>}, {pipeline_mode = #tpu.pipeline_mode<synchronous>, transform_indices = @transform_5, window_bounds = array<i64: 384, 128>}, {pipeline_mode = #tpu.pipeline_mode<synchronous>, transform_indices = @transform_6, window_bounds = array<i64: 1, 128>}, {pipeline_mode = #tpu.pipeline_mode<synchronous>, transform_indices = @transform_7, window_bounds = array<i64: 128, 128>}, {pipeline_mode = #tpu.pipeline_mode<synchronous>, transform_indices = @transform_8, window_bounds = array<i64: 1, 128>}, {pipeline_mode = #tpu.pipeline_mode<synchronous>, transform_indices = @transform_9, window_bounds = array<i64: 384, 128>}, {pipeline_mode = #tpu.pipeline_mode<synchronous>, transform_indices = @transform_10, window_bounds = array<i64: 1, 128>}, {pipeline_mode = #tpu.pipeline_mode<synchronous>, transform_indices = @transform_11, window_bounds = array<i64: 128, 128>}, {pipeline_mode = #tpu.pipeline_mode<synchronous>, transform_indices = @transform_12, window_bounds = array<i64: 1, 128>}, {transform_indices = @transform_13, window_bounds = array<i64: 16, 128>}]} {
    %c0 = arith.constant 0 : index
    %c0_0 = arith.constant 0 : index
    %0 = vector.load %arg1[%c0, %c0_0] : memref<16x256xf32, #tpu.memory_space<vmem>>, vector<16x256xf32>
    %1 = vector.extract_strided_slice %0 {offsets = [0, 0], sizes = [16, 128], strides = [1, 1]} : vector<16x256xf32> to vector<16x128xf32>
    %2 = vector.extract_strided_slice %0 {offsets = [0, 128], sizes = [16, 128], strides = [1, 1]} : vector<16x256xf32> to vector<16x128xf32>
    %c0_1 = arith.constant 0 : index
    %c0_2 = arith.constant 0 : index
    %3 = vector.load %arg2[%c0_1, %c0_2] : memref<384x128xbf16, #tpu.memory_space<vmem>>, vector<384x128xbf16>
    %c0_3 = arith.constant 0 : index
    %c0_4 = arith.constant 0 : index
    %4 = vector.load %arg3[%c0_3, %c0_4] : memref<1x128xf32, #tpu.memory_space<vmem>>, vector<1x128xf32>
    %cst = arith.constant 0.000000e+00 : f32
    %5 = vector.broadcast %cst : f32 to vector<1x128xf32>
    %6 = vector.extract_strided_slice %2 {offsets = [0, 0], sizes = [15, 128], strides = [1, 1]} : vector<16x128xf32> to vector<15x128xf32>
    %7 = tpu.concatenate %5, %6 in 0 : vector<1x128xf32>, vector<15x128xf32> -> vector<16x128xf32>
    %8 = tpu.concatenate %7, %1, %2 in 1 : vector<16x128xf32>, vector<16x128xf32>, vector<16x128xf32> -> vector<16x384xf32>
    %9 = arith.truncf %8 : vector<16x384xf32> to vector<16x384xbf16>
    %cst_5 = arith.constant dense<0.000000e+00> : vector<16x128xf32>
    %10 = tpu.matmul %9, %3, %cst_5 {dimension_numbers = #tpu.dot_dimension_numbers<[1], [0], [0], [1], [0, 0, 1, 1], [], []>} : vector<16x384xbf16>, vector<384x128xbf16>, vector<16x128xf32> -> vector<16x128xf32>
    %11 = vector.broadcast %4 : vector<1x128xf32> to vector<16x128xf32>
    %12 = arith.addf %10, %11 : vector<16x128xf32>
    %cst_6 = arith.constant 0.000000e+00 : f32
    %13 = vector.broadcast %cst_6 : f32 to vector<16x128xf32>
    %14 = arith.maximumf %12, %13 : vector<16x128xf32>
    %cst_7 = arith.constant 0.000000e+00 : f32
    %15 = vector.broadcast %cst_7 : f32 to vector<1x128xf32>
    %16 = vector.extract_strided_slice %1 {offsets = [1, 0], sizes = [15, 128], strides = [1, 1]} : vector<16x128xf32> to vector<15x128xf32>
    %17 = tpu.concatenate %16, %15 in 0 : vector<15x128xf32>, vector<1x128xf32> -> vector<16x128xf32>
    %18 = tpu.concatenate %1, %2, %17 in 1 : vector<16x128xf32>, vector<16x128xf32>, vector<16x128xf32> -> vector<16x384xf32>
    %19 = arith.truncf %18 : vector<16x384xf32> to vector<16x384xbf16>
    %cst_8 = arith.constant dense<0.000000e+00> : vector<16x128xf32>
    %20 = tpu.matmul %19, %3, %cst_8 {dimension_numbers = #tpu.dot_dimension_numbers<[1], [0], [0], [1], [0, 0, 1, 1], [], []>} : vector<16x384xbf16>, vector<384x128xbf16>, vector<16x128xf32> -> vector<16x128xf32>
    %21 = vector.broadcast %4 : vector<1x128xf32> to vector<16x128xf32>
    %22 = arith.addf %20, %21 : vector<16x128xf32>
    %cst_9 = arith.constant 0.000000e+00 : f32
    %23 = vector.broadcast %cst_9 : f32 to vector<16x128xf32>
    %24 = arith.maximumf %22, %23 : vector<16x128xf32>
    %c0_10 = arith.constant 0 : index
    %c0_11 = arith.constant 0 : index
    %25 = vector.load %arg4[%c0_10, %c0_11] : memref<512x128xbf16, #tpu.memory_space<vmem>>, vector<512x128xbf16>
    %c0_12 = arith.constant 0 : index
    %c0_13 = arith.constant 0 : index
    %26 = vector.load %arg5[%c0_12, %c0_13] : memref<1x128xf32, #tpu.memory_space<vmem>>, vector<1x128xf32>
    %cst_14 = arith.constant 0.000000e+00 : f32
    %27 = vector.broadcast %cst_14 : f32 to vector<1x128xf32>
    %28 = vector.extract_strided_slice %24 {offsets = [0, 0], sizes = [15, 128], strides = [1, 1]} : vector<16x128xf32> to vector<15x128xf32>
    %29 = tpu.concatenate %27, %28 in 0 : vector<1x128xf32>, vector<15x128xf32> -> vector<16x128xf32>
    %cst_15 = arith.constant 0.000000e+00 : f32
    %30 = vector.broadcast %cst_15 : f32 to vector<1x128xf32>
    %31 = vector.extract_strided_slice %14 {offsets = [1, 0], sizes = [15, 128], strides = [1, 1]} : vector<16x128xf32> to vector<15x128xf32>
    %32 = tpu.concatenate %31, %30 in 0 : vector<15x128xf32>, vector<1x128xf32> -> vector<16x128xf32>
    %33 = tpu.concatenate %29, %14, %24, %32 in 1 : vector<16x128xf32>, vector<16x128xf32>, vector<16x128xf32>, vector<16x128xf32> -> vector<16x512xf32>
    %34 = arith.truncf %33 : vector<16x512xf32> to vector<16x512xbf16>
    %cst_16 = arith.constant dense<0.000000e+00> : vector<16x128xf32>
    %35 = tpu.matmul %34, %25, %cst_16 {dimension_numbers = #tpu.dot_dimension_numbers<[1], [0], [0], [1], [0, 0, 1, 1], [], []>} : vector<16x512xbf16>, vector<512x128xbf16>, vector<16x128xf32> -> vector<16x128xf32>
    %36 = vector.broadcast %26 : vector<1x128xf32> to vector<16x128xf32>
    %37 = arith.addf %35, %36 : vector<16x128xf32>
    %c0_17 = arith.constant 0 : index
    %c0_18 = arith.constant 0 : index
    %38 = vector.load %arg6[%c0_17, %c0_18] : memref<384x128xbf16, #tpu.memory_space<vmem>>, vector<384x128xbf16>
    %c0_19 = arith.constant 0 : index
    %c0_20 = arith.constant 0 : index
    %39 = vector.load %arg7[%c0_19, %c0_20] : memref<1x128xf32, #tpu.memory_space<vmem>>, vector<1x128xf32>
    %c0_21 = arith.constant 0 : index
    %c0_22 = arith.constant 0 : index
    %40 = vector.load %arg8[%c0_21, %c0_22] : memref<128x128xbf16, #tpu.memory_space<vmem>>, vector<128x128xbf16>
    %c0_23 = arith.constant 0 : index
    %c0_24 = arith.constant 0 : index
    %41 = vector.load %arg9[%c0_23, %c0_24] : memref<1x128xf32, #tpu.memory_space<vmem>>, vector<1x128xf32>
    %cst_25 = arith.constant 0.000000e+00 : f32
    %42 = vector.broadcast %cst_25 : f32 to vector<16x128xf32>
    %43 = arith.maximumf %37, %42 : vector<16x128xf32>
    %cst_26 = arith.constant 0.000000e+00 : f32
    %44 = vector.broadcast %cst_26 : f32 to vector<1x128xf32>
    %45 = vector.extract_strided_slice %43 {offsets = [0, 0], sizes = [15, 128], strides = [1, 1]} : vector<16x128xf32> to vector<15x128xf32>
    %46 = tpu.concatenate %44, %45 in 0 : vector<1x128xf32>, vector<15x128xf32> -> vector<16x128xf32>
    %cst_27 = arith.constant 0.000000e+00 : f32
    %47 = vector.broadcast %cst_27 : f32 to vector<1x128xf32>
    %48 = vector.extract_strided_slice %43 {offsets = [1, 0], sizes = [15, 128], strides = [1, 1]} : vector<16x128xf32> to vector<15x128xf32>
    %49 = tpu.concatenate %48, %47 in 0 : vector<15x128xf32>, vector<1x128xf32> -> vector<16x128xf32>
    %50 = tpu.concatenate %46, %43, %49 in 1 : vector<16x128xf32>, vector<16x128xf32>, vector<16x128xf32> -> vector<16x384xf32>
    %51 = arith.truncf %50 : vector<16x384xf32> to vector<16x384xbf16>
    %cst_28 = arith.constant dense<0.000000e+00> : vector<16x128xf32>
    %52 = tpu.matmul %51, %38, %cst_28 {dimension_numbers = #tpu.dot_dimension_numbers<[1], [0], [0], [1], [0, 0, 1, 1], [], []>} : vector<16x384xbf16>, vector<384x128xbf16>, vector<16x128xf32> -> vector<16x128xf32>
    %53 = vector.broadcast %39 : vector<1x128xf32> to vector<16x128xf32>
    %54 = arith.addf %52, %53 : vector<16x128xf32>
    %cst_29 = arith.constant 0.000000e+00 : f32
    %55 = vector.broadcast %cst_29 : f32 to vector<16x128xf32>
    %56 = arith.maximumf %54, %55 : vector<16x128xf32>
    %57 = arith.truncf %56 : vector<16x128xf32> to vector<16x128xbf16>
    %cst_30 = arith.constant dense<0.000000e+00> : vector<16x128xf32>
    %58 = tpu.matmul %57, %40, %cst_30 {dimension_numbers = #tpu.dot_dimension_numbers<[1], [0], [0], [1], [0, 0, 1, 1], [], []>} : vector<16x128xbf16>, vector<128x128xbf16>, vector<16x128xf32> -> vector<16x128xf32>
    %59 = vector.broadcast %41 : vector<1x128xf32> to vector<16x128xf32>
    %60 = arith.addf %58, %59 : vector<16x128xf32>
    %61 = arith.addf %37, %60 : vector<16x128xf32>
    %c0_31 = arith.constant 0 : index
    %c0_32 = arith.constant 0 : index
    %62 = vector.load %arg10[%c0_31, %c0_32] : memref<384x128xbf16, #tpu.memory_space<vmem>>, vector<384x128xbf16>
    %c0_33 = arith.constant 0 : index
    %c0_34 = arith.constant 0 : index
    %63 = vector.load %arg11[%c0_33, %c0_34] : memref<1x128xf32, #tpu.memory_space<vmem>>, vector<1x128xf32>
    %c0_35 = arith.constant 0 : index
    %c0_36 = arith.constant 0 : index
    %64 = vector.load %arg12[%c0_35, %c0_36] : memref<128x128xbf16, #tpu.memory_space<vmem>>, vector<128x128xbf16>
    %c0_37 = arith.constant 0 : index
    %c0_38 = arith.constant 0 : index
    %65 = vector.load %arg13[%c0_37, %c0_38] : memref<1x128xf32, #tpu.memory_space<vmem>>, vector<1x128xf32>
    %cst_39 = arith.constant 0.000000e+00 : f32
    %66 = vector.broadcast %cst_39 : f32 to vector<16x128xf32>
    %67 = arith.maximumf %61, %66 : vector<16x128xf32>
    %cst_40 = arith.constant 0.000000e+00 : f32
    %68 = vector.broadcast %cst_40 : f32 to vector<3x128xf32>
    %69 = vector.extract_strided_slice %67 {offsets = [0, 0], sizes = [13, 128], strides = [1, 1]} : vector<16x128xf32> to vector<13x128xf32>
    %70 = tpu.concatenate %68, %69 in 0 : vector<3x128xf32>, vector<13x128xf32> -> vector<16x128xf32>
    %cst_41 = arith.constant 0.000000e+00 : f32
    %71 = vector.broadcast %cst_41 : f32 to vector<3x128xf32>
    %72 = vector.extract_strided_slice %67 {offsets = [3, 0], sizes = [13, 128], strides = [1, 1]} : vector<16x128xf32> to vector<13x128xf32>
    %73 = tpu.concatenate %72, %71 in 0 : vector<13x128xf32>, vector<3x128xf32> -> vector<16x128xf32>
    %74 = tpu.concatenate %70, %67, %73 in 1 : vector<16x128xf32>, vector<16x128xf32>, vector<16x128xf32> -> vector<16x384xf32>
    %75 = arith.truncf %74 : vector<16x384xf32> to vector<16x384xbf16>
    %cst_42 = arith.constant dense<0.000000e+00> : vector<16x128xf32>
    %76 = tpu.matmul %75, %62, %cst_42 {dimension_numbers = #tpu.dot_dimension_numbers<[1], [0], [0], [1], [0, 0, 1, 1], [], []>} : vector<16x384xbf16>, vector<384x128xbf16>, vector<16x128xf32> -> vector<16x128xf32>
    %77 = vector.broadcast %63 : vector<1x128xf32> to vector<16x128xf32>
    %78 = arith.addf %76, %77 : vector<16x128xf32>
    %cst_43 = arith.constant 0.000000e+00 : f32
    %79 = vector.broadcast %cst_43 : f32 to vector<16x128xf32>
    %80 = arith.maximumf %78, %79 : vector<16x128xf32>
    %81 = arith.truncf %80 : vector<16x128xf32> to vector<16x128xbf16>
    %cst_44 = arith.constant dense<0.000000e+00> : vector<16x128xf32>
    %82 = tpu.matmul %81, %64, %cst_44 {dimension_numbers = #tpu.dot_dimension_numbers<[1], [0], [0], [1], [0, 0, 1, 1], [], []>} : vector<16x128xbf16>, vector<128x128xbf16>, vector<16x128xf32> -> vector<16x128xf32>
    %83 = vector.broadcast %65 : vector<1x128xf32> to vector<16x128xf32>
    %84 = arith.addf %82, %83 : vector<16x128xf32>
    %85 = arith.addf %61, %84 : vector<16x128xf32>
    %c0_45 = arith.constant 0 : index
    %c0_46 = arith.constant 0 : index
    %86 = vector.load %arg14[%c0_45, %c0_46] : memref<16x128xf32, #tpu.memory_space<vmem>>, vector<16x128xf32>
    tpu.vector_store %arg14[%c0_45, %c0_46], %85 {strides = array<i32>} : memref<16x128xf32, #tpu.memory_space<vmem>>, vector<16x128xf32>,
    return
  }
  func.func @transform_0(%arg0: i32) -> (i32, i32) {
    %c0_i32 = arith.constant 0 : i32
    %c0_i32_0 = arith.constant 0 : i32
    return %arg0, %c0_i32 : i32, i32
  }
  func.func @transform_1(%arg0: i32) -> (i32, i32) {
    %c0_i32 = arith.constant 0 : i32
    %c0_i32_0 = arith.constant 0 : i32
    %c0_i32_1 = arith.constant 0 : i32
    return %c0_i32, %c0_i32_0 : i32, i32
  }
  func.func @transform_2(%arg0: i32) -> (i32, i32) {
    %c0_i32 = arith.constant 0 : i32
    %c0_i32_0 = arith.constant 0 : i32
    %c0_i32_1 = arith.constant 0 : i32
    return %c0_i32, %c0_i32_0 : i32, i32
  }
  func.func @transform_3(%arg0: i32) -> (i32, i32) {
    %c0_i32 = arith.constant 0 : i32
    %c0_i32_0 = arith.constant 0 : i32
    %c0_i32_1 = arith.constant 0 : i32
    return %c0_i32, %c0_i32_0 : i32, i32
  }
  func.func @transform_4(%arg0: i32) -> (i32, i32) {
    %c0_i32 = arith.constant 0 : i32
    %c0_i32_0 = arith.constant 0 : i32
    %c0_i32_1 = arith.constant 0 : i32
    return %c0_i32, %c0_i32_0 : i32, i32
  }
  func.func @transform_5(%arg0: i32) -> (i32, i32) {
    %c0_i32 = arith.constant 0 : i32
    %c0_i32_0 = arith.constant 0 : i32
    %c0_i32_1 = arith.constant 0 : i32
    return %c0_i32, %c0_i32_0 : i32, i32
  }
  func.func @transform_6(%arg0: i32) -> (i32, i32) {
    %c0_i32 = arith.constant 0 : i32
    %c0_i32_0 = arith.constant 0 : i32
    %c0_i32_1 = arith.constant 0 : i32
    return %c0_i32, %c0_i32_0 : i32, i32
  }
  func.func @transform_7(%arg0: i32) -> (i32, i32) {
    %c0_i32 = arith.constant 0 : i32
    %c0_i32_0 = arith.constant 0 : i32
    %c0_i32_1 = arith.constant 0 : i32
    return %c0_i32, %c0_i32_0 : i32, i32
  }
  func.func @transform_8(%arg0: i32) -> (i32, i32) {
    %c0_i32 = arith.constant 0 : i32
    %c0_i32_0 = arith.constant 0 : i32
    %c0_i32_1 = arith.constant 0 : i32
    return %c0_i32, %c0_i32_0 : i32, i32
  }
  func.func @transform_9(%arg0: i32) -> (i32, i32) {
    %c0_i32 = arith.constant 0 : i32
    %c0_i32_0 = arith.constant 0 : i32
    %c0_i32_1 = arith.constant 0 : i32
    return %c0_i32, %c0_i32_0 : i32, i32
  }
  func.func @transform_10(%arg0: i32) -> (i32, i32) {
    %c0_i32 = arith.constant 0 : i32
    %c0_i32_0 = arith.constant 0 : i32
    %c0_i32_1 = arith.constant 0 : i32
    return %c0_i32, %c0_i32_0 : i32, i32
  }
  func.func @transform_11(%arg0: i32) -> (i32, i32) {
    %c0_i32 = arith.constant 0 : i32
    %c0_i32_0 = arith.constant 0 : i32
    %c0_i32_1 = arith.constant 0 : i32
    return %c0_i32, %c0_i32_0 : i32, i32
  }
  func.func @transform_12(%arg0: i32) -> (i32, i32) {
    %c0_i32 = arith.constant 0 : i32
    %c0_i32_0 = arith.constant 0 : i32
    %c0_i32_1 = arith.constant 0 : i32
    return %c0_i32, %c0_i32_0 : i32, i32
  }
  func.func @transform_13(%arg0: i32) -> (i32, i32) {
    %c0_i32 = arith.constant 0 : i32
    %c0_i32_0 = arith.constant 0 : i32
    return %arg0, %c0_i32 : i32, i32
  }
}

module attributes {stable_mosaic.version = 11 : i64} {
  func.func @_enc_level_kernel(%arg0: i32, %arg1: memref<8x256xf32, #tpu.memory_space<vmem>>, %arg2: memref<512x128xbf16, #tpu.memory_space<vmem>>, %arg3: memref<1x128xf32, #tpu.memory_space<vmem>>, %arg4: memref<384x128xbf16, #tpu.memory_space<vmem>>, %arg5: memref<1x128xf32, #tpu.memory_space<vmem>>, %arg6: memref<128x128xbf16, #tpu.memory_space<vmem>>, %arg7: memref<1x128xf32, #tpu.memory_space<vmem>>, %arg8: memref<384x128xbf16, #tpu.memory_space<vmem>>, %arg9: memref<1x128xf32, #tpu.memory_space<vmem>>, %arg10: memref<128x128xbf16, #tpu.memory_space<vmem>>, %arg11: memref<1x128xf32, #tpu.memory_space<vmem>>, %arg12: memref<384x128xbf16, #tpu.memory_space<vmem>>, %arg13: memref<1x128xf32, #tpu.memory_space<vmem>>, %arg14: memref<8x128xf32, #tpu.memory_space<vmem>>) attributes {dimension_semantics = [#tpu.dimension_semantics<parallel>], iteration_bounds = array<i64: 2>, scalar_prefetch = 0 : i64, scratch_operands = 0 : i64, tpu.core_type = #tpu.core_type<tc>, window_params = [{transform_indices = @transform_0, window_bounds = array<i64: 8, 256>}, {pipeline_mode = #tpu.pipeline_mode<synchronous>, transform_indices = @transform_1, window_bounds = array<i64: 512, 128>}, {pipeline_mode = #tpu.pipeline_mode<synchronous>, transform_indices = @transform_2, window_bounds = array<i64: 1, 128>}, {pipeline_mode = #tpu.pipeline_mode<synchronous>, transform_indices = @transform_3, window_bounds = array<i64: 384, 128>}, {pipeline_mode = #tpu.pipeline_mode<synchronous>, transform_indices = @transform_4, window_bounds = array<i64: 1, 128>}, {pipeline_mode = #tpu.pipeline_mode<synchronous>, transform_indices = @transform_5, window_bounds = array<i64: 128, 128>}, {pipeline_mode = #tpu.pipeline_mode<synchronous>, transform_indices = @transform_6, window_bounds = array<i64: 1, 128>}, {pipeline_mode = #tpu.pipeline_mode<synchronous>, transform_indices = @transform_7, window_bounds = array<i64: 384, 128>}, {pipeline_mode = #tpu.pipeline_mode<synchronous>, transform_indices = @transform_8, window_bounds = array<i64: 1, 128>}, {pipeline_mode = #tpu.pipeline_mode<synchronous>, transform_indices = @transform_9, window_bounds = array<i64: 128, 128>}, {pipeline_mode = #tpu.pipeline_mode<synchronous>, transform_indices = @transform_10, window_bounds = array<i64: 1, 128>}, {pipeline_mode = #tpu.pipeline_mode<synchronous>, transform_indices = @transform_11, window_bounds = array<i64: 384, 128>}, {pipeline_mode = #tpu.pipeline_mode<synchronous>, transform_indices = @transform_12, window_bounds = array<i64: 1, 128>}, {transform_indices = @transform_13, window_bounds = array<i64: 8, 128>}]} {
    %c0 = arith.constant 0 : index
    %c0_0 = arith.constant 0 : index
    %0 = vector.load %arg1[%c0, %c0_0] : memref<8x256xf32, #tpu.memory_space<vmem>>, vector<8x256xf32>
    %1 = vector.extract_strided_slice %0 {offsets = [0, 0], sizes = [8, 128], strides = [1, 1]} : vector<8x256xf32> to vector<8x128xf32>
    %2 = vector.extract_strided_slice %0 {offsets = [0, 128], sizes = [8, 128], strides = [1, 1]} : vector<8x256xf32> to vector<8x128xf32>
    %c0_1 = arith.constant 0 : index
    %c0_2 = arith.constant 0 : index
    %3 = vector.load %arg2[%c0_1, %c0_2] : memref<512x128xbf16, #tpu.memory_space<vmem>>, vector<512x128xbf16>
    %c0_3 = arith.constant 0 : index
    %c0_4 = arith.constant 0 : index
    %4 = vector.load %arg3[%c0_3, %c0_4] : memref<1x128xf32, #tpu.memory_space<vmem>>, vector<1x128xf32>
    %cst = arith.constant 0.000000e+00 : f32
    %5 = vector.broadcast %cst : f32 to vector<1x128xf32>
    %6 = vector.extract_strided_slice %2 {offsets = [0, 0], sizes = [7, 128], strides = [1, 1]} : vector<8x128xf32> to vector<7x128xf32>
    %7 = tpu.concatenate %5, %6 in 0 : vector<1x128xf32>, vector<7x128xf32> -> vector<8x128xf32>
    %cst_5 = arith.constant 0.000000e+00 : f32
    %8 = vector.broadcast %cst_5 : f32 to vector<1x128xf32>
    %9 = vector.extract_strided_slice %1 {offsets = [1, 0], sizes = [7, 128], strides = [1, 1]} : vector<8x128xf32> to vector<7x128xf32>
    %10 = tpu.concatenate %9, %8 in 0 : vector<7x128xf32>, vector<1x128xf32> -> vector<8x128xf32>
    %11 = tpu.concatenate %7, %1, %2, %10 in 1 : vector<8x128xf32>, vector<8x128xf32>, vector<8x128xf32>, vector<8x128xf32> -> vector<8x512xf32>
    %12 = arith.truncf %11 : vector<8x512xf32> to vector<8x512xbf16>
    %cst_6 = arith.constant dense<0.000000e+00> : vector<8x128xf32>
    %13 = tpu.matmul %12, %3, %cst_6 {dimension_numbers = #tpu.dot_dimension_numbers<[1], [0], [0], [1], [0, 0, 1, 1], [], []>} : vector<8x512xbf16>, vector<512x128xbf16>, vector<8x128xf32> -> vector<8x128xf32>
    %14 = vector.broadcast %4 : vector<1x128xf32> to vector<8x128xf32>
    %15 = arith.addf %13, %14 : vector<8x128xf32>
    %c0_7 = arith.constant 0 : index
    %c0_8 = arith.constant 0 : index
    %16 = vector.load %arg4[%c0_7, %c0_8] : memref<384x128xbf16, #tpu.memory_space<vmem>>, vector<384x128xbf16>
    %c0_9 = arith.constant 0 : index
    %c0_10 = arith.constant 0 : index
    %17 = vector.load %arg5[%c0_9, %c0_10] : memref<1x128xf32, #tpu.memory_space<vmem>>, vector<1x128xf32>
    %c0_11 = arith.constant 0 : index
    %c0_12 = arith.constant 0 : index
    %18 = vector.load %arg6[%c0_11, %c0_12] : memref<128x128xbf16, #tpu.memory_space<vmem>>, vector<128x128xbf16>
    %c0_13 = arith.constant 0 : index
    %c0_14 = arith.constant 0 : index
    %19 = vector.load %arg7[%c0_13, %c0_14] : memref<1x128xf32, #tpu.memory_space<vmem>>, vector<1x128xf32>
    %cst_15 = arith.constant 0.000000e+00 : f32
    %20 = vector.broadcast %cst_15 : f32 to vector<8x128xf32>
    %21 = arith.maximumf %15, %20 : vector<8x128xf32>
    %cst_16 = arith.constant 0.000000e+00 : f32
    %22 = vector.broadcast %cst_16 : f32 to vector<1x128xf32>
    %23 = vector.extract_strided_slice %21 {offsets = [0, 0], sizes = [7, 128], strides = [1, 1]} : vector<8x128xf32> to vector<7x128xf32>
    %24 = tpu.concatenate %22, %23 in 0 : vector<1x128xf32>, vector<7x128xf32> -> vector<8x128xf32>
    %cst_17 = arith.constant 0.000000e+00 : f32
    %25 = vector.broadcast %cst_17 : f32 to vector<1x128xf32>
    %26 = vector.extract_strided_slice %21 {offsets = [1, 0], sizes = [7, 128], strides = [1, 1]} : vector<8x128xf32> to vector<7x128xf32>
    %27 = tpu.concatenate %26, %25 in 0 : vector<7x128xf32>, vector<1x128xf32> -> vector<8x128xf32>
    %28 = tpu.concatenate %24, %21, %27 in 1 : vector<8x128xf32>, vector<8x128xf32>, vector<8x128xf32> -> vector<8x384xf32>
    %29 = arith.truncf %28 : vector<8x384xf32> to vector<8x384xbf16>
    %cst_18 = arith.constant dense<0.000000e+00> : vector<8x128xf32>
    %30 = tpu.matmul %29, %16, %cst_18 {dimension_numbers = #tpu.dot_dimension_numbers<[1], [0], [0], [1], [0, 0, 1, 1], [], []>} : vector<8x384xbf16>, vector<384x128xbf16>, vector<8x128xf32> -> vector<8x128xf32>
    %31 = vector.broadcast %17 : vector<1x128xf32> to vector<8x128xf32>
    %32 = arith.addf %30, %31 : vector<8x128xf32>
    %cst_19 = arith.constant 0.000000e+00 : f32
    %33 = vector.broadcast %cst_19 : f32 to vector<8x128xf32>
    %34 = arith.maximumf %32, %33 : vector<8x128xf32>
    %35 = arith.truncf %34 : vector<8x128xf32> to vector<8x128xbf16>
    %cst_20 = arith.constant dense<0.000000e+00> : vector<8x128xf32>
    %36 = tpu.matmul %35, %18, %cst_20 {dimension_numbers = #tpu.dot_dimension_numbers<[1], [0], [0], [1], [0, 0, 1, 1], [], []>} : vector<8x128xbf16>, vector<128x128xbf16>, vector<8x128xf32> -> vector<8x128xf32>
    %37 = vector.broadcast %19 : vector<1x128xf32> to vector<8x128xf32>
    %38 = arith.addf %36, %37 : vector<8x128xf32>
    %39 = arith.addf %15, %38 : vector<8x128xf32>
    %c0_21 = arith.constant 0 : index
    %c0_22 = arith.constant 0 : index
    %40 = vector.load %arg8[%c0_21, %c0_22] : memref<384x128xbf16, #tpu.memory_space<vmem>>, vector<384x128xbf16>
    %c0_23 = arith.constant 0 : index
    %c0_24 = arith.constant 0 : index
    %41 = vector.load %arg9[%c0_23, %c0_24] : memref<1x128xf32, #tpu.memory_space<vmem>>, vector<1x128xf32>
    %c0_25 = arith.constant 0 : index
    %c0_26 = arith.constant 0 : index
    %42 = vector.load %arg10[%c0_25, %c0_26] : memref<128x128xbf16, #tpu.memory_space<vmem>>, vector<128x128xbf16>
    %c0_27 = arith.constant 0 : index
    %c0_28 = arith.constant 0 : index
    %43 = vector.load %arg11[%c0_27, %c0_28] : memref<1x128xf32, #tpu.memory_space<vmem>>, vector<1x128xf32>
    %cst_29 = arith.constant 0.000000e+00 : f32
    %44 = vector.broadcast %cst_29 : f32 to vector<8x128xf32>
    %45 = arith.maximumf %39, %44 : vector<8x128xf32>
    %cst_30 = arith.constant 0.000000e+00 : f32
    %46 = vector.broadcast %cst_30 : f32 to vector<3x128xf32>
    %47 = vector.extract_strided_slice %45 {offsets = [0, 0], sizes = [5, 128], strides = [1, 1]} : vector<8x128xf32> to vector<5x128xf32>
    %48 = tpu.concatenate %46, %47 in 0 : vector<3x128xf32>, vector<5x128xf32> -> vector<8x128xf32>
    %cst_31 = arith.constant 0.000000e+00 : f32
    %49 = vector.broadcast %cst_31 : f32 to vector<3x128xf32>
    %50 = vector.extract_strided_slice %45 {offsets = [3, 0], sizes = [5, 128], strides = [1, 1]} : vector<8x128xf32> to vector<5x128xf32>
    %51 = tpu.concatenate %50, %49 in 0 : vector<5x128xf32>, vector<3x128xf32> -> vector<8x128xf32>
    %52 = tpu.concatenate %48, %45, %51 in 1 : vector<8x128xf32>, vector<8x128xf32>, vector<8x128xf32> -> vector<8x384xf32>
    %53 = arith.truncf %52 : vector<8x384xf32> to vector<8x384xbf16>
    %cst_32 = arith.constant dense<0.000000e+00> : vector<8x128xf32>
    %54 = tpu.matmul %53, %40, %cst_32 {dimension_numbers = #tpu.dot_dimension_numbers<[1], [0], [0], [1], [0, 0, 1, 1], [], []>} : vector<8x384xbf16>, vector<384x128xbf16>, vector<8x128xf32> -> vector<8x128xf32>
    %55 = vector.broadcast %41 : vector<1x128xf32> to vector<8x128xf32>
    %56 = arith.addf %54, %55 : vector<8x128xf32>
    %cst_33 = arith.constant 0.000000e+00 : f32
    %57 = vector.broadcast %cst_33 : f32 to vector<8x128xf32>
    %58 = arith.maximumf %56, %57 : vector<8x128xf32>
    %59 = arith.truncf %58 : vector<8x128xf32> to vector<8x128xbf16>
    %cst_34 = arith.constant dense<0.000000e+00> : vector<8x128xf32>
    %60 = tpu.matmul %59, %42, %cst_34 {dimension_numbers = #tpu.dot_dimension_numbers<[1], [0], [0], [1], [0, 0, 1, 1], [], []>} : vector<8x128xbf16>, vector<128x128xbf16>, vector<8x128xf32> -> vector<8x128xf32>
    %61 = vector.broadcast %43 : vector<1x128xf32> to vector<8x128xf32>
    %62 = arith.addf %60, %61 : vector<8x128xf32>
    %63 = arith.addf %39, %62 : vector<8x128xf32>
    %c0_35 = arith.constant 0 : index
    %c0_36 = arith.constant 0 : index
    %64 = vector.load %arg12[%c0_35, %c0_36] : memref<384x128xbf16, #tpu.memory_space<vmem>>, vector<384x128xbf16>
    %c0_37 = arith.constant 0 : index
    %c0_38 = arith.constant 0 : index
    %65 = vector.load %arg13[%c0_37, %c0_38] : memref<1x128xf32, #tpu.memory_space<vmem>>, vector<1x128xf32>
    %cst_39 = arith.constant 0.000000e+00 : f32
    %66 = vector.broadcast %cst_39 : f32 to vector<1x128xf32>
    %67 = vector.extract_strided_slice %63 {offsets = [0, 0], sizes = [7, 128], strides = [1, 1]} : vector<8x128xf32> to vector<7x128xf32>
    %68 = tpu.concatenate %66, %67 in 0 : vector<1x128xf32>, vector<7x128xf32> -> vector<8x128xf32>
    %cst_40 = arith.constant 0.000000e+00 : f32
    %69 = vector.broadcast %cst_40 : f32 to vector<1x128xf32>
    %70 = vector.extract_strided_slice %63 {offsets = [1, 0], sizes = [7, 128], strides = [1, 1]} : vector<8x128xf32> to vector<7x128xf32>
    %71 = tpu.concatenate %70, %69 in 0 : vector<7x128xf32>, vector<1x128xf32> -> vector<8x128xf32>
    %72 = tpu.concatenate %68, %63, %71 in 1 : vector<8x128xf32>, vector<8x128xf32>, vector<8x128xf32> -> vector<8x384xf32>
    %73 = arith.truncf %72 : vector<8x384xf32> to vector<8x384xbf16>
    %cst_41 = arith.constant dense<0.000000e+00> : vector<8x128xf32>
    %74 = tpu.matmul %73, %64, %cst_41 {dimension_numbers = #tpu.dot_dimension_numbers<[1], [0], [0], [1], [0, 0, 1, 1], [], []>} : vector<8x384xbf16>, vector<384x128xbf16>, vector<8x128xf32> -> vector<8x128xf32>
    %75 = vector.broadcast %65 : vector<1x128xf32> to vector<8x128xf32>
    %76 = arith.addf %74, %75 : vector<8x128xf32>
    %c0_42 = arith.constant 0 : index
    %c0_43 = arith.constant 0 : index
    %77 = vector.load %arg14[%c0_42, %c0_43] : memref<8x128xf32, #tpu.memory_space<vmem>>, vector<8x128xf32>
    tpu.vector_store %arg14[%c0_42, %c0_43], %76 {strides = array<i32>} : memref<8x128xf32, #tpu.memory_space<vmem>>, vector<8x128xf32>,
    return
  }
  func.func @transform_0(%arg0: i32) -> (i32, i32) {
    %c0_i32 = arith.constant 0 : i32
    %c0_i32_0 = arith.constant 0 : i32
    return %arg0, %c0_i32 : i32, i32
  }
  func.func @transform_1(%arg0: i32) -> (i32, i32) {
    %c0_i32 = arith.constant 0 : i32
    %c0_i32_0 = arith.constant 0 : i32
    %c0_i32_1 = arith.constant 0 : i32
    return %c0_i32, %c0_i32_0 : i32, i32
  }
  func.func @transform_2(%arg0: i32) -> (i32, i32) {
    %c0_i32 = arith.constant 0 : i32
    %c0_i32_0 = arith.constant 0 : i32
    %c0_i32_1 = arith.constant 0 : i32
    return %c0_i32, %c0_i32_0 : i32, i32
  }
  func.func @transform_3(%arg0: i32) -> (i32, i32) {
    %c0_i32 = arith.constant 0 : i32
    %c0_i32_0 = arith.constant 0 : i32
    %c0_i32_1 = arith.constant 0 : i32
    return %c0_i32, %c0_i32_0 : i32, i32
  }
  func.func @transform_4(%arg0: i32) -> (i32, i32) {
    %c0_i32 = arith.constant 0 : i32
    %c0_i32_0 = arith.constant 0 : i32
    %c0_i32_1 = arith.constant 0 : i32
    return %c0_i32, %c0_i32_0 : i32, i32
  }
  func.func @transform_5(%arg0: i32) -> (i32, i32) {
    %c0_i32 = arith.constant 0 : i32
    %c0_i32_0 = arith.constant 0 : i32
    %c0_i32_1 = arith.constant 0 : i32
    return %c0_i32, %c0_i32_0 : i32, i32
  }
  func.func @transform_6(%arg0: i32) -> (i32, i32) {
    %c0_i32 = arith.constant 0 : i32
    %c0_i32_0 = arith.constant 0 : i32
    %c0_i32_1 = arith.constant 0 : i32
    return %c0_i32, %c0_i32_0 : i32, i32
  }
  func.func @transform_7(%arg0: i32) -> (i32, i32) {
    %c0_i32 = arith.constant 0 : i32
    %c0_i32_0 = arith.constant 0 : i32
    %c0_i32_1 = arith.constant 0 : i32
    return %c0_i32, %c0_i32_0 : i32, i32
  }
  func.func @transform_8(%arg0: i32) -> (i32, i32) {
    %c0_i32 = arith.constant 0 : i32
    %c0_i32_0 = arith.constant 0 : i32
    %c0_i32_1 = arith.constant 0 : i32
    return %c0_i32, %c0_i32_0 : i32, i32
  }
  func.func @transform_9(%arg0: i32) -> (i32, i32) {
    %c0_i32 = arith.constant 0 : i32
    %c0_i32_0 = arith.constant 0 : i32
    %c0_i32_1 = arith.constant 0 : i32
    return %c0_i32, %c0_i32_0 : i32, i32
  }
  func.func @transform_10(%arg0: i32) -> (i32, i32) {
    %c0_i32 = arith.constant 0 : i32
    %c0_i32_0 = arith.constant 0 : i32
    %c0_i32_1 = arith.constant 0 : i32
    return %c0_i32, %c0_i32_0 : i32, i32
  }
  func.func @transform_11(%arg0: i32) -> (i32, i32) {
    %c0_i32 = arith.constant 0 : i32
    %c0_i32_0 = arith.constant 0 : i32
    %c0_i32_1 = arith.constant 0 : i32
    return %c0_i32, %c0_i32_0 : i32, i32
  }
  func.func @transform_12(%arg0: i32) -> (i32, i32) {
    %c0_i32 = arith.constant 0 : i32
    %c0_i32_0 = arith.constant 0 : i32
    %c0_i32_1 = arith.constant 0 : i32
    return %c0_i32, %c0_i32_0 : i32, i32
  }
  func.func @transform_13(%arg0: i32) -> (i32, i32) {
    %c0_i32 = arith.constant 0 : i32
    %c0_i32_0 = arith.constant 0 : i32
    return %arg0, %c0_i32 : i32, i32
  }
}

module attributes {stable_mosaic.version = 11 : i64} {
  func.func @_rvq_kernel(%arg0: i32, %arg1: memref<16x128xf32, #tpu.memory_space<vmem>>, %arg2: memref<2x128x128xf32, #tpu.memory_space<vmem>>, %arg3: memref<2x1x128xf32, #tpu.memory_space<vmem>>, %arg4: memref<16x128xf32, #tpu.memory_space<vmem>>, %arg5: memref<1x2xf32, #tpu.memory_space<vmem>>, %arg6: memref<1x256xf32, #tpu.memory_space<vmem>>) attributes {dimension_semantics = [#tpu.dimension_semantics<parallel>], iteration_bounds = array<i64: 1>, scalar_prefetch = 0 : i64, scratch_operands = 0 : i64, tpu.core_type = #tpu.core_type<tc>, window_params = [{transform_indices = @transform_0, window_bounds = array<i64: 16, 128>}, {pipeline_mode = #tpu.pipeline_mode<synchronous>, transform_indices = @transform_1, window_bounds = array<i64: 2, 128, 128>}, {pipeline_mode = #tpu.pipeline_mode<synchronous>, transform_indices = @transform_2, window_bounds = array<i64: 2, 1, 128>}, {transform_indices = @transform_3, window_bounds = array<i64: 16, 128>}, {transform_indices = @transform_4, window_bounds = array<i64: 1, 2>}, {transform_indices = @transform_5, window_bounds = array<i64: 1, 256>}]} {
    %c0 = arith.constant 0 : index
    %c0_0 = arith.constant 0 : index
    %0 = vector.load %arg1[%c0, %c0_0] : memref<16x128xf32, #tpu.memory_space<vmem>>, vector<16x128xf32>
    %1 = tpu.iota {dimensions = array<i32: 1>} : vector<16x128xi32>
    %cst = arith.constant 0.000000e+00 : f32
    %2 = vector.broadcast %cst : f32 to vector<16x128xf32>
    %c0_1 = arith.constant 0 : index
    %c0_2 = arith.constant 0 : index
    %c0_3 = arith.constant 0 : index
    %3 = vector.load %arg2[%c0_1, %c0_2, %c0_3] : memref<2x128x128xf32, #tpu.memory_space<vmem>>, vector<1x128x128xf32>
    %4 = vector.shape_cast %3 : vector<1x128x128xf32> to vector<128x128xf32>
    %c0_4 = arith.constant 0 : index
    %c0_5 = arith.constant 0 : index
    %c0_6 = arith.constant 0 : index
    %5 = vector.load %arg3[%c0_4, %c0_5, %c0_6] : memref<2x1x128xf32, #tpu.memory_space<vmem>>, vector<1x1x128xf32>
    %6 = vector.shape_cast %5 : vector<1x1x128xf32> to vector<1x128xf32>
    %7 = arith.mulf %0, %0 : vector<16x128xf32>
    %cst_7 = arith.constant dense<0.000000e+00> : vector<16xf32>
    %8 = vector.multi_reduction <add>, %7, %cst_7 [1] : vector<16x128xf32> to vector<16xf32>
    %9 = vector.shape_cast %8 : vector<16xf32> to vector<16x1xf32>
    %10 = arith.truncf %0 : vector<16x128xf32> to vector<16x128xbf16>
    %11 = arith.truncf %4 : vector<128x128xf32> to vector<128x128xbf16>
    %cst_8 = arith.constant dense<0.000000e+00> : vector<16x128xf32>
    %12 = tpu.matmul %10, %11, %cst_8 {dimension_numbers = #tpu.dot_dimension_numbers<[1], [1], [0], [0], [0, 0, 1, 0], [], []>} : vector<16x128xbf16>, vector<128x128xbf16>, vector<16x128xf32> -> vector<16x128xf32>
    %cst_9 = arith.constant 2.000000e+00 : f32
    %13 = vector.broadcast %cst_9 : f32 to vector<16x128xf32>
    %14 = arith.mulf %13, %12 : vector<16x128xf32>
    %15 = vector.broadcast %9 : vector<16x1xf32> to vector<16x128xf32>
    %16 = arith.subf %15, %14 : vector<16x128xf32>
    %17 = vector.broadcast %6 : vector<1x128xf32> to vector<16x128xf32>
    %18 = arith.addf %16, %17 : vector<16x128xf32>
    %cst_10 = arith.constant dense<0x7F800000> : vector<16xf32>
    %19 = vector.multi_reduction <minimumf>, %18, %cst_10 [1] : vector<16x128xf32> to vector<16xf32>
    %20 = vector.shape_cast %19 : vector<16xf32> to vector<16x1xf32>
    %21 = vector.broadcast %20 : vector<16x1xf32> to vector<16x128xf32>
    %22 = arith.cmpf ole, %18, %21 : vector<16x128xf32>
    %c128_i32 = arith.constant 128 : i32
    %23 = vector.broadcast %c128_i32 : i32 to vector<16x128xi32>
    %24 = arith.select %22, %1, %23 : vector<16x128xi1>, vector<16x128xi32>
    %cst_11 = arith.constant dense<2147483647> : vector<16xi32>
    %25 = vector.multi_reduction <minsi>, %24, %cst_11 [1] : vector<16x128xi32> to vector<16xi32>
    %26 = vector.shape_cast %25 : vector<16xi32> to vector<16x1xi32>
    %27 = vector.broadcast %26 : vector<16x1xi32> to vector<16x128xi32>
    %28 = arith.cmpi eq, %1, %27 : vector<16x128xi32>
    %29 = arith.extui %28 : vector<16x128xi1> to vector<16x128xi32>
    %30 = arith.sitofp %29 : vector<16x128xi32> to vector<16x128xf32>
    %cst_12 = arith.constant dense<0.000000e+00> : vector<16x128xf32>
    %31 = tpu.matmul %30, %4, %cst_12 {dimension_numbers = #tpu.dot_dimension_numbers<[1], [0], [0], [1], [0, 0, 1, 1], [], []>} : vector<16x128xf32>, vector<128x128xf32>, vector<16x128xf32> -> vector<16x128xf32>
    %32 = arith.subf %0, %31 : vector<16x128xf32>
    %33 = arith.addf %2, %31 : vector<16x128xf32>
    %34 = arith.mulf %32, %32 : vector<16x128xf32>
    %35 = vector.shape_cast %34 : vector<16x128xf32> to vector<1x16x128xf32>
    %cst_13 = arith.constant dense<0.000000e+00> : vector<1xf32>
    %36 = vector.multi_reduction <add>, %35, %cst_13 [1, 2] : vector<1x16x128xf32> to vector<1xf32>
    %37 = vector.shape_cast %36 : vector<1xf32> to vector<1x1x1xf32>
    %38 = vector.extract %37[0, 0, 0] : f32 from vector<1x1x1xf32>
    %39 = vector.broadcast %38 : f32 to vector<1x1xf32>
    %cst_14 = arith.constant dense<0.000000e+00> : vector<128xf32>
    %40 = vector.multi_reduction <add>, %30, %cst_14 [0] : vector<16x128xf32> to vector<128xf32>
    %41 = vector.shape_cast %40 : vector<128xf32> to vector<1x128xf32>
    %c1 = arith.constant 1 : index
    %c0_15 = arith.constant 0 : index
    %c0_16 = arith.constant 0 : index
    %42 = vector.load %arg2[%c1, %c0_15, %c0_16] : memref<2x128x128xf32, #tpu.memory_space<vmem>>, vector<1x128x128xf32>
    %43 = vector.shape_cast %42 : vector<1x128x128xf32> to vector<128x128xf32>
    %c1_17 = arith.constant 1 : index
    %c0_18 = arith.constant 0 : index
    %c0_19 = arith.constant 0 : index
    %44 = vector.load %arg3[%c1_17, %c0_18, %c0_19] : memref<2x1x128xf32, #tpu.memory_space<vmem>>, vector<1x1x128xf32>
    %45 = vector.shape_cast %44 : vector<1x1x128xf32> to vector<1x128xf32>
    %46 = arith.mulf %32, %32 : vector<16x128xf32>
    %cst_20 = arith.constant dense<0.000000e+00> : vector<16xf32>
    %47 = vector.multi_reduction <add>, %46, %cst_20 [1] : vector<16x128xf32> to vector<16xf32>
    %48 = vector.shape_cast %47 : vector<16xf32> to vector<16x1xf32>
    %49 = arith.truncf %32 : vector<16x128xf32> to vector<16x128xbf16>
    %50 = arith.truncf %43 : vector<128x128xf32> to vector<128x128xbf16>
    %cst_21 = arith.constant dense<0.000000e+00> : vector<16x128xf32>
    %51 = tpu.matmul %49, %50, %cst_21 {dimension_numbers = #tpu.dot_dimension_numbers<[1], [1], [0], [0], [0, 0, 1, 0], [], []>} : vector<16x128xbf16>, vector<128x128xbf16>, vector<16x128xf32> -> vector<16x128xf32>
    %cst_22 = arith.constant 2.000000e+00 : f32
    %52 = vector.broadcast %cst_22 : f32 to vector<16x128xf32>
    %53 = arith.mulf %52, %51 : vector<16x128xf32>
    %54 = vector.broadcast %48 : vector<16x1xf32> to vector<16x128xf32>
    %55 = arith.subf %54, %53 : vector<16x128xf32>
    %56 = vector.broadcast %45 : vector<1x128xf32> to vector<16x128xf32>
    %57 = arith.addf %55, %56 : vector<16x128xf32>
    %cst_23 = arith.constant dense<0x7F800000> : vector<16xf32>
    %58 = vector.multi_reduction <minimumf>, %57, %cst_23 [1] : vector<16x128xf32> to vector<16xf32>
    %59 = vector.shape_cast %58 : vector<16xf32> to vector<16x1xf32>
    %60 = vector.broadcast %59 : vector<16x1xf32> to vector<16x128xf32>
    %61 = arith.cmpf ole, %57, %60 : vector<16x128xf32>
    %c128_i32_24 = arith.constant 128 : i32
    %62 = vector.broadcast %c128_i32_24 : i32 to vector<16x128xi32>
    %63 = arith.select %61, %1, %62 : vector<16x128xi1>, vector<16x128xi32>
    %cst_25 = arith.constant dense<2147483647> : vector<16xi32>
    %64 = vector.multi_reduction <minsi>, %63, %cst_25 [1] : vector<16x128xi32> to vector<16xi32>
    %65 = vector.shape_cast %64 : vector<16xi32> to vector<16x1xi32>
    %66 = vector.broadcast %65 : vector<16x1xi32> to vector<16x128xi32>
    %67 = arith.cmpi eq, %1, %66 : vector<16x128xi32>
    %68 = arith.extui %67 : vector<16x128xi1> to vector<16x128xi32>
    %69 = arith.sitofp %68 : vector<16x128xi32> to vector<16x128xf32>
    %cst_26 = arith.constant dense<0.000000e+00> : vector<16x128xf32>
    %70 = tpu.matmul %69, %43, %cst_26 {dimension_numbers = #tpu.dot_dimension_numbers<[1], [0], [0], [1], [0, 0, 1, 1], [], []>} : vector<16x128xf32>, vector<128x128xf32>, vector<16x128xf32> -> vector<16x128xf32>
    %71 = arith.subf %32, %70 : vector<16x128xf32>
    %72 = arith.addf %33, %70 : vector<16x128xf32>
    %73 = arith.mulf %71, %71 : vector<16x128xf32>
    %74 = vector.shape_cast %73 : vector<16x128xf32> to vector<1x16x128xf32>
    %cst_27 = arith.constant dense<0.000000e+00> : vector<1xf32>
    %75 = vector.multi_reduction <add>, %74, %cst_27 [1, 2] : vector<1x16x128xf32> to vector<1xf32>
    %76 = vector.shape_cast %75 : vector<1xf32> to vector<1x1x1xf32>
    %77 = vector.extract %76[0, 0, 0] : f32 from vector<1x1x1xf32>
    %78 = vector.broadcast %77 : f32 to vector<1x1xf32>
    %cst_28 = arith.constant dense<0.000000e+00> : vector<128xf32>
    %79 = vector.multi_reduction <add>, %69, %cst_28 [0] : vector<16x128xf32> to vector<128xf32>
    %80 = vector.shape_cast %79 : vector<128xf32> to vector<1x128xf32>
    %c0_29 = arith.constant 0 : index
    %c0_30 = arith.constant 0 : index
    %81 = vector.load %arg4[%c0_29, %c0_30] : memref<16x128xf32, #tpu.memory_space<vmem>>, vector<16x128xf32>
    tpu.vector_store %arg4[%c0_29, %c0_30], %72 {strides = array<i32>} : memref<16x128xf32, #tpu.memory_space<vmem>>, vector<16x128xf32>,
    %82 = tpu.concatenate %39, %78 in 1 : vector<1x1xf32>, vector<1x1xf32> -> vector<1x2xf32>
    %c0_31 = arith.constant 0 : index
    %c0_32 = arith.constant 0 : index
    %83 = vector.load %arg5[%c0_31, %c0_32] : memref<1x2xf32, #tpu.memory_space<vmem>>, vector<1x2xf32>
    tpu.vector_store %arg5[%c0_31, %c0_32], %82 {strides = array<i32>} : memref<1x2xf32, #tpu.memory_space<vmem>>, vector<1x2xf32>,
    %84 = tpu.concatenate %41, %80 in 1 : vector<1x128xf32>, vector<1x128xf32> -> vector<1x256xf32>
    %c0_33 = arith.constant 0 : index
    %c0_34 = arith.constant 0 : index
    %85 = vector.load %arg6[%c0_33, %c0_34] : memref<1x256xf32, #tpu.memory_space<vmem>>, vector<1x256xf32>
    tpu.vector_store %arg6[%c0_33, %c0_34], %84 {strides = array<i32>} : memref<1x256xf32, #tpu.memory_space<vmem>>, vector<1x256xf32>,
    return
  }
  func.func @transform_0(%arg0: i32) -> (i32, i32) {
    %c0_i32 = arith.constant 0 : i32
    %c0_i32_0 = arith.constant 0 : i32
    return %arg0, %c0_i32 : i32, i32
  }
  func.func @transform_1(%arg0: i32) -> (i32, i32, i32) {
    %c0_i32 = arith.constant 0 : i32
    %c0_i32_0 = arith.constant 0 : i32
    %c0_i32_1 = arith.constant 0 : i32
    %c0_i32_2 = arith.constant 0 : i32
    return %c0_i32, %c0_i32_0, %c0_i32_1 : i32, i32, i32
  }
  func.func @transform_2(%arg0: i32) -> (i32, i32, i32) {
    %c0_i32 = arith.constant 0 : i32
    %c0_i32_0 = arith.constant 0 : i32
    %c0_i32_1 = arith.constant 0 : i32
    %c0_i32_2 = arith.constant 0 : i32
    return %c0_i32, %c0_i32_0, %c0_i32_1 : i32, i32, i32
  }
  func.func @transform_3(%arg0: i32) -> (i32, i32) {
    %c0_i32 = arith.constant 0 : i32
    %c0_i32_0 = arith.constant 0 : i32
    return %arg0, %c0_i32 : i32, i32
  }
  func.func @transform_4(%arg0: i32) -> (i32, i32) {
    %c0_i32 = arith.constant 0 : i32
    %c0_i32_0 = arith.constant 0 : i32
    return %arg0, %c0_i32 : i32, i32
  }
  func.func @transform_5(%arg0: i32) -> (i32, i32) {
    %c0_i32 = arith.constant 0 : i32
    %c0_i32_0 = arith.constant 0 : i32
    return %arg0, %c0_i32 : i32, i32
  }
}

module attributes {stable_mosaic.version = 11 : i64} {
  func.func @_dec_level_kernel(%arg0: i32, %arg1: memref<8x128xf32, #tpu.memory_space<vmem>>, %arg2: memref<384x128xbf16, #tpu.memory_space<vmem>>, %arg3: memref<1x128xf32, #tpu.memory_space<vmem>>, %arg4: memref<384x128xbf16, #tpu.memory_space<vmem>>, %arg5: memref<1x128xf32, #tpu.memory_space<vmem>>, %arg6: memref<128x128xbf16, #tpu.memory_space<vmem>>, %arg7: memref<1x128xf32, #tpu.memory_space<vmem>>, %arg8: memref<384x128xbf16, #tpu.memory_space<vmem>>, %arg9: memref<1x128xf32, #tpu.memory_space<vmem>>, %arg10: memref<128x128xbf16, #tpu.memory_space<vmem>>, %arg11: memref<1x128xf32, #tpu.memory_space<vmem>>, %arg12: memref<256x128xbf16, #tpu.memory_space<vmem>>, %arg13: memref<256x128xbf16, #tpu.memory_space<vmem>>, %arg14: memref<1x128xf32, #tpu.memory_space<vmem>>, %arg15: memref<8x256xf32, #tpu.memory_space<vmem>>) attributes {dimension_semantics = [#tpu.dimension_semantics<parallel>], iteration_bounds = array<i64: 2>, scalar_prefetch = 0 : i64, scratch_operands = 0 : i64, tpu.core_type = #tpu.core_type<tc>, window_params = [{transform_indices = @transform_0, window_bounds = array<i64: 8, 128>}, {pipeline_mode = #tpu.pipeline_mode<synchronous>, transform_indices = @transform_1, window_bounds = array<i64: 384, 128>}, {pipeline_mode = #tpu.pipeline_mode<synchronous>, transform_indices = @transform_2, window_bounds = array<i64: 1, 128>}, {pipeline_mode = #tpu.pipeline_mode<synchronous>, transform_indices = @transform_3, window_bounds = array<i64: 384, 128>}, {pipeline_mode = #tpu.pipeline_mode<synchronous>, transform_indices = @transform_4, window_bounds = array<i64: 1, 128>}, {pipeline_mode = #tpu.pipeline_mode<synchronous>, transform_indices = @transform_5, window_bounds = array<i64: 128, 128>}, {pipeline_mode = #tpu.pipeline_mode<synchronous>, transform_indices = @transform_6, window_bounds = array<i64: 1, 128>}, {pipeline_mode = #tpu.pipeline_mode<synchronous>, transform_indices = @transform_7, window_bounds = array<i64: 384, 128>}, {pipeline_mode = #tpu.pipeline_mode<synchronous>, transform_indices = @transform_8, window_bounds = array<i64: 1, 128>}, {pipeline_mode = #tpu.pipeline_mode<synchronous>, transform_indices = @transform_9, window_bounds = array<i64: 128, 128>}, {pipeline_mode = #tpu.pipeline_mode<synchronous>, transform_indices = @transform_10, window_bounds = array<i64: 1, 128>}, {pipeline_mode = #tpu.pipeline_mode<synchronous>, transform_indices = @transform_11, window_bounds = array<i64: 256, 128>}, {pipeline_mode = #tpu.pipeline_mode<synchronous>, transform_indices = @transform_12, window_bounds = array<i64: 256, 128>}, {pipeline_mode = #tpu.pipeline_mode<synchronous>, transform_indices = @transform_13, window_bounds = array<i64: 1, 128>}, {transform_indices = @transform_14, window_bounds = array<i64: 8, 256>}]} {
    %c0 = arith.constant 0 : index
    %c0_0 = arith.constant 0 : index
    %0 = vector.load %arg1[%c0, %c0_0] : memref<8x128xf32, #tpu.memory_space<vmem>>, vector<8x128xf32>
    %c0_1 = arith.constant 0 : index
    %c0_2 = arith.constant 0 : index
    %1 = vector.load %arg2[%c0_1, %c0_2] : memref<384x128xbf16, #tpu.memory_space<vmem>>, vector<384x128xbf16>
    %c0_3 = arith.constant 0 : index
    %c0_4 = arith.constant 0 : index
    %2 = vector.load %arg3[%c0_3, %c0_4] : memref<1x128xf32, #tpu.memory_space<vmem>>, vector<1x128xf32>
    %cst = arith.constant 0.000000e+00 : f32
    %3 = vector.broadcast %cst : f32 to vector<1x128xf32>
    %4 = vector.extract_strided_slice %0 {offsets = [0, 0], sizes = [7, 128], strides = [1, 1]} : vector<8x128xf32> to vector<7x128xf32>
    %5 = tpu.concatenate %3, %4 in 0 : vector<1x128xf32>, vector<7x128xf32> -> vector<8x128xf32>
    %cst_5 = arith.constant 0.000000e+00 : f32
    %6 = vector.broadcast %cst_5 : f32 to vector<1x128xf32>
    %7 = vector.extract_strided_slice %0 {offsets = [1, 0], sizes = [7, 128], strides = [1, 1]} : vector<8x128xf32> to vector<7x128xf32>
    %8 = tpu.concatenate %7, %6 in 0 : vector<7x128xf32>, vector<1x128xf32> -> vector<8x128xf32>
    %9 = tpu.concatenate %5, %0, %8 in 1 : vector<8x128xf32>, vector<8x128xf32>, vector<8x128xf32> -> vector<8x384xf32>
    %10 = arith.truncf %9 : vector<8x384xf32> to vector<8x384xbf16>
    %cst_6 = arith.constant dense<0.000000e+00> : vector<8x128xf32>
    %11 = tpu.matmul %10, %1, %cst_6 {dimension_numbers = #tpu.dot_dimension_numbers<[1], [0], [0], [1], [0, 0, 1, 1], [], []>} : vector<8x384xbf16>, vector<384x128xbf16>, vector<8x128xf32> -> vector<8x128xf32>
    %12 = vector.broadcast %2 : vector<1x128xf32> to vector<8x128xf32>
    %13 = arith.addf %11, %12 : vector<8x128xf32>
    %cst_7 = arith.constant 0.000000e+00 : f32
    %14 = vector.broadcast %cst_7 : f32 to vector<8x128xf32>
    %15 = arith.maximumf %13, %14 : vector<8x128xf32>
    %c0_8 = arith.constant 0 : index
    %c0_9 = arith.constant 0 : index
    %16 = vector.load %arg4[%c0_8, %c0_9] : memref<384x128xbf16, #tpu.memory_space<vmem>>, vector<384x128xbf16>
    %c0_10 = arith.constant 0 : index
    %c0_11 = arith.constant 0 : index
    %17 = vector.load %arg5[%c0_10, %c0_11] : memref<1x128xf32, #tpu.memory_space<vmem>>, vector<1x128xf32>
    %c0_12 = arith.constant 0 : index
    %c0_13 = arith.constant 0 : index
    %18 = vector.load %arg6[%c0_12, %c0_13] : memref<128x128xbf16, #tpu.memory_space<vmem>>, vector<128x128xbf16>
    %c0_14 = arith.constant 0 : index
    %c0_15 = arith.constant 0 : index
    %19 = vector.load %arg7[%c0_14, %c0_15] : memref<1x128xf32, #tpu.memory_space<vmem>>, vector<1x128xf32>
    %cst_16 = arith.constant 0.000000e+00 : f32
    %20 = vector.broadcast %cst_16 : f32 to vector<8x128xf32>
    %21 = arith.maximumf %15, %20 : vector<8x128xf32>
    %cst_17 = arith.constant 0.000000e+00 : f32
    %22 = vector.broadcast %cst_17 : f32 to vector<3x128xf32>
    %23 = vector.extract_strided_slice %21 {offsets = [0, 0], sizes = [5, 128], strides = [1, 1]} : vector<8x128xf32> to vector<5x128xf32>
    %24 = tpu.concatenate %22, %23 in 0 : vector<3x128xf32>, vector<5x128xf32> -> vector<8x128xf32>
    %cst_18 = arith.constant 0.000000e+00 : f32
    %25 = vector.broadcast %cst_18 : f32 to vector<3x128xf32>
    %26 = vector.extract_strided_slice %21 {offsets = [3, 0], sizes = [5, 128], strides = [1, 1]} : vector<8x128xf32> to vector<5x128xf32>
    %27 = tpu.concatenate %26, %25 in 0 : vector<5x128xf32>, vector<3x128xf32> -> vector<8x128xf32>
    %28 = tpu.concatenate %24, %21, %27 in 1 : vector<8x128xf32>, vector<8x128xf32>, vector<8x128xf32> -> vector<8x384xf32>
    %29 = arith.truncf %28 : vector<8x384xf32> to vector<8x384xbf16>
    %cst_19 = arith.constant dense<0.000000e+00> : vector<8x128xf32>
    %30 = tpu.matmul %29, %16, %cst_19 {dimension_numbers = #tpu.dot_dimension_numbers<[1], [0], [0], [1], [0, 0, 1, 1], [], []>} : vector<8x384xbf16>, vector<384x128xbf16>, vector<8x128xf32> -> vector<8x128xf32>
    %31 = vector.broadcast %17 : vector<1x128xf32> to vector<8x128xf32>
    %32 = arith.addf %30, %31 : vector<8x128xf32>
    %cst_20 = arith.constant 0.000000e+00 : f32
    %33 = vector.broadcast %cst_20 : f32 to vector<8x128xf32>
    %34 = arith.maximumf %32, %33 : vector<8x128xf32>
    %35 = arith.truncf %34 : vector<8x128xf32> to vector<8x128xbf16>
    %cst_21 = arith.constant dense<0.000000e+00> : vector<8x128xf32>
    %36 = tpu.matmul %35, %18, %cst_21 {dimension_numbers = #tpu.dot_dimension_numbers<[1], [0], [0], [1], [0, 0, 1, 1], [], []>} : vector<8x128xbf16>, vector<128x128xbf16>, vector<8x128xf32> -> vector<8x128xf32>
    %37 = vector.broadcast %19 : vector<1x128xf32> to vector<8x128xf32>
    %38 = arith.addf %36, %37 : vector<8x128xf32>
    %39 = arith.addf %15, %38 : vector<8x128xf32>
    %c0_22 = arith.constant 0 : index
    %c0_23 = arith.constant 0 : index
    %40 = vector.load %arg8[%c0_22, %c0_23] : memref<384x128xbf16, #tpu.memory_space<vmem>>, vector<384x128xbf16>
    %c0_24 = arith.constant 0 : index
    %c0_25 = arith.constant 0 : index
    %41 = vector.load %arg9[%c0_24, %c0_25] : memref<1x128xf32, #tpu.memory_space<vmem>>, vector<1x128xf32>
    %c0_26 = arith.constant 0 : index
    %c0_27 = arith.constant 0 : index
    %42 = vector.load %arg10[%c0_26, %c0_27] : memref<128x128xbf16, #tpu.memory_space<vmem>>, vector<128x128xbf16>
    %c0_28 = arith.constant 0 : index
    %c0_29 = arith.constant 0 : index
    %43 = vector.load %arg11[%c0_28, %c0_29] : memref<1x128xf32, #tpu.memory_space<vmem>>, vector<1x128xf32>
    %cst_30 = arith.constant 0.000000e+00 : f32
    %44 = vector.broadcast %cst_30 : f32 to vector<8x128xf32>
    %45 = arith.maximumf %39, %44 : vector<8x128xf32>
    %cst_31 = arith.constant 0.000000e+00 : f32
    %46 = vector.broadcast %cst_31 : f32 to vector<1x128xf32>
    %47 = vector.extract_strided_slice %45 {offsets = [0, 0], sizes = [7, 128], strides = [1, 1]} : vector<8x128xf32> to vector<7x128xf32>
    %48 = tpu.concatenate %46, %47 in 0 : vector<1x128xf32>, vector<7x128xf32> -> vector<8x128xf32>
    %cst_32 = arith.constant 0.000000e+00 : f32
    %49 = vector.broadcast %cst_32 : f32 to vector<1x128xf32>
    %50 = vector.extract_strided_slice %45 {offsets = [1, 0], sizes = [7, 128], strides = [1, 1]} : vector<8x128xf32> to vector<7x128xf32>
    %51 = tpu.concatenate %50, %49 in 0 : vector<7x128xf32>, vector<1x128xf32> -> vector<8x128xf32>
    %52 = tpu.concatenate %48, %45, %51 in 1 : vector<8x128xf32>, vector<8x128xf32>, vector<8x128xf32> -> vector<8x384xf32>
    %53 = arith.truncf %52 : vector<8x384xf32> to vector<8x384xbf16>
    %cst_33 = arith.constant dense<0.000000e+00> : vector<8x128xf32>
    %54 = tpu.matmul %53, %40, %cst_33 {dimension_numbers = #tpu.dot_dimension_numbers<[1], [0], [0], [1], [0, 0, 1, 1], [], []>} : vector<8x384xbf16>, vector<384x128xbf16>, vector<8x128xf32> -> vector<8x128xf32>
    %55 = vector.broadcast %41 : vector<1x128xf32> to vector<8x128xf32>
    %56 = arith.addf %54, %55 : vector<8x128xf32>
    %cst_34 = arith.constant 0.000000e+00 : f32
    %57 = vector.broadcast %cst_34 : f32 to vector<8x128xf32>
    %58 = arith.maximumf %56, %57 : vector<8x128xf32>
    %59 = arith.truncf %58 : vector<8x128xf32> to vector<8x128xbf16>
    %cst_35 = arith.constant dense<0.000000e+00> : vector<8x128xf32>
    %60 = tpu.matmul %59, %42, %cst_35 {dimension_numbers = #tpu.dot_dimension_numbers<[1], [0], [0], [1], [0, 0, 1, 1], [], []>} : vector<8x128xbf16>, vector<128x128xbf16>, vector<8x128xf32> -> vector<8x128xf32>
    %61 = vector.broadcast %43 : vector<1x128xf32> to vector<8x128xf32>
    %62 = arith.addf %60, %61 : vector<8x128xf32>
    %63 = arith.addf %39, %62 : vector<8x128xf32>
    %c0_36 = arith.constant 0 : index
    %c0_37 = arith.constant 0 : index
    %64 = vector.load %arg14[%c0_36, %c0_37] : memref<1x128xf32, #tpu.memory_space<vmem>>, vector<1x128xf32>
    %cst_38 = arith.constant 0.000000e+00 : f32
    %65 = vector.broadcast %cst_38 : f32 to vector<1x128xf32>
    %66 = vector.extract_strided_slice %63 {offsets = [0, 0], sizes = [7, 128], strides = [1, 1]} : vector<8x128xf32> to vector<7x128xf32>
    %67 = tpu.concatenate %65, %66 in 0 : vector<1x128xf32>, vector<7x128xf32> -> vector<8x128xf32>
    %cst_39 = arith.constant 0.000000e+00 : f32
    %68 = vector.broadcast %cst_39 : f32 to vector<1x128xf32>
    %69 = vector.extract_strided_slice %63 {offsets = [1, 0], sizes = [7, 128], strides = [1, 1]} : vector<8x128xf32> to vector<7x128xf32>
    %70 = tpu.concatenate %69, %68 in 0 : vector<7x128xf32>, vector<1x128xf32> -> vector<8x128xf32>
    %c0_40 = arith.constant 0 : index
    %c0_41 = arith.constant 0 : index
    %71 = vector.load %arg12[%c0_40, %c0_41] : memref<256x128xbf16, #tpu.memory_space<vmem>>, vector<256x128xbf16>
    %72 = tpu.concatenate %67, %63 in 1 : vector<8x128xf32>, vector<8x128xf32> -> vector<8x256xf32>
    %73 = arith.truncf %72 : vector<8x256xf32> to vector<8x256xbf16>
    %cst_42 = arith.constant dense<0.000000e+00> : vector<8x128xf32>
    %74 = tpu.matmul %73, %71, %cst_42 {dimension_numbers = #tpu.dot_dimension_numbers<[1], [0], [0], [1], [0, 0, 1, 1], [], []>} : vector<8x256xbf16>, vector<256x128xbf16>, vector<8x128xf32> -> vector<8x128xf32>
    %75 = vector.broadcast %64 : vector<1x128xf32> to vector<8x128xf32>
    %76 = arith.addf %74, %75 : vector<8x128xf32>
    %c0_43 = arith.constant 0 : index
    %c0_44 = arith.constant 0 : index
    %77 = vector.load %arg15[%c0_43, %c0_44] : memref<8x256xf32, #tpu.memory_space<vmem>>, vector<8x128xf32>
    tpu.vector_store %arg15[%c0_43, %c0_44], %76 {strides = array<i32>} : memref<8x256xf32, #tpu.memory_space<vmem>>, vector<8x128xf32>,
    %c0_45 = arith.constant 0 : index
    %c0_46 = arith.constant 0 : index
    %78 = vector.load %arg13[%c0_45, %c0_46] : memref<256x128xbf16, #tpu.memory_space<vmem>>, vector<256x128xbf16>
    %79 = tpu.concatenate %63, %70 in 1 : vector<8x128xf32>, vector<8x128xf32> -> vector<8x256xf32>
    %80 = arith.truncf %79 : vector<8x256xf32> to vector<8x256xbf16>
    %cst_47 = arith.constant dense<0.000000e+00> : vector<8x128xf32>
    %81 = tpu.matmul %80, %78, %cst_47 {dimension_numbers = #tpu.dot_dimension_numbers<[1], [0], [0], [1], [0, 0, 1, 1], [], []>} : vector<8x256xbf16>, vector<256x128xbf16>, vector<8x128xf32> -> vector<8x128xf32>
    %82 = vector.broadcast %64 : vector<1x128xf32> to vector<8x128xf32>
    %83 = arith.addf %81, %82 : vector<8x128xf32>
    %c0_48 = arith.constant 0 : index
    %c128 = arith.constant 128 : index
    %84 = vector.load %arg15[%c0_48, %c128] : memref<8x256xf32, #tpu.memory_space<vmem>>, vector<8x128xf32>
    tpu.vector_store %arg15[%c0_48, %c128], %83 {strides = array<i32>} : memref<8x256xf32, #tpu.memory_space<vmem>>, vector<8x128xf32>,
    return
  }
  func.func @transform_0(%arg0: i32) -> (i32, i32) {
    %c0_i32 = arith.constant 0 : i32
    %c0_i32_0 = arith.constant 0 : i32
    return %arg0, %c0_i32 : i32, i32
  }
  func.func @transform_1(%arg0: i32) -> (i32, i32) {
    %c0_i32 = arith.constant 0 : i32
    %c0_i32_0 = arith.constant 0 : i32
    %c0_i32_1 = arith.constant 0 : i32
    return %c0_i32, %c0_i32_0 : i32, i32
  }
  func.func @transform_2(%arg0: i32) -> (i32, i32) {
    %c0_i32 = arith.constant 0 : i32
    %c0_i32_0 = arith.constant 0 : i32
    %c0_i32_1 = arith.constant 0 : i32
    return %c0_i32, %c0_i32_0 : i32, i32
  }
  func.func @transform_3(%arg0: i32) -> (i32, i32) {
    %c0_i32 = arith.constant 0 : i32
    %c0_i32_0 = arith.constant 0 : i32
    %c0_i32_1 = arith.constant 0 : i32
    return %c0_i32, %c0_i32_0 : i32, i32
  }
  func.func @transform_4(%arg0: i32) -> (i32, i32) {
    %c0_i32 = arith.constant 0 : i32
    %c0_i32_0 = arith.constant 0 : i32
    %c0_i32_1 = arith.constant 0 : i32
    return %c0_i32, %c0_i32_0 : i32, i32
  }
  func.func @transform_5(%arg0: i32) -> (i32, i32) {
    %c0_i32 = arith.constant 0 : i32
    %c0_i32_0 = arith.constant 0 : i32
    %c0_i32_1 = arith.constant 0 : i32
    return %c0_i32, %c0_i32_0 : i32, i32
  }
  func.func @transform_6(%arg0: i32) -> (i32, i32) {
    %c0_i32 = arith.constant 0 : i32
    %c0_i32_0 = arith.constant 0 : i32
    %c0_i32_1 = arith.constant 0 : i32
    return %c0_i32, %c0_i32_0 : i32, i32
  }
  func.func @transform_7(%arg0: i32) -> (i32, i32) {
    %c0_i32 = arith.constant 0 : i32
    %c0_i32_0 = arith.constant 0 : i32
    %c0_i32_1 = arith.constant 0 : i32
    return %c0_i32, %c0_i32_0 : i32, i32
  }
  func.func @transform_8(%arg0: i32) -> (i32, i32) {
    %c0_i32 = arith.constant 0 : i32
    %c0_i32_0 = arith.constant 0 : i32
    %c0_i32_1 = arith.constant 0 : i32
    return %c0_i32, %c0_i32_0 : i32, i32
  }
  func.func @transform_9(%arg0: i32) -> (i32, i32) {
    %c0_i32 = arith.constant 0 : i32
    %c0_i32_0 = arith.constant 0 : i32
    %c0_i32_1 = arith.constant 0 : i32
    return %c0_i32, %c0_i32_0 : i32, i32
  }
  func.func @transform_10(%arg0: i32) -> (i32, i32) {
    %c0_i32 = arith.constant 0 : i32
    %c0_i32_0 = arith.constant 0 : i32
    %c0_i32_1 = arith.constant 0 : i32
    return %c0_i32, %c0_i32_0 : i32, i32
  }
  func.func @transform_11(%arg0: i32) -> (i32, i32) {
    %c0_i32 = arith.constant 0 : i32
    %c0_i32_0 = arith.constant 0 : i32
    %c0_i32_1 = arith.constant 0 : i32
    return %c0_i32, %c0_i32_0 : i32, i32
  }
  func.func @transform_12(%arg0: i32) -> (i32, i32) {
    %c0_i32 = arith.constant 0 : i32
    %c0_i32_0 = arith.constant 0 : i32
    %c0_i32_1 = arith.constant 0 : i32
    return %c0_i32, %c0_i32_0 : i32, i32
  }
  func.func @transform_13(%arg0: i32) -> (i32, i32) {
    %c0_i32 = arith.constant 0 : i32
    %c0_i32_0 = arith.constant 0 : i32
    %c0_i32_1 = arith.constant 0 : i32
    return %c0_i32, %c0_i32_0 : i32, i32
  }
  func.func @transform_14(%arg0: i32) -> (i32, i32) {
    %c0_i32 = arith.constant 0 : i32
    %c0_i32_0 = arith.constant 0 : i32
    return %arg0, %c0_i32 : i32, i32
  }
}

module attributes {stable_mosaic.version = 11 : i64} {
  func.func @_dec_level_kernel(%arg0: i32, %arg1: memref<16x128xf32, #tpu.memory_space<vmem>>, %arg2: memref<384x128xbf16, #tpu.memory_space<vmem>>, %arg3: memref<1x128xf32, #tpu.memory_space<vmem>>, %arg4: memref<128x128xbf16, #tpu.memory_space<vmem>>, %arg5: memref<1x128xf32, #tpu.memory_space<vmem>>, %arg6: memref<384x128xbf16, #tpu.memory_space<vmem>>, %arg7: memref<1x128xf32, #tpu.memory_space<vmem>>, %arg8: memref<128x128xbf16, #tpu.memory_space<vmem>>, %arg9: memref<1x128xf32, #tpu.memory_space<vmem>>, %arg10: memref<256x128xbf16, #tpu.memory_space<vmem>>, %arg11: memref<256x128xbf16, #tpu.memory_space<vmem>>, %arg12: memref<1x128xf32, #tpu.memory_space<vmem>>, %arg13: memref<16x256xf32, #tpu.memory_space<vmem>>) attributes {dimension_semantics = [#tpu.dimension_semantics<parallel>], iteration_bounds = array<i64: 2>, scalar_prefetch = 0 : i64, scratch_operands = 0 : i64, tpu.core_type = #tpu.core_type<tc>, window_params = [{transform_indices = @transform_0, window_bounds = array<i64: 16, 128>}, {pipeline_mode = #tpu.pipeline_mode<synchronous>, transform_indices = @transform_1, window_bounds = array<i64: 384, 128>}, {pipeline_mode = #tpu.pipeline_mode<synchronous>, transform_indices = @transform_2, window_bounds = array<i64: 1, 128>}, {pipeline_mode = #tpu.pipeline_mode<synchronous>, transform_indices = @transform_3, window_bounds = array<i64: 128, 128>}, {pipeline_mode = #tpu.pipeline_mode<synchronous>, transform_indices = @transform_4, window_bounds = array<i64: 1, 128>}, {pipeline_mode = #tpu.pipeline_mode<synchronous>, transform_indices = @transform_5, window_bounds = array<i64: 384, 128>}, {pipeline_mode = #tpu.pipeline_mode<synchronous>, transform_indices = @transform_6, window_bounds = array<i64: 1, 128>}, {pipeline_mode = #tpu.pipeline_mode<synchronous>, transform_indices = @transform_7, window_bounds = array<i64: 128, 128>}, {pipeline_mode = #tpu.pipeline_mode<synchronous>, transform_indices = @transform_8, window_bounds = array<i64: 1, 128>}, {pipeline_mode = #tpu.pipeline_mode<synchronous>, transform_indices = @transform_9, window_bounds = array<i64: 256, 128>}, {pipeline_mode = #tpu.pipeline_mode<synchronous>, transform_indices = @transform_10, window_bounds = array<i64: 256, 128>}, {pipeline_mode = #tpu.pipeline_mode<synchronous>, transform_indices = @transform_11, window_bounds = array<i64: 1, 128>}, {transform_indices = @transform_12, window_bounds = array<i64: 16, 256>}]} {
    %c0 = arith.constant 0 : index
    %c0_0 = arith.constant 0 : index
    %0 = vector.load %arg1[%c0, %c0_0] : memref<16x128xf32, #tpu.memory_space<vmem>>, vector<16x128xf32>
    %c0_1 = arith.constant 0 : index
    %c0_2 = arith.constant 0 : index
    %1 = vector.load %arg2[%c0_1, %c0_2] : memref<384x128xbf16, #tpu.memory_space<vmem>>, vector<384x128xbf16>
    %c0_3 = arith.constant 0 : index
    %c0_4 = arith.constant 0 : index
    %2 = vector.load %arg3[%c0_3, %c0_4] : memref<1x128xf32, #tpu.memory_space<vmem>>, vector<1x128xf32>
    %c0_5 = arith.constant 0 : index
    %c0_6 = arith.constant 0 : index
    %3 = vector.load %arg4[%c0_5, %c0_6] : memref<128x128xbf16, #tpu.memory_space<vmem>>, vector<128x128xbf16>
    %c0_7 = arith.constant 0 : index
    %c0_8 = arith.constant 0 : index
    %4 = vector.load %arg5[%c0_7, %c0_8] : memref<1x128xf32, #tpu.memory_space<vmem>>, vector<1x128xf32>
    %cst = arith.constant 0.000000e+00 : f32
    %5 = vector.broadcast %cst : f32 to vector<16x128xf32>
    %6 = arith.maximumf %0, %5 : vector<16x128xf32>
    %cst_9 = arith.constant 0.000000e+00 : f32
    %7 = vector.broadcast %cst_9 : f32 to vector<3x128xf32>
    %8 = vector.extract_strided_slice %6 {offsets = [0, 0], sizes = [13, 128], strides = [1, 1]} : vector<16x128xf32> to vector<13x128xf32>
    %9 = tpu.concatenate %7, %8 in 0 : vector<3x128xf32>, vector<13x128xf32> -> vector<16x128xf32>
    %cst_10 = arith.constant 0.000000e+00 : f32
    %10 = vector.broadcast %cst_10 : f32 to vector<3x128xf32>
    %11 = vector.extract_strided_slice %6 {offsets = [3, 0], sizes = [13, 128], strides = [1, 1]} : vector<16x128xf32> to vector<13x128xf32>
    %12 = tpu.concatenate %11, %10 in 0 : vector<13x128xf32>, vector<3x128xf32> -> vector<16x128xf32>
    %13 = tpu.concatenate %9, %6, %12 in 1 : vector<16x128xf32>, vector<16x128xf32>, vector<16x128xf32> -> vector<16x384xf32>
    %14 = arith.truncf %13 : vector<16x384xf32> to vector<16x384xbf16>
    %cst_11 = arith.constant dense<0.000000e+00> : vector<16x128xf32>
    %15 = tpu.matmul %14, %1, %cst_11 {dimension_numbers = #tpu.dot_dimension_numbers<[1], [0], [0], [1], [0, 0, 1, 1], [], []>} : vector<16x384xbf16>, vector<384x128xbf16>, vector<16x128xf32> -> vector<16x128xf32>
    %16 = vector.broadcast %2 : vector<1x128xf32> to vector<16x128xf32>
    %17 = arith.addf %15, %16 : vector<16x128xf32>
    %cst_12 = arith.constant 0.000000e+00 : f32
    %18 = vector.broadcast %cst_12 : f32 to vector<16x128xf32>
    %19 = arith.maximumf %17, %18 : vector<16x128xf32>
    %20 = arith.truncf %19 : vector<16x128xf32> to vector<16x128xbf16>
    %cst_13 = arith.constant dense<0.000000e+00> : vector<16x128xf32>
    %21 = tpu.matmul %20, %3, %cst_13 {dimension_numbers = #tpu.dot_dimension_numbers<[1], [0], [0], [1], [0, 0, 1, 1], [], []>} : vector<16x128xbf16>, vector<128x128xbf16>, vector<16x128xf32> -> vector<16x128xf32>
    %22 = vector.broadcast %4 : vector<1x128xf32> to vector<16x128xf32>
    %23 = arith.addf %21, %22 : vector<16x128xf32>
    %24 = arith.addf %0, %23 : vector<16x128xf32>
    %c0_14 = arith.constant 0 : index
    %c0_15 = arith.constant 0 : index
    %25 = vector.load %arg6[%c0_14, %c0_15] : memref<384x128xbf16, #tpu.memory_space<vmem>>, vector<384x128xbf16>
    %c0_16 = arith.constant 0 : index
    %c0_17 = arith.constant 0 : index
    %26 = vector.load %arg7[%c0_16, %c0_17] : memref<1x128xf32, #tpu.memory_space<vmem>>, vector<1x128xf32>
    %c0_18 = arith.constant 0 : index
    %c0_19 = arith.constant 0 : index
    %27 = vector.load %arg8[%c0_18, %c0_19] : memref<128x128xbf16, #tpu.memory_space<vmem>>, vector<128x128xbf16>
    %c0_20 = arith.constant 0 : index
    %c0_21 = arith.constant 0 : index
    %28 = vector.load %arg9[%c0_20, %c0_21] : memref<1x128xf32, #tpu.memory_space<vmem>>, vector<1x128xf32>
    %cst_22 = arith.constant 0.000000e+00 : f32
    %29 = vector.broadcast %cst_22 : f32 to vector<16x128xf32>
    %30 = arith.maximumf %24, %29 : vector<16x128xf32>
    %cst_23 = arith.constant 0.000000e+00 : f32
    %31 = vector.broadcast %cst_23 : f32 to vector<1x128xf32>
    %32 = vector.extract_strided_slice %30 {offsets = [0, 0], sizes = [15, 128], strides = [1, 1]} : vector<16x128xf32> to vector<15x128xf32>
    %33 = tpu.concatenate %31, %32 in 0 : vector<1x128xf32>, vector<15x128xf32> -> vector<16x128xf32>
    %cst_24 = arith.constant 0.000000e+00 : f32
    %34 = vector.broadcast %cst_24 : f32 to vector<1x128xf32>
    %35 = vector.extract_strided_slice %30 {offsets = [1, 0], sizes = [15, 128], strides = [1, 1]} : vector<16x128xf32> to vector<15x128xf32>
    %36 = tpu.concatenate %35, %34 in 0 : vector<15x128xf32>, vector<1x128xf32> -> vector<16x128xf32>
    %37 = tpu.concatenate %33, %30, %36 in 1 : vector<16x128xf32>, vector<16x128xf32>, vector<16x128xf32> -> vector<16x384xf32>
    %38 = arith.truncf %37 : vector<16x384xf32> to vector<16x384xbf16>
    %cst_25 = arith.constant dense<0.000000e+00> : vector<16x128xf32>
    %39 = tpu.matmul %38, %25, %cst_25 {dimension_numbers = #tpu.dot_dimension_numbers<[1], [0], [0], [1], [0, 0, 1, 1], [], []>} : vector<16x384xbf16>, vector<384x128xbf16>, vector<16x128xf32> -> vector<16x128xf32>
    %40 = vector.broadcast %26 : vector<1x128xf32> to vector<16x128xf32>
    %41 = arith.addf %39, %40 : vector<16x128xf32>
    %cst_26 = arith.constant 0.000000e+00 : f32
    %42 = vector.broadcast %cst_26 : f32 to vector<16x128xf32>
    %43 = arith.maximumf %41, %42 : vector<16x128xf32>
    %44 = arith.truncf %43 : vector<16x128xf32> to vector<16x128xbf16>
    %cst_27 = arith.constant dense<0.000000e+00> : vector<16x128xf32>
    %45 = tpu.matmul %44, %27, %cst_27 {dimension_numbers = #tpu.dot_dimension_numbers<[1], [0], [0], [1], [0, 0, 1, 1], [], []>} : vector<16x128xbf16>, vector<128x128xbf16>, vector<16x128xf32> -> vector<16x128xf32>
    %46 = vector.broadcast %28 : vector<1x128xf32> to vector<16x128xf32>
    %47 = arith.addf %45, %46 : vector<16x128xf32>
    %48 = arith.addf %24, %47 : vector<16x128xf32>
    %c0_28 = arith.constant 0 : index
    %c0_29 = arith.constant 0 : index
    %49 = vector.load %arg12[%c0_28, %c0_29] : memref<1x128xf32, #tpu.memory_space<vmem>>, vector<1x128xf32>
    %cst_30 = arith.constant 0.000000e+00 : f32
    %50 = vector.broadcast %cst_30 : f32 to vector<1x128xf32>
    %51 = vector.extract_strided_slice %48 {offsets = [0, 0], sizes = [15, 128], strides = [1, 1]} : vector<16x128xf32> to vector<15x128xf32>
    %52 = tpu.concatenate %50, %51 in 0 : vector<1x128xf32>, vector<15x128xf32> -> vector<16x128xf32>
    %cst_31 = arith.constant 0.000000e+00 : f32
    %53 = vector.broadcast %cst_31 : f32 to vector<1x128xf32>
    %54 = vector.extract_strided_slice %48 {offsets = [1, 0], sizes = [15, 128], strides = [1, 1]} : vector<16x128xf32> to vector<15x128xf32>
    %55 = tpu.concatenate %54, %53 in 0 : vector<15x128xf32>, vector<1x128xf32> -> vector<16x128xf32>
    %c0_32 = arith.constant 0 : index
    %c0_33 = arith.constant 0 : index
    %56 = vector.load %arg10[%c0_32, %c0_33] : memref<256x128xbf16, #tpu.memory_space<vmem>>, vector<256x128xbf16>
    %57 = tpu.concatenate %52, %48 in 1 : vector<16x128xf32>, vector<16x128xf32> -> vector<16x256xf32>
    %58 = arith.truncf %57 : vector<16x256xf32> to vector<16x256xbf16>
    %cst_34 = arith.constant dense<0.000000e+00> : vector<16x128xf32>
    %59 = tpu.matmul %58, %56, %cst_34 {dimension_numbers = #tpu.dot_dimension_numbers<[1], [0], [0], [1], [0, 0, 1, 1], [], []>} : vector<16x256xbf16>, vector<256x128xbf16>, vector<16x128xf32> -> vector<16x128xf32>
    %60 = vector.broadcast %49 : vector<1x128xf32> to vector<16x128xf32>
    %61 = arith.addf %59, %60 : vector<16x128xf32>
    %c0_35 = arith.constant 0 : index
    %c0_36 = arith.constant 0 : index
    %62 = vector.load %arg13[%c0_35, %c0_36] : memref<16x256xf32, #tpu.memory_space<vmem>>, vector<16x128xf32>
    tpu.vector_store %arg13[%c0_35, %c0_36], %61 {strides = array<i32>} : memref<16x256xf32, #tpu.memory_space<vmem>>, vector<16x128xf32>,
    %c0_37 = arith.constant 0 : index
    %c0_38 = arith.constant 0 : index
    %63 = vector.load %arg11[%c0_37, %c0_38] : memref<256x128xbf16, #tpu.memory_space<vmem>>, vector<256x128xbf16>
    %64 = tpu.concatenate %48, %55 in 1 : vector<16x128xf32>, vector<16x128xf32> -> vector<16x256xf32>
    %65 = arith.truncf %64 : vector<16x256xf32> to vector<16x256xbf16>
    %cst_39 = arith.constant dense<0.000000e+00> : vector<16x128xf32>
    %66 = tpu.matmul %65, %63, %cst_39 {dimension_numbers = #tpu.dot_dimension_numbers<[1], [0], [0], [1], [0, 0, 1, 1], [], []>} : vector<16x256xbf16>, vector<256x128xbf16>, vector<16x128xf32> -> vector<16x128xf32>
    %67 = vector.broadcast %49 : vector<1x128xf32> to vector<16x128xf32>
    %68 = arith.addf %66, %67 : vector<16x128xf32>
    %c0_40 = arith.constant 0 : index
    %c128 = arith.constant 128 : index
    %69 = vector.load %arg13[%c0_40, %c128] : memref<16x256xf32, #tpu.memory_space<vmem>>, vector<16x128xf32>
    tpu.vector_store %arg13[%c0_40, %c128], %68 {strides = array<i32>} : memref<16x256xf32, #tpu.memory_space<vmem>>, vector<16x128xf32>,
    return
  }
  func.func @transform_0(%arg0: i32) -> (i32, i32) {
    %c0_i32 = arith.constant 0 : i32
    %c0_i32_0 = arith.constant 0 : i32
    return %arg0, %c0_i32 : i32, i32
  }
  func.func @transform_1(%arg0: i32) -> (i32, i32) {
    %c0_i32 = arith.constant 0 : i32
    %c0_i32_0 = arith.constant 0 : i32
    %c0_i32_1 = arith.constant 0 : i32
    return %c0_i32, %c0_i32_0 : i32, i32
  }
  func.func @transform_2(%arg0: i32) -> (i32, i32) {
    %c0_i32 = arith.constant 0 : i32
    %c0_i32_0 = arith.constant 0 : i32
    %c0_i32_1 = arith.constant 0 : i32
    return %c0_i32, %c0_i32_0 : i32, i32
  }
  func.func @transform_3(%arg0: i32) -> (i32, i32) {
    %c0_i32 = arith.constant 0 : i32
    %c0_i32_0 = arith.constant 0 : i32
    %c0_i32_1 = arith.constant 0 : i32
    return %c0_i32, %c0_i32_0 : i32, i32
  }
  func.func @transform_4(%arg0: i32) -> (i32, i32) {
    %c0_i32 = arith.constant 0 : i32
    %c0_i32_0 = arith.constant 0 : i32
    %c0_i32_1 = arith.constant 0 : i32
    return %c0_i32, %c0_i32_0 : i32, i32
  }
  func.func @transform_5(%arg0: i32) -> (i32, i32) {
    %c0_i32 = arith.constant 0 : i32
    %c0_i32_0 = arith.constant 0 : i32
    %c0_i32_1 = arith.constant 0 : i32
    return %c0_i32, %c0_i32_0 : i32, i32
  }
  func.func @transform_6(%arg0: i32) -> (i32, i32) {
    %c0_i32 = arith.constant 0 : i32
    %c0_i32_0 = arith.constant 0 : i32
    %c0_i32_1 = arith.constant 0 : i32
    return %c0_i32, %c0_i32_0 : i32, i32
  }
  func.func @transform_7(%arg0: i32) -> (i32, i32) {
    %c0_i32 = arith.constant 0 : i32
    %c0_i32_0 = arith.constant 0 : i32
    %c0_i32_1 = arith.constant 0 : i32
    return %c0_i32, %c0_i32_0 : i32, i32
  }
  func.func @transform_8(%arg0: i32) -> (i32, i32) {
    %c0_i32 = arith.constant 0 : i32
    %c0_i32_0 = arith.constant 0 : i32
    %c0_i32_1 = arith.constant 0 : i32
    return %c0_i32, %c0_i32_0 : i32, i32
  }
  func.func @transform_9(%arg0: i32) -> (i32, i32) {
    %c0_i32 = arith.constant 0 : i32
    %c0_i32_0 = arith.constant 0 : i32
    %c0_i32_1 = arith.constant 0 : i32
    return %c0_i32, %c0_i32_0 : i32, i32
  }
  func.func @transform_10(%arg0: i32) -> (i32, i32) {
    %c0_i32 = arith.constant 0 : i32
    %c0_i32_0 = arith.constant 0 : i32
    %c0_i32_1 = arith.constant 0 : i32
    return %c0_i32, %c0_i32_0 : i32, i32
  }
  func.func @transform_11(%arg0: i32) -> (i32, i32) {
    %c0_i32 = arith.constant 0 : i32
    %c0_i32_0 = arith.constant 0 : i32
    %c0_i32_1 = arith.constant 0 : i32
    return %c0_i32, %c0_i32_0 : i32, i32
  }
  func.func @transform_12(%arg0: i32) -> (i32, i32) {
    %c0_i32 = arith.constant 0 : i32
    %c0_i32_0 = arith.constant 0 : i32
    return %arg0, %c0_i32 : i32, i32
  }
}

module attributes {stable_mosaic.version = 11 : i64} {
  func.func @_dec_head_kernel(%arg0: i32, %arg1: memref<32x128xf32, #tpu.memory_space<vmem>>, %arg2: memref<384x128xbf16, #tpu.memory_space<vmem>>, %arg3: memref<1x128xf32, #tpu.memory_space<vmem>>, %arg4: memref<384x128xbf16, #tpu.memory_space<vmem>>, %arg5: memref<1x128xf32, #tpu.memory_space<vmem>>, %arg6: memref<32x128xf32, #tpu.memory_space<vmem>>) attributes {dimension_semantics = [#tpu.dimension_semantics<parallel>], iteration_bounds = array<i64: 2>, scalar_prefetch = 0 : i64, scratch_operands = 0 : i64, tpu.core_type = #tpu.core_type<tc>, window_params = [{transform_indices = @transform_0, window_bounds = array<i64: 32, 128>}, {pipeline_mode = #tpu.pipeline_mode<synchronous>, transform_indices = @transform_1, window_bounds = array<i64: 384, 128>}, {pipeline_mode = #tpu.pipeline_mode<synchronous>, transform_indices = @transform_2, window_bounds = array<i64: 1, 128>}, {pipeline_mode = #tpu.pipeline_mode<synchronous>, transform_indices = @transform_3, window_bounds = array<i64: 384, 128>}, {pipeline_mode = #tpu.pipeline_mode<synchronous>, transform_indices = @transform_4, window_bounds = array<i64: 1, 128>}, {transform_indices = @transform_5, window_bounds = array<i64: 32, 128>}]} {
    %c0 = arith.constant 0 : index
    %c0_0 = arith.constant 0 : index
    %0 = vector.load %arg1[%c0, %c0_0] : memref<32x128xf32, #tpu.memory_space<vmem>>, vector<32x128xf32>
    %c0_1 = arith.constant 0 : index
    %c0_2 = arith.constant 0 : index
    %1 = vector.load %arg2[%c0_1, %c0_2] : memref<384x128xbf16, #tpu.memory_space<vmem>>, vector<384x128xbf16>
    %c0_3 = arith.constant 0 : index
    %c0_4 = arith.constant 0 : index
    %2 = vector.load %arg3[%c0_3, %c0_4] : memref<1x128xf32, #tpu.memory_space<vmem>>, vector<1x128xf32>
    %cst = arith.constant 0.000000e+00 : f32
    %3 = vector.broadcast %cst : f32 to vector<1x128xf32>
    %4 = vector.extract_strided_slice %0 {offsets = [0, 0], sizes = [31, 128], strides = [1, 1]} : vector<32x128xf32> to vector<31x128xf32>
    %5 = tpu.concatenate %3, %4 in 0 : vector<1x128xf32>, vector<31x128xf32> -> vector<32x128xf32>
    %cst_5 = arith.constant 0.000000e+00 : f32
    %6 = vector.broadcast %cst_5 : f32 to vector<1x128xf32>
    %7 = vector.extract_strided_slice %0 {offsets = [1, 0], sizes = [31, 128], strides = [1, 1]} : vector<32x128xf32> to vector<31x128xf32>
    %8 = tpu.concatenate %7, %6 in 0 : vector<31x128xf32>, vector<1x128xf32> -> vector<32x128xf32>
    %9 = tpu.concatenate %5, %0, %8 in 1 : vector<32x128xf32>, vector<32x128xf32>, vector<32x128xf32> -> vector<32x384xf32>
    %10 = arith.truncf %9 : vector<32x384xf32> to vector<32x384xbf16>
    %cst_6 = arith.constant dense<0.000000e+00> : vector<32x128xf32>
    %11 = tpu.matmul %10, %1, %cst_6 {dimension_numbers = #tpu.dot_dimension_numbers<[1], [0], [0], [1], [0, 0, 1, 1], [], []>} : vector<32x384xbf16>, vector<384x128xbf16>, vector<32x128xf32> -> vector<32x128xf32>
    %12 = vector.broadcast %2 : vector<1x128xf32> to vector<32x128xf32>
    %13 = arith.addf %11, %12 : vector<32x128xf32>
    %cst_7 = arith.constant 0.000000e+00 : f32
    %14 = vector.broadcast %cst_7 : f32 to vector<32x128xf32>
    %15 = arith.maximumf %13, %14 : vector<32x128xf32>
    %c0_8 = arith.constant 0 : index
    %c0_9 = arith.constant 0 : index
    %16 = vector.load %arg4[%c0_8, %c0_9] : memref<384x128xbf16, #tpu.memory_space<vmem>>, vector<384x128xbf16>
    %c0_10 = arith.constant 0 : index
    %c0_11 = arith.constant 0 : index
    %17 = vector.load %arg5[%c0_10, %c0_11] : memref<1x128xf32, #tpu.memory_space<vmem>>, vector<1x128xf32>
    %cst_12 = arith.constant 0.000000e+00 : f32
    %18 = vector.broadcast %cst_12 : f32 to vector<1x128xf32>
    %19 = vector.extract_strided_slice %15 {offsets = [0, 0], sizes = [31, 128], strides = [1, 1]} : vector<32x128xf32> to vector<31x128xf32>
    %20 = tpu.concatenate %18, %19 in 0 : vector<1x128xf32>, vector<31x128xf32> -> vector<32x128xf32>
    %cst_13 = arith.constant 0.000000e+00 : f32
    %21 = vector.broadcast %cst_13 : f32 to vector<1x128xf32>
    %22 = vector.extract_strided_slice %15 {offsets = [1, 0], sizes = [31, 128], strides = [1, 1]} : vector<32x128xf32> to vector<31x128xf32>
    %23 = tpu.concatenate %22, %21 in 0 : vector<31x128xf32>, vector<1x128xf32> -> vector<32x128xf32>
    %24 = tpu.concatenate %20, %15, %23 in 1 : vector<32x128xf32>, vector<32x128xf32>, vector<32x128xf32> -> vector<32x384xf32>
    %25 = arith.truncf %24 : vector<32x384xf32> to vector<32x384xbf16>
    %cst_14 = arith.constant dense<0.000000e+00> : vector<32x128xf32>
    %26 = tpu.matmul %25, %16, %cst_14 {dimension_numbers = #tpu.dot_dimension_numbers<[1], [0], [0], [1], [0, 0, 1, 1], [], []>} : vector<32x384xbf16>, vector<384x128xbf16>, vector<32x128xf32> -> vector<32x128xf32>
    %27 = vector.broadcast %17 : vector<1x128xf32> to vector<32x128xf32>
    %28 = arith.addf %26, %27 : vector<32x128xf32>
    %c0_15 = arith.constant 0 : index
    %c0_16 = arith.constant 0 : index
    %29 = vector.load %arg6[%c0_15, %c0_16] : memref<32x128xf32, #tpu.memory_space<vmem>>, vector<32x128xf32>
    tpu.vector_store %arg6[%c0_15, %c0_16], %28 {strides = array<i32>} : memref<32x128xf32, #tpu.memory_space<vmem>>, vector<32x128xf32>,
    return
  }
  func.func @transform_0(%arg0: i32) -> (i32, i32) {
    %c0_i32 = arith.constant 0 : i32
    %c0_i32_0 = arith.constant 0 : i32
    return %arg0, %c0_i32 : i32, i32
  }
  func.func @transform_1(%arg0: i32) -> (i32, i32) {
    %c0_i32 = arith.constant 0 : i32
    %c0_i32_0 = arith.constant 0 : i32
    %c0_i32_1 = arith.constant 0 : i32
    return %c0_i32, %c0_i32_0 : i32, i32
  }
  func.func @transform_2(%arg0: i32) -> (i32, i32) {
    %c0_i32 = arith.constant 0 : i32
    %c0_i32_0 = arith.constant 0 : i32
    %c0_i32_1 = arith.constant 0 : i32
    return %c0_i32, %c0_i32_0 : i32, i32
  }
  func.func @transform_3(%arg0: i32) -> (i32, i32) {
    %c0_i32 = arith.constant 0 : i32
    %c0_i32_0 = arith.constant 0 : i32
    %c0_i32_1 = arith.constant 0 : i32
    return %c0_i32, %c0_i32_0 : i32, i32
  }
  func.func @transform_4(%arg0: i32) -> (i32, i32) {
    %c0_i32 = arith.constant 0 : i32
    %c0_i32_0 = arith.constant 0 : i32
    %c0_i32_1 = arith.constant 0 : i32
    return %c0_i32, %c0_i32_0 : i32, i32
  }
  func.func @transform_5(%arg0: i32) -> (i32, i32) {
    %c0_i32 = arith.constant 0 : i32
    %c0_i32_0 = arith.constant 0 : i32
    return %arg0, %c0_i32 : i32, i32
  }
}

</mosaic_0001>

<bundles_post_ra>
// kernel: _lambda_.8
= control target key start
LH: loop header
LB: loop body
LE: loop exit
PB: predicated region body
PF: predicated region fallthrough
CT: control target
= control target key end

     0   :  { %v778_v0 = vmov 0.0   ;;  %vm779_vm0 = vmmov 0   ;;  %v20_v43 = vlaneseq  ;;  %vm476_vm14 = vcmask 7168   ;;  %s1009_s1 = inlined_call_operand.vmem [shape: f32[2,128,128], index: 1, kind: input, shape index: {}]   ;;  %s1010_s0 = inlined_call_operand.vmem [shape: f32[16,128], index: 0, kind: input, shape index: {}]   ;;  %s1011_s2 = inlined_call_operand.vmem [shape: f32[2,1,128], index: 2, kind: input, shape index: {}]   ;;  %s1012_s5 = inlined_call_operand.vmem [shape: f32[1,256], index: 5, kind: output, shape index: {2}]   ;;  %s1013_s3 = inlined_call_operand.vmem [shape: f32[16,128], index: 3, kind: output, shape index: {0}]   ;;  %s1014_s4 = inlined_call_operand.vmem [shape: f32[1,2], index: 4, kind: output, shape index: {1}]  }
   0x1   :  { %596 = vmatprep.subr.bf16.mxu0 %v778_v0  ;;  %v22_v1 = vld [vmem:[%s1009_s1] sm:$0xff]  ;;  %v23_v2 = vld [vmem:[%s1009_s1 + $0x8] sm:$0xff]  ;;  %v24_v3 = vld [vmem:[%s1009_s1 + $0x10] sm:$0xff]  ;;  %612 = vmatprep.mubr.msk.bf16.mxu0 %vm779_vm0, %v778_v0  ;;  %vm478_vm15 = vcmask 8192  }
   0x2   :  { %v46_v4 = vpack.c.bf16 %v23_v2, %v22_v1  ;;  %v25_v5 = vld [vmem:[%s1009_s1 + $0x18] sm:$0xff]  ;;  %v26_v7 = vld [vmem:[%s1009_s1 + $0x20] sm:$0xff]  ;;  %v27_v8 = vld [vmem:[%s1009_s1 + $0x28] sm:$0xff]  ;;  %v891_v44 = vand.u32 127, %v20_v43  ;;  %vm500_vm13 = vcmp.lt.s32.totalorder %v20_v43, 256 }
   0x3   :  { %v47_v6 = vpack.c.bf16 %v25_v5, %v24_v3  ;;  %v837_v9 = vld [vmem:[%s1010_s0] sm:$0xff]  ;;  %v48_v11 = vpack.c.bf16 %v27_v8, %v26_v7  ;;  %v844_v12 = vld [vmem:[%s1010_s0 + $0x8] sm:$0xff]  ;;  %v28_v14 = vld [vmem:[%s1009_s1 + $0x30] sm:$0xff] }
   0x4   :  { %597 = vmatpush3.bf16.xpose.msra.mxu0 %v46_v4  ;;  %707 = vmatprep.subr.bf16.mxu1 %v46_v4  ;;  %v39_v10 = vmul.f32 %v837_v9, %v837_v9  ;;  %v40_v13 = vmul.f32 %v844_v12, %v844_v12  ;;  %v29_v15 = vld [vmem:[%s1009_s1 + $0x38] sm:$0xff]  ;;  %v30_v17 = vld [vmem:[%s1009_s1 + $0x40] sm:$0xff]  ;;  %v31_v18 = vld [vmem:[%s1009_s1 + $0x48] sm:$0xff]  ;;  %v45_v29 = vpack.c.bf16 %v844_v12, %v837_v9 }
   0x5   :  { %598 = vmatprep.subr.bf16.mxu0 %v778_v0  ;;  %709 = vmatpush3.bf16.msra.mxu1 %v46_v4  ;;  %v49_v16 = vpack.c.bf16 %v29_v15, %v28_v14  ;;  %v50_v19 = vpack.c.bf16 %v31_v18, %v30_v17  ;;  %v32_v20 = vld [vmem:[%s1009_s1 + $0x50] sm:$0xff]  ;;  %v33_v21 = vld [vmem:[%s1009_s1 + $0x58] sm:$0xff]  ;;  %v34_v23 = vld [vmem:[%s1009_s1 + $0x60] sm:$0xff] }
   0x6   :  { %711 = vmatprep.subr.bf16.mxu1 %v47_v6  ;;  %41 = vadd.xlane.f32.xlu0 %v39_v10  ;;  %v51_v22 = vpack.c.bf16 %v33_v21, %v32_v20  ;;  %v35_v24 = vld [vmem:[%s1009_s1 + $0x68] sm:$0xff]  ;;  %v36_v26 = vld [vmem:[%s1009_s1 + $0x70] sm:$0xff]  ;;  %v37_v27 = vld [vmem:[%s1009_s1 + $0x78] sm:$0xff] }
   0x7   :  { %v52_v25 = vpack.c.bf16 %v35_v24, %v34_v23  ;;  %v53_v28 = vpack.c.bf16 %v37_v27, %v36_v26  ;;  %v515_v36 = vld [vmem:[%s1011_s2] ss:$0 sm:$0xff]  ;;  %v521_v62 = vld [vmem:[%s1009_s1 + $0x88] sm:$0xff]  ;;  %v522_v63 = vld [vmem:[%s1009_s1 + $0x90] sm:$0xff] }
   0x8   :  { %v520_v61 = vld [vmem:[%s1009_s1 + $0x80] sm:$0xff]  ;;  %v523_v2 = vld [vmem:[%s1009_s1 + $0x98] sm:$0xff]  ;;  %v525_v5 = vld [vmem:[%s1009_s1 + $0xa8] sm:$0xff] }
   0x9   :  { %713 = vmatpush3.bf16.msra.mxu1 %v47_v6  ;;  %v272_v1 = vpack.c.bf16 %v521_v62, %v520_v61  ;;  %v273_v3 = vpack.c.bf16 %v523_v2, %v522_v63  ;;  %v524_v4 = vld [vmem:[%s1009_s1 + $0xa0] sm:$0xff]  ;;  %v526_v7 = vld [vmem:[%s1009_s1 + $0xb0] sm:$0xff]  ;;  %v527_v8 = vld [vmem:[%s1009_s1 + $0xb8] sm:$0xff] }
   0xa   :  { %715 = vmatprep.subr.bf16.mxu1 %v48_v11  ;;  %43 = vadd.xlane.f32.xlu0 %v40_v13  ;;  %v275_v10 = vpack.c.bf16 %v527_v8, %v526_v7  ;;  %v529_v13 = vld [vmem:[%s1009_s1 + $0xc8] sm:$0xff]  ;;  %v530_v15 = vld [vmem:[%s1009_s1 + $0xd0] sm:$0xff]  ;;  %v532_v18 = vld [vmem:[%s1009_s1 + $0xe0] sm:$0xff] }
   0xb   :  { %v534_v21 = vld [vmem:[%s1009_s1 + $0xf0] sm:$0xff] }
   0xc   :  { %599 = vmatpush3.bf16.xpose.msra.mxu0 %v47_v6  ;;  %v274_v6 = vpack.c.bf16 %v525_v5, %v524_v4 }
   0xd   :  { %600 = vmatprep.subr.bf16.mxu0 %v778_v0  ;;  %717 = vmatpush3.bf16.msra.mxu1 %v48_v11 }
   0xe   :  { %719 = vmatprep.subr.bf16.mxu1 %v49_v16 }
  0x11   :  { %721 = vmatpush3.bf16.msra.mxu1 %v49_v16 }
  0x12   :  { %723 = vmatprep.subr.bf16.mxu1 %v50_v19 }
  0x14   :  { %601 = vmatpush3.bf16.xpose.msra.mxu0 %v48_v11  ;;  %v528_v11 = vld [vmem:[%s1009_s1 + $0xc0] sm:$0xff] }
  0x15   :  { %602 = vmatprep.subr.bf16.mxu0 %v778_v0  ;;  %725 = vmatpush3.bf16.msra.mxu1 %v50_v19  ;;  %v276_v14 = vpack.c.bf16 %v529_v13, %v528_v11 }
  0x16   :  { %727 = vmatprep.subr.bf16.mxu1 %v51_v22 }
  0x19   :  { %729 = vmatpush3.bf16.msra.mxu1 %v51_v22 }
  0x1a   :  { %731 = vmatprep.subr.bf16.mxu1 %v52_v25 }
  0x1c   :  { %603 = vmatpush3.bf16.xpose.msra.mxu0 %v49_v16  ;;  %v531_v16 = vld [vmem:[%s1009_s1 + $0xd8] sm:$0xff] }
  0x1d   :  { %604 = vmatprep.subr.bf16.mxu0 %v778_v0  ;;  %733 = vmatpush3.bf16.msra.mxu1 %v52_v25  ;;  %v277_v17 = vpack.c.bf16 %v531_v16, %v530_v15 }
  0x1e   :  { %735 = vmatprep.subr.bf16.mxu1 %v53_v28 }
  0x21   :  { %737 = vmatpush3.bf16.msra.mxu1 %v53_v28 }
  0x22   :  { %651 = vmatprep.subr.bf16.mxu1 %v778_v0 }
  0x24   :  { %605 = vmatpush3.bf16.xpose.msra.mxu0 %v50_v19  ;;  %v533_v19 = vld [vmem:[%s1009_s1 + $0xe8] sm:$0xff] }
  0x25   :  { %606 = vmatprep.subr.bf16.mxu0 %v778_v0  ;;  %v278_v20 = vpack.c.bf16 %v533_v19, %v532_v18 }
  0x2c   :  { %607 = vmatpush3.bf16.xpose.msra.mxu0 %v51_v22  ;;  %v535_v22 = vld [vmem:[%s1009_s1 + $0xf8] sm:$0xff] }
  0x2d   :  { %608 = vmatprep.subr.bf16.mxu0 %v778_v0  ;;  %v279_v23 = vpack.c.bf16 %v535_v22, %v534_v21 }
  0x34   :  { %609 = vmatpush3.bf16.xpose.msra.mxu0 %v52_v25 }
  0x35   :  { %610 = vmatprep.subr.bf16.mxu0 %v778_v0 }
  0x3c   :  { %611 = vmatpush3.bf16.xpose.msra.mxu0 %v53_v28 }
  0x3d   :  { %739 = vmatprep.subr.bf16.mxu0 %v272_v1 }
  0x43   :  { %613 = vmatmul.mubr.bf16.vlgmr.msra.gmra.mrb[0].mxu0 %v45_v29 }
  0x44   :  { %741 = vmatpush3.bf16.msra.mxu0 %v272_v1 }
  0x45   :  { %743 = vmatprep.subr.bf16.mxu0 %v273_v3 }
  0x48   :  { %745 = vmatpush3.bf16.msra.mxu0 %v273_v3 }
  0x49   :  { %747 = vmatprep.subr.bf16.mxu0 %v274_v6 }
  0x4c   :  { %749 = vmatpush3.bf16.msra.mxu0 %v274_v6 }
  0x4d   :  { %751 = vmatprep.subr.bf16.mxu0 %v275_v10 }
  0x50   :  { %753 = vmatpush3.bf16.msra.mxu0 %v275_v10 }
  0x51   :  { %755 = vmatprep.subr.bf16.mxu0 %v276_v14 }
  0x54   :  { %757 = vmatpush3.bf16.msra.mxu0 %v276_v14 }
  0x55   :  { %759 = vmatprep.subr.bf16.mxu0 %v277_v17 }
  0x58   :  { %761 = vmatpush3.bf16.msra.mxu0 %v277_v17 }
  0x59   :  { %763 = vmatprep.subr.bf16.mxu0 %v278_v20 }
  0x5c   :  { %765 = vmatpush3.bf16.msra.mxu0 %v278_v20 }
  0x5d   :  { %767 = vmatprep.subr.bf16.mxu0 %v279_v23 }
  0x60   :  { %769 = vmatpush3.bf16.msra.mxu0 %v279_v23 }
  0x93   :  { %v42_v30 = vpop.xlane.xlu0 %41 }
  0x97   :  { %v44_v35 = vpop.xlane.xlu0 %43 }
 0x116   :  { %v88_v31 = vpop.f32.mrb[0].mxu0 }
 0x117   :  { %v95_v32 = vmul.f32 2.0, %v88_v31  ;;  %v614_v33 = vpop.f32.mrb[1].mxu0 }
 0x118   :  { %v91_v34 = vpop.f32.mrb[2].mxu0  ;;  %v780_v33 = vmov 1.0  }
 0x119   :  { %v97_v37 = vsub.f32 %v42_v30, %v95_v32  ;;  %v96_v38 = vmul.f32 2.0, %v91_v34  ;;  %v615_v39 = vpop.f32.mrb[3].mxu0 }
 0x11b   :  { %v98_v40 = vsub.f32 %v44_v35, %v96_v38  ;;  %v105_v41 = vadd.f32 %v515_v36, %v97_v37 }
 0x11d   :  { %107 = vmin.xlane.f32.xlu1 %v105_v41  ;;  %v106_v42 = vadd.f32 %v515_v36, %v98_v40 }
 0x121   :  { %109 = vmin.xlane.f32.xlu1 %v106_v42 }
 0x1aa   :  { %v108_v45 = vpop.xlane.xlu1 %107 }
 0x1ab   :  { %vm111_vm1 = vcmp.le.f32.partialorder %v105_v41, %v108_v45 }
 0x1ac   :  { %v113_v46 = vsel %vm111_vm1, %v891_v44, 128 }
 0x1ad   :  { %v116_v47 = vshra.s32 %v113_v46, 16  ;;  %v115_v53 = vand.u32 65535, %v113_v46 }
 0x1ae   :  { %v110_v48 = vpop.xlane.xlu1 %109 }
 0x1af   :  { %vm112_vm2 = vcmp.le.f32.partialorder %v106_v42, %v110_v48  ;;  %v118_v49 = vcvt.s32.f32 %v116_v47  ;;  %v117_v56 = vcvt.s32.f32 %v115_v53 }
 0x1b0   :  { %v114_v50 = vsel %vm112_vm2, %v891_v44, 128 }
 0x1b1   :  { %119 = vmin.xlane.f32.xlu0 %v118_v49  ;;  %v130_v51 = vshra.s32 %v114_v50, 16  ;;  %v129_v54 = vand.u32 65535, %v114_v50 }
 0x1b3   :  { %v132_v52 = vcvt.s32.f32 %v130_v51  ;;  %v131_v59 = vcvt.s32.f32 %v129_v54 }
 0x1b5   :  { %133 = vmin.xlane.f32.xlu1 %v132_v52 }
 0x23e   :  { %v120_v55 = vpop.xlane.xlu0 %119 }
 0x23f   :  { %vm121_vm3 = vcmp.eq.f32.partialorder %v118_v49, %v120_v55  ;;  %v126_v24 = vcvt.f32.s32 %v120_v55 }
 0x240   :  { %v122_v57 = vsel %vm121_vm3, %v117_v56, inf }
 0x241   :  { %123 = vmin.xlane.f32.xlu0 %v122_v57  ;;  %v127_v26 = vshll.u32 %v126_v24, 16 }
 0x242   :  { %v134_v58 = vpop.xlane.xlu1 %133 }
 0x243   :  { %vm135_vm4 = vcmp.eq.f32.partialorder %v132_v52, %v134_v58  ;;  %v140_v27 = vcvt.f32.s32 %v134_v58 }
 0x244   :  { %v136_v60 = vsel %vm135_vm4, %v131_v59, inf }
 0x245   :  { %137 = vmin.xlane.f32.xlu1 %v136_v60  ;;  %v141_v31 = vshll.u32 %v140_v27, 16 }
 0x2ce   :  { %v124_v25 = vpop.xlane.xlu0 %123 }
 0x2cf   :  { %v125_v28 = vcvt.f32.s32 %v124_v25 }
 0x2d1   :  { %v128_v29 = vadd.s32 %v127_v26, %v125_v28 }
 0x2d2   :  { %v138_v30 = vpop.xlane.xlu1 %137 }
 0x2d3   :  { %v139_v32 = vcvt.f32.s32 %v138_v30  ;;  %vm143_vm5 = vcmp.eq.s32.totalorder %v891_v44, %v128_v29 }
 0x2d4   :  { %648 = vmatprep.mubr.msk.f32.mxu1 %vm143_vm5, %v780_v33  ;;  %v516_v35 = vsel %vm143_vm5, 1.0, %v778_v0 }
 0x2d5   :  { %v142_v34 = vadd.s32 %v141_v31, %v139_v32 }
 0x2d7   :  { %vm144_vm6 = vcmp.eq.s32.totalorder %v891_v44, %v142_v34 }
 0x2d8   :  { %v517_v36 = vsel %vm144_vm6, 1.0, %v778_v0  ;;  %649 = vmatmul.mubr.msk.f32.vlgmr.msra.gmra.mrb[0].mxu1 %vm144_vm6, %v780_v33 }
 0x2d9   :  { %v949_v37 = vadd.f32 %v517_v36, %v516_v35  ;;  %652 = vmatpush3.bf16.xpose.msra.mxu1 %v272_v1  ;;  %667 = vmatprep.mubr.msk.bf16.mxu1 %vm779_vm0, %v778_v0 }
 0x2da   :  { %653 = vmatprep.subr.bf16.mxu1 %v778_v0 }
 0x2e1   :  { %654 = vmatpush3.bf16.xpose.msra.mxu1 %v273_v3 }
 0x2e2   :  { %655 = vmatprep.subr.bf16.mxu1 %v778_v0 }
 0x2e9   :  { %656 = vmatpush3.bf16.xpose.msra.mxu1 %v274_v6 }
 0x2ea   :  { %657 = vmatprep.subr.bf16.mxu1 %v778_v0 }
 0x2f1   :  { %658 = vmatpush3.bf16.xpose.msra.mxu1 %v275_v10 }
 0x2f2   :  { %659 = vmatprep.subr.bf16.mxu1 %v778_v0 }
 0x2f9   :  { %660 = vmatpush3.bf16.xpose.msra.mxu1 %v276_v14 }
 0x2fa   :  { %661 = vmatprep.subr.bf16.mxu1 %v778_v0 }
 0x301   :  { %662 = vmatpush3.bf16.xpose.msra.mxu1 %v277_v17  ;;  %v242_v17 = vrot.slane %v949_v37, 4 }
 0x302   :  { %663 = vmatprep.subr.bf16.mxu1 %v778_v0 }
 0x303   :  { %v243_v25 = vadd.f32 %v242_v17, %v949_v37 }
 0x305   :  { %v244_v31 = vrot.slane %v243_v25, 2 }
 0x307   :  { %v245_v37 = vadd.f32 %v244_v31, %v243_v25 }
 0x309   :  { %664 = vmatpush3.bf16.xpose.msra.mxu1 %v278_v20 }
 0x30a   :  { %665 = vmatprep.subr.bf16.mxu1 %v778_v0 }
 0x311   :  { %666 = vmatpush3.bf16.xpose.msra.mxu1 %v279_v23 }
 0x3ab   :  { %v960_v38 = vpop.f32.mrb[0].mxu1 }
 0x3ac   :  { %v964_v39 = vsub.f32 %v844_v12, %v960_v38  ;;  %v966_v40 = vpop.f32.mrb[1].mxu1 }
 0x3ad   :  { %v970_v41 = vsub.f32 %v837_v9, %v966_v40  ;;  %v537_v9 = vld [vmem:[%s1011_s2 + $0x1] ss:$0 sm:$0xff] }
 0x3ae   :  { %v229_v42 = vmul.f32 %v964_v39, %v964_v39 }
 0x3af   :  { %v271_v45 = vpack.c.bf16 %v964_v39, %v970_v41  ;;  %v228_v46 = vmul.f32 %v970_v41, %v970_v41 }
 0x3b0   :  { %269 = vadd.xlane.f32.xlu1 %v229_v42 }
 0x3b1   :  { %668 = vmatmul.mubr.bf16.vlgmr.msra.gmra.mrb[4].mxu1 %v271_v45  ;;  %267 = vadd.xlane.f32.xlu0 %v228_v46  ;;  %v230_v12 = vadd.f32 %v229_v42, %v228_v46  ;;  %v781_v45 = vmov 1966171168  }
 0x3b2   :  { %v484_v46 = vunpack.c.l.s4 %v781_v45 }
 0x43d   :  { %v270_v55 = vpop.xlane.xlu1 %269 }
 0x43e   :  { %v268_v50 = vpop.xlane.xlu0 %267 }
 0x484   :  { %v314_v47 = vpop.f32.mrb[4].mxu1 }
 0x485   :  { %v321_v48 = vmul.f32 2.0, %v314_v47  ;;  %v669_v49 = vpop.f32.mrb[5].mxu1 }
 0x486   :  { %v317_v51 = vpop.f32.mrb[6].mxu1 }
 0x487   :  { %v323_v52 = vsub.f32 %v268_v50, %v321_v48  ;;  %v322_v53 = vmul.f32 2.0, %v317_v51  ;;  %v670_v54 = vpop.f32.mrb[7].mxu1  ;;  %v485_v50 = vunpack.c.0.s8 %v484_v46  ;;  %v487_v51 = vshrl.u32 %v20_v43, 7 }
 0x489   :  { %v324_v56 = vsub.f32 %v270_v55, %v322_v53  ;;  %v331_v57 = vadd.f32 %v537_v9, %v323_v52  ;;  %v488_v52 = vsub.s32 %v485_v50, %v487_v51 }
 0x48b   :  { %333 = vmin.xlane.f32.xlu0 %v331_v57  ;;  %v332_v58 = vadd.f32 %v537_v9, %v324_v56 }
 0x48d   :  { %335 = vmin.xlane.f32.xlu1 %v332_v58 }
 0x518   :  { %v334_v59 = vpop.xlane.xlu0 %333 }
 0x519   :  { %vm337_vm7 = vcmp.le.f32.partialorder %v331_v57, %v334_v59 }
 0x51a   :  { %v339_v60 = vsel %vm337_vm7, %v891_v44, 128  ;;  %v336_v61 = vpop.xlane.xlu1 %335 }
 0x51b   :  { %vm338_vm8 = vcmp.le.f32.partialorder %v332_v58, %v336_v61  ;;  %v342_v62 = vshra.s32 %v339_v60, 16  ;;  %v341_v4 = vand.u32 65535, %v339_v60 }
 0x51c   :  { %v340_v63 = vsel %vm338_vm8, %v891_v44, 128 }
 0x51d   :  { %v344_v1 = vcvt.s32.f32 %v342_v62  ;;  %v356_v2 = vshra.s32 %v340_v63, 16  ;;  %v355_v5 = vand.u32 65535, %v340_v63  ;;  %v343_v7 = vcvt.s32.f32 %v341_v4 }
 0x51f   :  { %345 = vmin.xlane.f32.xlu0 %v344_v1  ;;  %v358_v3 = vcvt.s32.f32 %v356_v2  ;;  %v357_v11 = vcvt.s32.f32 %v355_v5 }
 0x521   :  { %359 = vmin.xlane.f32.xlu1 %v358_v3 }
 0x5ac   :  { %v346_v6 = vpop.xlane.xlu0 %345 }
 0x5ad   :  { %vm347_vm9 = vcmp.eq.f32.partialorder %v344_v1, %v346_v6  ;;  %v352_v14 = vcvt.f32.s32 %v346_v6 }
 0x5ae   :  { %v360_v8 = vpop.xlane.xlu1 %359  ;;  %v348_v10 = vsel %vm347_vm9, %v343_v7, inf }
 0x5af   :  { %349 = vmin.xlane.f32.xlu0 %v348_v10  ;;  %vm361_vm10 = vcmp.eq.f32.partialorder %v358_v3, %v360_v8  ;;  %v366_v15 = vcvt.f32.s32 %v360_v8  ;;  %v353_v18 = vshll.u32 %v352_v14, 16 }
 0x5b0   :  { %v362_v13 = vsel %vm361_vm10, %v357_v11, inf }
 0x5b1   :  { %363 = vmin.xlane.f32.xlu1 %v362_v13  ;;  %v367_v21 = vshll.u32 %v366_v15, 16 }
 0x5b3   :  { %231 = vadd.xlane.f32.xlu0 %v230_v12 }
 0x63c   :  { %v350_v16 = vpop.xlane.xlu0 %349 }
 0x63d   :  { %v351_v19 = vcvt.f32.s32 %v350_v16 }
 0x63e   :  { %v364_v20 = vpop.xlane.xlu1 %363 }
 0x63f   :  { %v354_v22 = vadd.s32 %v353_v18, %v351_v19  ;;  %v365_v23 = vcvt.f32.s32 %v364_v20 }
 0x640   :  { %v232_v24 = vpop.xlane.xlu0 %231 }
 0x641   :  { %v368_v26 = vadd.s32 %v367_v21, %v365_v23  ;;  %v233_v27 = vrot.slane %v232_v24, 4  ;;  %vm369_vm11 = vcmp.eq.s32.totalorder %v891_v44, %v354_v22 }
 0x642   :  { %703 = vmatprep.mubr.msk.f32.mxu0 %vm369_vm11, %v780_v33  ;;  %v538_v30 = vsel %vm369_vm11, 1.0, %v778_v0 }
 0x643   :  { %vm370_vm12 = vcmp.eq.s32.totalorder %v891_v44, %v368_v26  ;;  %v234_v28 = vadd.f32 %v233_v27, %v232_v24  ;;  %v246_v44 = vrot.slane %v245_v37, 1 }
 0x644   :  { %v539_v29 = vsel %vm370_vm12, 1.0, %v778_v0  ;;  %704 = vmatmul.mubr.msk.f32.vlgmr.msra.gmra.mrb[4].mxu0 %vm370_vm12, %v780_v33 }
 0x645   :  { %v235_v32 = vrot.slane %v234_v28, 2  ;;  %v467_v34 = vadd.f32 %v539_v29, %v538_v30  ;;  %v247_v33 = vadd.f32 %v246_v44, %v245_v37 }
 0x647   :  { %v468_v35 = vrot.slane %v467_v34, 4  ;;  %v236_v36 = vadd.f32 %v235_v32, %v234_v28 }
 0x649   :  { %v469_v42 = vadd.f32 %v468_v35, %v467_v34  ;;  %v237_v12 = vrot.slane %v236_v36, 1 }
 0x64b   :  { %v470_v47 = vrot.slane %v469_v42, 2  ;;  %v238_v48 = vadd.f32 %v237_v12, %v236_v36 }
 0x64d   :  { %v471_v49 = vadd.f32 %v470_v47, %v469_v42  ;;  %770 = vpush %v238_v48 }
 0x64f   :  { %v472_v0 = vrot.slane %v471_v49, 1 }
 0x651   :  { %v473_v9 = vadd.f32 %v472_v0, %v471_v49 }
 0x653   :  { %v482_v53 = vcombine.low %v247_v33, %v473_v9 }
 0x655   :  { %v489_v54 = vrot.slane %v482_v53, %v488_v52 }
 0x657   :  { %v496_v55 = vrot.slane %v489_v54, %v488_v52 }
 0x659   :  { %502 = vst.msk [vmem:[%s1012_s5] sm:$0x3] %vm500_vm13, %v496_v55 }
 0x67e   :  { %s771_s5 = spop %770 }
 0x717   :  { %v705_v56 = vpop.f32.mrb[4].mxu0 }
 0x718   :  { %v451_v57 = vsub.f32 %v964_v39, %v705_v56  ;;  %v453_v58 = vadd.f32 %v705_v56, %v960_v38  ;;  %v441_v59 = vpop.f32.mrb[5].mxu0 }
 0x719   :  { %v450_v60 = vsub.f32 %v970_v41, %v441_v59  ;;  %v452_v61 = vadd.f32 %v441_v59, %v966_v40  ;;  %v240_v40 = vstv %s771_s5 }
 0x71a   :  { %v455_v62 = vmul.f32 %v451_v57, %v451_v57  ;;  %475 = vst [vmem:[%s1013_s3 + $0x8] sm:$0xff] %v453_v58 }
 0x71b   :  { %v454_v43 = vmul.f32 %v450_v60, %v450_v60  ;;  %474 = vst [vmem:[%s1013_s3] sm:$0xff] %v452_v61 }
 0x71d   :  { %v456_v63 = vadd.f32 %v455_v62, %v454_v43 }
 0x71f   :  { %457 = vadd.xlane.f32.xlu1 %v456_v63 }
 0x7ac   :  { %v458_v39 = vpop.xlane.xlu1 %457 }
 0x7ad   :  { %v459_v1 = vrot.slane %v458_v39, 4 }
 0x7af   :  { %v460_v38 = vadd.f32 %v459_v1, %v458_v39 }
 0x7b1   :  { %v461_v2 = vrot.slane %v460_v38, 2 }
 0x7b3   :  { %v462_v3 = vadd.f32 %v461_v2, %v460_v38 }
 0x7b5   :  { %v463_v41 = vrot.slane %v462_v3, 1 }
 0x7b7   :  { %v464_v4 = vadd.f32 %v463_v41, %v462_v3 }
 0x7b9   :  { %772 = vpush %v464_v4 }
 0x7ea   :  { %s773_s16 = spop %772 }
 0x7eb   :  { %v466_v5 = vstv %s773_s16 }
 0x7ec   :  { %v477_v6 = vsel %vm476_vm14, %v240_v40, %v466_v5 }
 0x7ed   :  { %479 = vst.msk [vmem:[%s1014_s4] sm:$0x1] %vm478_vm15, %v477_v6 }

// kernel: _lambda_.6
= control target key start
LH: loop header
LB: loop body
LE: loop exit
PB: predicated region body
PF: predicated region fallthrough
CT: control target
= control target key end

     0   :  { %s3732_s0 = inlined_call_operand.vmem [shape: f32[32,256], index: 0, kind: input, shape index: {}]   ;;  %s3733_s1 = inlined_call_operand.hbm [shape: bf16[384,128], index: 1, kind: input, shape index: {}]   ;;  %s3734_s2 = inlined_call_operand.vmem [shape: f32[1,128], index: 2, kind: input, shape index: {}]   ;;  %s3735_s3 = inlined_call_operand.vmem [shape: bf16[512,128], index: 3, kind: input, shape index: {}]   ;;  %s3736_s4 = inlined_call_operand.vmem [shape: f32[1,128], index: 4, kind: input, shape index: {}]   ;;  %s3737_s5 = inlined_call_operand.hbm [shape: bf16[384,128], index: 5, kind: input, shape index: {}]   ;;  %s3738_s6 = inlined_call_operand.vmem [shape: f32[1,128], index: 6, kind: input, shape index: {}]   ;;  %s3739_s7 = inlined_call_operand.vmem [shape: bf16[128,128], index: 7, kind: input, shape index: {}]   ;;  %s3740_s8 = inlined_call_operand.vmem [shape: f32[1,128], index: 8, kind: input, shape index: {}]   ;;  %s3741_s9 = inlined_call_operand.hbm [shape: bf16[384,128], index: 9, kind: input, shape index: {}]   ;;  %s3742_s10 = inlined_call_operand.hbm [shape: f32[1,128], index: 10, kind: input, shape index: {}]   ;;  %s3743_s11 = inlined_call_operand.hbm [shape: bf16[128,128], index: 11, kind: input, shape index: {}]   ;;  %s3744_s12 = inlined_call_operand.hbm [shape: f32[1,128], index: 12, kind: input, shape index: {}]   ;;  %s3745_s13 = inlined_call_operand.vmem [shape: f32[32,128], index: 13, kind: output, shape index: {}]  }
   0x1   :  { %3750 = sst [smem:[#allocation16_spill]] %s3738_s6 }
   0x2   :  { %3751 = sst [smem:[#allocation17_spill]] %s3740_s8 }
   0x3   :  { %3752 = sst [smem:[#allocation18_spill]] %s3745_s13 }
   0x4   :  { %18 = vsyncpa [#allocation3], 0 }
   0x5   :  { %19 = vsyncpa [#allocation5], 0 }
   0x6   :  { %20 = vsyncpa [#allocation8], 0 }
   0x7   :  { %21 = vsyncpa [#allocation11], 0  ;;  %s3196_s25 = smov 0  }
   0x8 LB: > { %s3746_s26 = sadd.s32 4294967295, %s3113_s25   ;;  %p2246_p0 = scmp.ge.s32.totalorder %s3113_s25, 1  ;;  %s3113_s25 = sphi %s3196_s25, %s27_s25  }
   0x9   : > { %p336_p1 = scmp.lt.s32.totalorder %s3113_s25, 3  ;;  %p3206_p2 = scmp.eq.s32.totalorder %s3746_s26, 0 }
   0xa   : > { %s3115_s29 = smov [#allocation4]   ;;  %s3116_s14 = smov [#allocation7]  }
   0xb   : > { %s3753_s27 = scalar_select %p3206_p2, 1, 0 }
   0xc   : > { %p3210_p3 = pnand %p2246_p0, %p336_p1  ;;  %s370_s30 = sshll.u32 %s3115_s29, 4  ;;  %s3214_s30 = int_to_ptr.vmem [resolvable:$true] %s370_s30 }
   0xd   : > { %s406_s15 = sshll.u32 %s3116_s14, 4  ;;  %s3117_s17 = smov [#allocation2]   ;;  %s3218_s15 = int_to_ptr.vmem [resolvable:$true] %s406_s15 }
   0xe   : > { %s3754_s28 = scalar_select %p3210_p3, 1, 0 }
   0xf   : > { %p2753_p4 = pneg %p3210_p3  ;;  %s348_s18 = sshll.u32 %s3117_s17, 4  ;;  %s3226_s18 = int_to_ptr.vmem [resolvable:$true] %s348_s18 }
  0x10   : > { %s3118_s19 = smov [#allocation6]   ;;  %s2923_s23 = scalar_lea.hbm %s3737_s5, 3072 }
  0x11   : > { %p3222_p5 = pnand %p3206_p2, %p2753_p4  ;;  %s3228_s20 = sshll.u32 %s3118_s19, 4  ;;  %s393_s20 = int_to_ptr.vmem [resolvable:$true] %s3228_s20 }
  0x12   : > { %p2924_p6 = scmp.ne.s32.totalorder %s3737_s5, %s2923_s23  ;;  %p2930_p10 = scmp.lt.u32.totalorder %s2923_s23, %s3737_s5 }
  0x13   : > { %p3238_p7 = pneg %p3222_p5 }
  0x15   : > { %p2926_p8 = pnand %p3238_p7, %p2924_p6 }
  0x17   : > { %p2927_p9 = pneg %p2926_p8 }
  0x19   : > { %p2932_p11 = pnand %p2930_p10, %p2927_p9 }
  0x1b   : > { %2935 = shalt.err (!%p2932_p11)
}
  0x1c   : > { %s2936_s21 = scalar_lea.vmem %s3214_s30, 3072  ;;  %p2944_p1 = scmp.lt.s32.totalorder %s3214_s30, %s3214_s30 }
  0x1d   : > { %p2937_p12 = scmp.ne.s32.totalorder %s3214_s30, %s2936_s21  ;;  %p2945_p4 = scmp.lt.s32.totalorder %s2936_s21, %s2936_s21 }
  0x1f   : > { %p2939_p13 = pnand %p2937_p12, %p3238_p7  ;;  %p2946_p6 = por %p2945_p4, %p2944_p1 }
  0x21   : > { %p2940_p0 = pneg %p2939_p13 }
  0x23   : > { %p2947_p8 = pnand %p2946_p6, %p2940_p0 }
  0x25   : > { %2950 = shalt.err (!%p2947_p8)
}
  0x26   : > { %s3119_s22 = smov 64   ;;  %s3120_s23 = smov 4  }
  0x27   : > { %2759 = dma.hbm_to_vmem [thread:$0]  (!%p3222_p5), %s3737_s5, 3072, %s3214_s30, [#allocation5], %s3119_s22, %s3119_s22, %s3120_s23  }
  0x28   : > { %s2951_s21 = scalar_lea.hbm %s3742_s10, 16 }
  0x29   : > { %p2952_p9 = scmp.ne.s32.totalorder %s3742_s10, %s2951_s21  ;;  %p2958_p12 = scmp.lt.u32.totalorder %s2951_s21, %s3742_s10 }
  0x2b   : > { %p2954_p10 = pnand %p2952_p9, %p3238_p7 }
  0x2d   : > { %p2955_p11 = pneg %p2954_p10 }
  0x2f   : > { %p2960_p13 = pnand %p2958_p12, %p2955_p11 }
  0x31   : > { %2963 = shalt.err (!%p2960_p13)
}
  0x32   : > { %s2964_s30 = scalar_lea.vmem %s3218_s15, 16  ;;  %s2971_s13 = scalar_lea.vmem %s3218_s15, 32 }
  0x33   : > { %p2965_p0 = scmp.ne.s32.totalorder %s3218_s15, %s2964_s30  ;;  %p2972_p6 = scmp.lt.s32.totalorder %s3218_s15, %s3218_s15 }
  0x34   : > { %p2973_p8 = scmp.lt.s32.totalorder %s2971_s13, %s2964_s30 }
  0x35   : > { %p2967_p1 = pnand %p2965_p0, %p3238_p7 }
  0x36   : > { %p2974_p9 = por %p2973_p8, %p2972_p6 }
  0x37   : > { %p2968_p4 = pneg %p2967_p1 }
  0x39   : > { %p2975_p10 = pnand %p2974_p9, %p2968_p4 }
  0x3b   : > { %2978 = shalt.err (!%p2975_p10)
}
  0x3c   : > { %2765 = dma.hbm_to_vmem [thread:$0]  (!%p3222_p5), %s3742_s10, 16, %s3218_s15, [#allocation8]  }
  0x3d   : > { %s2979_s29 = scalar_lea.hbm %s3733_s1, 3072 }
  0x3e   : > { %p2980_p11 = scmp.ne.s32.totalorder %s3733_s1, %s2979_s29  ;;  %p2986_p0 = scmp.lt.u32.totalorder %s2979_s29, %s3733_s1 }
  0x40   : > { %p2982_p12 = pnand %p2980_p11, %p3238_p7 }
  0x42   : > { %p2983_p13 = pneg %p2982_p12 }
  0x44   : > { %p2988_p1 = pnand %p2986_p0, %p2983_p13 }
  0x46   : > { %2991 = shalt.err (!%p2988_p1)
}
  0x47   : > { %s2992_s15 = scalar_lea.vmem %s3226_s18, 3072  ;;  %p3000_p9 = scmp.lt.s32.totalorder %s3226_s18, %s3226_s18 }
  0x48   : > { %p2993_p4 = scmp.ne.s32.totalorder %s3226_s18, %s2992_s15  ;;  %p3001_p10 = scmp.lt.s32.totalorder %s2992_s15, %s2992_s15 }
  0x4a   : > { %p2995_p6 = pnand %p2993_p4, %p3238_p7  ;;  %p3002_p11 = por %p3001_p10, %p3000_p9 }
  0x4c   : > { %p2996_p8 = pneg %p2995_p6 }
  0x4e   : > { %p3003_p12 = pnand %p3002_p11, %p2996_p8 }
  0x50   : > { %3006 = shalt.err (!%p3003_p12)
}
  0x51   : > { %2756 = dma.hbm_to_vmem [thread:$0]  (!%p3222_p5), %s3733_s1, 3072, %s3226_s18, [#allocation3], %s3119_s22, %s3119_s22, %s3120_s23  }
  0x52   : > { %s3007_s24 = scalar_lea.hbm %s3741_s9, 3072 }
  0x53   : > { %p3008_p13 = scmp.ne.s32.totalorder %s3741_s9, %s3007_s24  ;;  %p3014_p4 = scmp.lt.u32.totalorder %s3007_s24, %s3741_s9 }
  0x55   : > { %p3010_p0 = pnand %p3008_p13, %p3238_p7 }
  0x57   : > { %p3011_p1 = pneg %p3010_p0 }
  0x59   : > { %p3016_p6 = pnand %p3014_p4, %p3011_p1 }
  0x5b   : > { %3019 = shalt.err (!%p3016_p6)
}
  0x5c   : > { %s3020_s30 = scalar_lea.vmem %s393_s20, 3072  ;;  %p3028_p11 = scmp.lt.s32.totalorder %s393_s20, %s393_s20 }
  0x5d   : > { %p3021_p8 = scmp.ne.s32.totalorder %s393_s20, %s3020_s30  ;;  %p3029_p12 = scmp.lt.s32.totalorder %s3020_s30, %s3020_s30 }
  0x5f   : > { %p3023_p9 = pnand %p3021_p8, %p3238_p7  ;;  %p3030_p2 = por %p3029_p12, %p3028_p11 }
  0x61   : > { %p3024_p10 = pneg %p3023_p9 }
  0x63   : > { %p3031_p3 = pnand %p3030_p2, %p3024_p10 }
  0x65   : > { %3034 = shalt.err (!%p3031_p3)
}
  0x66   : > { %2762 = dma.hbm_to_vmem [thread:$0]  (!%p3222_p5), %s3741_s9, 3072, %s393_s20, [#allocation5], %s3119_s22, %s3119_s22, %s3120_s23  }
  0x67   : > { %s3121_s13 = smov [#allocation9]   ;;  %s3122_s8 = smov [#allocation10]  }
  0x68   : > { %s416_s6 = sshll.u32 %s3121_s13, 4  ;;  %s430_s26 = sshll.u32 %s3122_s8, 4  ;;  %s417_s6 = int_to_ptr.vmem [resolvable:$true] %s416_s6  ;;  %s431_s26 = int_to_ptr.vmem [resolvable:$true] %s430_s26 }
  0x69   : > { %s3035_s17 = scalar_lea.hbm %s3743_s11, 1024 }
  0x6a   : > { %p3036_p2 = scmp.ne.s32.totalorder %s3743_s11, %s3035_s17  ;;  %p3042_p0 = scmp.lt.u32.totalorder %s3035_s17, %s3743_s11 }
  0x6c   : > { %p3038_p3 = pnand %p3036_p2, %p3238_p7 }
  0x6e   : > { %p3039_p13 = pneg %p3038_p3 }
  0x70   : > { %p3044_p1 = pnand %p3042_p0, %p3039_p13 }
  0x72   : > { %3047 = shalt.err (!%p3044_p1)
}
  0x73   : > { %s3048_s20 = scalar_lea.vmem %s417_s6, 1024  ;;  %p3056_p9 = scmp.lt.s32.totalorder %s417_s6, %s417_s6 }
  0x74   : > { %p3049_p4 = scmp.ne.s32.totalorder %s417_s6, %s3048_s20  ;;  %p3057_p10 = scmp.lt.s32.totalorder %s3048_s20, %s3048_s20 }
  0x76   : > { %p3051_p6 = pnand %p3049_p4, %p3238_p7  ;;  %p3058_p11 = por %p3057_p10, %p3056_p9 }
  0x78   : > { %p3052_p8 = pneg %p3051_p6 }
  0x7a   : > { %p3059_p12 = pnand %p3058_p11, %p3052_p8 }
  0x7c   : > { %3062 = shalt.err (!%p3059_p12)
}
  0x7d   : > { %2768 = dma.hbm_to_vmem [thread:$0]  (!%p3222_p5), %s3743_s11, 1024, %s417_s6, [#allocation8], %s3119_s22, %s3119_s22, %s3120_s23  }
  0x7e   : > { %s3063_s29 = scalar_lea.hbm %s3744_s12, 16 }
  0x7f   : > { %p3064_p2 = scmp.ne.s32.totalorder %s3744_s12, %s3063_s29  ;;  %p3070_p0 = scmp.lt.u32.totalorder %s3063_s29, %s3744_s12 }
  0x81   : > { %p3066_p3 = pnand %p3064_p2, %p3238_p7 }
  0x83   : > { %p3067_p13 = pneg %p3066_p3 }
  0x85   : > { %p3072_p1 = pnand %p3070_p0, %p3067_p13 }
  0x87   : > { %3075 = shalt.err (!%p3072_p1)
}
  0x88   : > { %s3076_s18 = scalar_lea.vmem %s431_s26, 16  ;;  %s3083_s22 = scalar_lea.vmem %s431_s26, 32 }
  0x89   : > { %p3077_p4 = scmp.ne.s32.totalorder %s431_s26, %s3076_s18  ;;  %p3084_p9 = scmp.lt.s32.totalorder %s431_s26, %s431_s26 }
  0x8a   : > { %p3085_p10 = scmp.lt.s32.totalorder %s3083_s22, %s3076_s18 }
  0x8b   : > { %p3079_p6 = pnand %p3077_p4, %p3238_p7 }
  0x8c   : > { %p3086_p11 = por %p3085_p10, %p3084_p9 }
  0x8d   : > { %p3080_p8 = pneg %p3079_p6 }
  0x8f   : > { %p3087_p12 = pnand %p3086_p11, %p3080_p8 }
  0x91   : > { %3090 = shalt.err (!%p3087_p12)
}
  0x92   : > { %2771 = dma.hbm_to_vmem [thread:$0]  (!%p3222_p5), %s3744_s12, 16, %s431_s26, [#allocation11]  }
  0x93   : > { %p3757_p2 = scmp.ne.s32.totalorder %s3754_s28, 0 }
  0x94   : > { %p3758_p3 = scmp.ne.s32.totalorder (!%p3757_p2), %s3753_s27, 0 }
  0x95   : > { %453 = sbr.rel (%p3757_p2) target bundleno = 1579 (0x62b), region = 72 }
  0x9c   : > { %3096 = dma.done.wait (%p3758_p3), [#allocation3], 3072  }
  0x9d   : > { %3098 = vsyncadd (%p3758_p3), [#allocation3], 4294964224 }
  0x9e   : > { %3100 = dma.done.wait (%p3758_p3), [#allocation5], 6144  }
  0x9f   : > { %3102 = vsyncadd (%p3758_p3), [#allocation5], 4294961152 }
  0xa0   : > { %3104 = dma.done.wait (%p3758_p3), [#allocation8], 1040  }
  0xa1   : > { %3106 = vsyncadd (%p3758_p3), [#allocation8], 4294966256 }
  0xa2   : > { %3108 = dma.done.wait (%p3758_p3), [#allocation11], 16  }
  0xa3   : > { %3110 = vsyncadd (%p3758_p3), [#allocation11], 4294967280  ;;  %v3123_v0 = vmov 0.0   ;;  %vm3124_vm0 = vmmov 0   ;;  %v3394_v1 = vld [vmem:[#allocation2 + $0x40] sm:$0xff]   ;;  %v3402_v4 = vld [vmem:[#allocation2 + $0x48] sm:$0xff]  }
  0xa4   : > { %2609 = vmatprep.subr.bf16.mxu1 %v3123_v0  ;;  %2625 = vmatprep.mubr.msk.bf16.mxu1 %vm3124_vm0, %v3123_v0  ;;  %v3396_v2 = vld [vmem:[#allocation2] sm:$0xff]   ;;  %v3405_v5 = vld [vmem:[#allocation2 + $0x8] sm:$0xff]   ;;  %v3411_v7 = vld [vmem:[#allocation2 + $0x50] sm:$0xff]   ;;  %s3759_s27 = sadd.s32 4294967295, %s3113_s25   ;;  %vm587_vm1 = vcmask 1040384   ;;  %vm3125_vm3 = vmmov 1  }
  0xa5   : > { %2423 = vmatprep.subr.bf16.mxu0 %v3394_v1  ;;  %v3399_v3 = vld [vmem:[#allocation2 + $0x80] sm:$0xff]   ;;  %v3409_v6 = vld [vmem:[#allocation2 + $0x88] sm:$0xff]   ;;  %s2261_s28 = sshll.u32 %s3759_s27, 1  ;;  %v3416_v8 = vld [vmem:[#allocation2 + $0x10] sm:$0xff]   ;;  %vm833_vm5 = vcmask 1046528   ;;  %vm1777_vm7 = vcmask 1042432  }
  0xa6   : > { %2424 = vmatpush3.bf16.msra.mxu0 %v3396_v2  ;;  %2610 = vmatpush3.bf16.msra.mxu1 %v3399_v3  ;;  %v3420_v9 = vld [vmem:[#allocation2 + $0x90] sm:$0xff]   ;;  %v3423_v10 = vld [vmem:[#allocation2 + $0x58] sm:$0xff]   ;;  %p519_p5 = scmp.lt.s32.totalorder %s2261_s28, 3  ;;  %v3432_v13 = vld [vmem:[#allocation2 + $0x60] sm:$0xff]   ;;  %vm1784_vm9 = vcmask 1044480   ;;  %s3768_s24 = sld [smem:[#allocation18_spill]] }
  0xa7   : > { %2425 = vmatprep.subr.bf16.mxu0 %v3402_v4  ;;  %2611 = vmatprep.subr.bf16.mxu1 %v3123_v0  ;;  %v3425_v11 = vld [vmem:[#allocation2 + $0x18] sm:$0xff]   ;;  %v3437_v14 = vld [vmem:[#allocation2 + $0x20] sm:$0xff]   ;;  %v3444_v16 = vld [vmem:[#allocation2 + $0x68] sm:$0xff]  }
  0xa8   : > { %v3428_v12 = vld [vmem:[#allocation2 + $0x98] sm:$0xff]   ;;  %s3770_s28 = smov (!%p519_p5, %s2261_s28), 3  ;;  %v3440_v15 = vld [vmem:[#allocation2 + $0xa0] sm:$0xff]   ;;  %vm3449_vm2 = vmneg %vm587_vm1 }
  0xa9   : > { %s2422_s16 = sshll.u32 %s3770_s28, 4  ;;  %v3453_v18 = vld [vmem:[#allocation2 + $0x28] sm:$0xff]   ;;  %v2821_v20 = vld [vmem:[#allocation2 + $0x70] sm:$0xff]   ;;  %vm3472_vm4 = vmpackc.low %vm3125_vm3, %vm3449_vm2  ;;  %s2265_s15 = sshll.u32 %s3770_s28, 3 }
  0xaa   : > { %2426 = vmatpush3.bf16.msra.mxu0 %v3405_v5  ;;  %2612 = vmatpush3.bf16.msra.mxu1 %v3409_v6  ;;  %v3456_v19 = vld [vmem:[#allocation2 + $0xa8] sm:$0xff]   ;;  %s523_s20 = scalar_lea.vmem %s3732_s0, %s2422_s16  ;;  %v2822_v21 = vld [vmem:[#allocation2 + $0x30] sm:$0xff]   ;;  %v2824_v27 = vld [vmem:[#allocation2 + $0x78] sm:$0xff]   ;;  %s3766_s16 = sld [smem:[#allocation16_spill]] }
  0xab   : > { %2427 = vmatprep.subr.bf16.mxu0 %v3411_v7  ;;  %2613 = vmatprep.subr.bf16.mxu1 %v3123_v0  ;;  %v3465_v22 = vld [vmem:[%s523_s20] sm:$0xff]  ;;  %v3467_v23 = vld [vmem:[%s523_s20 + $0x10] sm:$0xff]  ;;  %v535_v24 = vld [vmem:[%s523_s20 + $0x18] sm:$0xff] }
  0xac   : > { %v2823_v26 = vld [vmem:[#allocation2 + $0xb0] sm:$0xff]   ;;  %v589_v28 = vrot.slane %v535_v24, 7  ;;  %v595_v29 = vpack.c.bf16 %v3467_v23, %v3465_v22  ;;  %v834_v30 = vrot.slane %v3465_v22, 1  ;;  %v2825_v31 = vld [vmem:[#allocation2 + $0x38] sm:$0xff]   ;;  %v835_v32 = vrot.slane %v3467_v23, 1  ;;  %v533_v33 = vld [vmem:[%s523_s20 + $0x8] sm:$0xff]  ;;  %s529_s29 = scalar_lea.vmem %s3768_s24, %s2265_s15 }
  0xad   : > { %v2826_v34 = vld [vmem:[#allocation2 + $0xb8] sm:$0xff]   ;;  %v588_v35 = vrot.slane %v533_v33, 7  ;;  %v596_v38 = vpack.c.bf16 %v535_v24, %v533_v33  ;;  %vm3514_vm6 = vmpackc.low %vm833_vm5, %vm3125_vm3  ;;  %v2827_v42 = vld [vmem:[%s3735_s3 + $0xc0] sm:$0xff]   ;;  %s3767_s20 = sld [smem:[#allocation17_spill]] }
  0xae   : > { %2428 = vmatpush3.bf16.msra.mxu0 %v3416_v8  ;;  %2614 = vmatpush3.bf16.msra.mxu1 %v3420_v9  ;;  %v836_v40 = vsel %vm833_vm5, %v834_v30, %v835_v32  ;;  %v2828_v43 = vld [vmem:[%s3735_s3 + $0x80] sm:$0xff]   ;;  %v2831_v46 = vld [vmem:[%s3735_s3 + $0xc8] sm:$0xff]   ;;  %v2835_v50 = vld [vmem:[%s3735_s3 + $0xd0] sm:$0xff]  }
  0xaf   : > { %2429 = vmatprep.subr.bf16.mxu0 %v3423_v10  ;;  %2615 = vmatprep.subr.bf16.mxu1 %v3123_v0  ;;  %v590_v36 = vsel %vm587_vm1, %v588_v35, %v589_v28  ;;  %v2296_v41 = vpack.c.bf16 %v835_v32, %v836_v40  ;;  %v2829_v44 = vld [vmem:[%s3735_s3 + $0x40] sm:$0xff]   ;;  %v2832_v47 = vld [vmem:[%s3735_s3 + $0x88] sm:$0xff]   ;;  %v2836_v51 = vld [vmem:[%s3735_s3 + $0x90] sm:$0xff]  }
  0xb0   : > { %779 = vmatprep.mubr.bf16.mxu0 %v595_v29  ;;  %v2293_v37 = vpack.c.bf16 %v590_v36, %v588_v35  ;;  %v2830_v45 = vld [vmem:[%s3735_s3] sm:$0xff]   ;;  %v2833_v48 = vld [vmem:[%s3735_s3 + $0x48] sm:$0xff]   ;;  %v2837_v52 = vld [vmem:[%s3735_s3 + $0x50] sm:$0xff]  }
  0xb1   : > { %v2834_v49 = vld [vmem:[%s3735_s3 + $0x8] sm:$0xff]   ;;  %v2839_v53 = vld [vmem:[%s3735_s3 + $0xd8] sm:$0xff]   ;;  %v2838_v54 = vld [vmem:[%s3735_s3 + $0x10] sm:$0xff]  }
  0xb2   : > { %2430 = vmatpush3.bf16.msra.mxu0 %v3425_v11  ;;  %2616 = vmatpush3.bf16.msra.mxu1 %v3428_v12  ;;  %v2840_v55 = vld [vmem:[%s3735_s3 + $0x98] sm:$0xff]   ;;  %v2843_v57 = vld [vmem:[%s3735_s3 + $0xe0] sm:$0xff]   ;;  %v2847_v62 = vld [vmem:[%s3735_s3 + $0xe8] sm:$0xff]  }
  0xb3   : > { %2431 = vmatprep.subr.bf16.mxu0 %v3432_v13  ;;  %2617 = vmatprep.subr.bf16.mxu1 %v3123_v0  ;;  %v2841_v56 = vld [vmem:[%s3735_s3 + $0x58] sm:$0xff]   ;;  %v2844_v59 = vld [vmem:[%s3735_s3 + $0xa0] sm:$0xff]   ;;  %v2848_v63 = vld [vmem:[%s3735_s3 + $0xa8] sm:$0xff]  }
  0xb4   : > { %v2842_v58 = vld [vmem:[%s3735_s3 + $0x18] sm:$0xff]   ;;  %v2845_v60 = vld [vmem:[%s3735_s3 + $0x60] sm:$0xff]   ;;  %vm2404_vm8 = vmneg %vm1777_vm7 }
  0xb5   : > { %v2846_v61 = vld [vmem:[%s3735_s3 + $0x20] sm:$0xff]   ;;  %v2886_v25 = vld [vmem:[%s3739_s7 + $0x18] sm:$0xff]   ;;  %vm2405_vm10 = vmpackc.low %vm3125_vm3, %vm2404_vm8 }
  0xb6   : > { %2432 = vmatpush3.bf16.msra.mxu0 %v3437_v14  ;;  %2618 = vmatpush3.bf16.msra.mxu1 %v3440_v15  ;;  %v2887_v39 = vld [vmem:[%s3739_s7 + $0x20] sm:$0xff]   ;;  %vm2408_vm11 = vmpackc.low %vm1784_vm9, %vm3125_vm3 }
  0xb7   : > { %2433 = vmatprep.subr.bf16.mxu0 %v3444_v16  ;;  %2619 = vmatprep.subr.bf16.mxu1 %v3123_v0 }
  0xba   : > { %2434 = vmatpush3.bf16.msra.mxu0 %v3453_v18  ;;  %2620 = vmatpush3.bf16.msra.mxu1 %v3456_v19 }
  0xbb   : > { %2435 = vmatprep.subr.bf16.mxu0 %v2821_v20  ;;  %2621 = vmatprep.subr.bf16.mxu1 %v3123_v0 }
  0xbe   : > { %2436 = vmatpush3.bf16.msra.mxu0 %v2822_v21  ;;  %2622 = vmatpush3.bf16.msra.mxu1 %v2823_v26 }
  0xbf   : > { %2437 = vmatprep.subr.bf16.mxu0 %v2824_v27  ;;  %2623 = vmatprep.subr.bf16.mxu1 %v3123_v0 }
  0xc2   : > { %2438 = vmatpush3.bf16.msra.mxu0 %v2825_v31  ;;  %2624 = vmatpush3.bf16.msra.mxu1 %v2826_v34 }
  0xc3   : > { %2454 = vmatprep.subr.bf16.mxu0 %v3394_v1  ;;  %2629 = vmatprep.subr.bf16.mxu1 %v3123_v0  ;;  %v2849_v1 = vld [vmem:[%s3735_s3 + $0x68] sm:$0xff]  }
  0xc5   : > { %2294 = vmatmul.mubr.msk.bf16.vlgmr.msra.gmra.mrb[0].mxu0 %vm3472_vm4, %v2293_v37  ;;  %2626 = vmatmul.mubr.bf16.vlgmr.msra.gmra.mrb[0].mxu1 %v596_v38 }
  0xc6   : > { %2455 = vmatpush3.bf16.msra.mxu0 %v3396_v2  ;;  %2630 = vmatpush3.bf16.msra.mxu1 %v3399_v3  ;;  %v2850_v2 = vld [vmem:[%s3735_s3 + $0x28] sm:$0xff]   ;;  %v2851_v3 = vld [vmem:[%s3735_s3 + $0xf0] sm:$0xff]  }
  0xc7   : > { %2456 = vmatprep.subr.bf16.mxu0 %v3402_v4  ;;  %2631 = vmatprep.subr.bf16.mxu1 %v3123_v0  ;;  %v2852_v4 = vld [vmem:[%s3735_s3 + $0xb0] sm:$0xff]  }
  0xc8   : > { %873 = vmatprep.mubr.bf16.mxu0 %v596_v38  ;;  %2645 = vmatprep.mubr.msk.bf16.mxu1 %vm3124_vm0, %v3123_v0 }
  0xca   : > { %2457 = vmatpush3.bf16.msra.mxu0 %v3405_v5  ;;  %2632 = vmatpush3.bf16.msra.mxu1 %v3409_v6  ;;  %v2853_v5 = vld [vmem:[%s3735_s3 + $0x70] sm:$0xff]  }
  0xcb   : > { %2458 = vmatprep.subr.bf16.mxu0 %v3411_v7  ;;  %2633 = vmatprep.subr.bf16.mxu1 %v3123_v0  ;;  %v2854_v6 = vld [vmem:[%s3735_s3 + $0x30] sm:$0xff]   ;;  %v2855_v7 = vld [vmem:[%s3735_s3 + $0xf8] sm:$0xff]  }
  0xce   : > { %2459 = vmatpush3.bf16.msra.mxu0 %v3416_v8  ;;  %2634 = vmatpush3.bf16.msra.mxu1 %v3420_v9  ;;  %v2856_v8 = vld [vmem:[%s3735_s3 + $0xb8] sm:$0xff]  }
  0xcf   : > { %2460 = vmatprep.subr.bf16.mxu0 %v3423_v10  ;;  %2635 = vmatprep.subr.bf16.mxu1 %v3123_v0  ;;  %v2857_v9 = vld [vmem:[%s3735_s3 + $0x78] sm:$0xff]  }
  0xd0   : > { %v2858_v10 = vld [vmem:[%s3735_s3 + $0x38] sm:$0xff]  }
  0xd2   : > { %2461 = vmatpush3.bf16.msra.mxu0 %v3425_v11  ;;  %2636 = vmatpush3.bf16.msra.mxu1 %v3428_v12  ;;  %v2859_v11 = vld [vmem:[#allocation4 + $0x40] sm:$0xff]  }
  0xd3   : > { %2462 = vmatprep.subr.bf16.mxu0 %v3432_v13  ;;  %2637 = vmatprep.subr.bf16.mxu1 %v3123_v0 }
  0xd6   : > { %2463 = vmatpush3.bf16.msra.mxu0 %v3437_v14  ;;  %2638 = vmatpush3.bf16.msra.mxu1 %v3440_v15  ;;  %v2266_v14 = vld [vmem:[%s3734_s2] ss:$0 sm:$0xff] }
  0xd7   : > { %2464 = vmatprep.subr.bf16.mxu0 %v3444_v16  ;;  %2639 = vmatprep.subr.bf16.mxu1 %v3123_v0 }
  0xda   : > { %2465 = vmatpush3.bf16.msra.mxu0 %v3453_v18  ;;  %2640 = vmatpush3.bf16.msra.mxu1 %v3456_v19 }
  0xdb   : > { %2466 = vmatprep.subr.bf16.mxu0 %v2821_v20  ;;  %2641 = vmatprep.subr.bf16.mxu1 %v3123_v0 }
  0xde   : > { %2467 = vmatpush3.bf16.msra.mxu0 %v2822_v21  ;;  %2642 = vmatpush3.bf16.msra.mxu1 %v2823_v26 }
  0xdf   : > { %2468 = vmatprep.subr.bf16.mxu0 %v2824_v27  ;;  %2643 = vmatprep.subr.bf16.mxu1 %v3123_v0 }
  0xe2   : > { %2469 = vmatpush3.bf16.msra.mxu0 %v2825_v31  ;;  %2644 = vmatpush3.bf16.msra.mxu1 %v2826_v34 }
  0xe3   : > { %2507 = vmatprep.subr.bf16.mxu1 %v2827_v42  ;;  %2485 = vmatprep.subr.bf16.mxu0 %v2829_v44 }
  0xe5   : > { %874 = vmatmul.mubr.bf16.vlgmr.msra.gmra.mrb[4].mxu0 %v595_v29  ;;  %2646 = vmatmul.mubr.msk.bf16.vlgmr.msra.gmra.mrb[4].mxu1 %vm3514_vm6, %v2296_v41 }
  0xe6   : > { %2508 = vmatpush3.bf16.msra.mxu1 %v2828_v43  ;;  %2486 = vmatpush3.bf16.msra.mxu0 %v2830_v45 }
  0xe7   : > { %2509 = vmatprep.subr.bf16.mxu1 %v2831_v46  ;;  %2487 = vmatprep.subr.bf16.mxu0 %v2833_v48 }
  0xea   : > { %2510 = vmatpush3.bf16.msra.mxu1 %v2832_v47  ;;  %2488 = vmatpush3.bf16.msra.mxu0 %v2834_v49 }
  0xeb   : > { %2511 = vmatprep.subr.bf16.mxu1 %v2835_v50  ;;  %2489 = vmatprep.subr.bf16.mxu0 %v2837_v52  ;;  %v2861_v52 = vld [vmem:[#allocation4 + $0x80] sm:$0xff]  }
  0xee   : > { %2512 = vmatpush3.bf16.msra.mxu1 %v2836_v51  ;;  %2490 = vmatpush3.bf16.msra.mxu0 %v2838_v54 }
  0xef   : > { %2513 = vmatprep.subr.bf16.mxu1 %v2839_v53  ;;  %2491 = vmatprep.subr.bf16.mxu0 %v2841_v56 }
  0xf2   : > { %2514 = vmatpush3.bf16.msra.mxu1 %v2840_v55  ;;  %2492 = vmatpush3.bf16.msra.mxu0 %v2842_v58 }
  0xf3   : > { %2515 = vmatprep.subr.bf16.mxu1 %v2843_v57  ;;  %2493 = vmatprep.subr.bf16.mxu0 %v2845_v60  ;;  %v2860_v57 = vld [vmem:[#allocation4] sm:$0xff]   ;;  %v2864_v60 = vld [vmem:[#allocation4 + $0x88] sm:$0xff]  }
  0xf6   : > { %2516 = vmatpush3.bf16.msra.mxu1 %v2844_v59  ;;  %2494 = vmatpush3.bf16.msra.mxu0 %v2846_v61  ;;  %v2862_v59 = vld [vmem:[#allocation4 + $0x48] sm:$0xff]  }
  0xf7   : > { %2517 = vmatprep.subr.bf16.mxu1 %v2847_v62  ;;  %2495 = vmatprep.subr.bf16.mxu0 %v2849_v1  ;;  %v2863_v61 = vld [vmem:[#allocation4 + $0x8] sm:$0xff]   ;;  %v2865_v62 = vld [vmem:[#allocation4 + $0x50] sm:$0xff]  }
  0xf8   : > { %v2866_v1 = vld [vmem:[#allocation4 + $0x10] sm:$0xff]  }
  0xfa   : > { %2518 = vmatpush3.bf16.msra.mxu1 %v2848_v63  ;;  %2496 = vmatpush3.bf16.msra.mxu0 %v2850_v2  ;;  %v2867_v63 = vld [vmem:[#allocation4 + $0x90] sm:$0xff]   ;;  %v2868_v2 = vld [vmem:[#allocation4 + $0x58] sm:$0xff]  }
  0xfb   : > { %2519 = vmatprep.subr.bf16.mxu1 %v2851_v3  ;;  %2497 = vmatprep.subr.bf16.mxu0 %v2853_v5  ;;  %v2869_v3 = vld [vmem:[#allocation4 + $0x18] sm:$0xff]   ;;  %v2871_v5 = vld [vmem:[#allocation4 + $0x60] sm:$0xff]  }
  0xfe   : > { %2520 = vmatpush3.bf16.msra.mxu1 %v2852_v4  ;;  %2498 = vmatpush3.bf16.msra.mxu0 %v2854_v6  ;;  %v2870_v4 = vld [vmem:[#allocation4 + $0x98] sm:$0xff]   ;;  %v2872_v6 = vld [vmem:[#allocation4 + $0x20] sm:$0xff]  }
  0xff   : > { %2521 = vmatprep.subr.bf16.mxu1 %v2855_v7  ;;  %2499 = vmatprep.subr.bf16.mxu0 %v2857_v9  ;;  %v2873_v7 = vld [vmem:[#allocation4 + $0xa0] sm:$0xff]   ;;  %v2875_v9 = vld [vmem:[#allocation4 + $0x28] sm:$0xff]  }
 0x102   : > { %2522 = vmatpush3.bf16.msra.mxu1 %v2856_v8  ;;  %2500 = vmatpush3.bf16.msra.mxu0 %v2858_v10  ;;  %v2874_v8 = vld [vmem:[#allocation4 + $0x68] sm:$0xff]  }
 0x103   : > { %2649 = vmatprep.subr.bf16.mxu1 %v3123_v0  ;;  %2529 = vmatprep.subr.bf16.mxu0 %v2859_v11  ;;  %v2876_v10 = vld [vmem:[#allocation4 + $0xa8] sm:$0xff]   ;;  %v2877_v11 = vld [vmem:[#allocation4 + $0x70] sm:$0xff]  }
 0x198   : > { %v2439_v12 = vpop.f32.mrb[0].mxu0  ;;  %v822_v15 = vpop.f32.mrb[0].mxu1 }
 0x199   : > { %v2440_v13 = vpop.f32.mrb[1].mxu0  ;;  %v2627_v18 = vpop.f32.mrb[1].mxu1 }
 0x19a   : > { %v2441_v16 = vadd.f32 %v2440_v13, %v2439_v12  ;;  %v2442_v17 = vpop.f32.mrb[2].mxu0  ;;  %v825_v20 = vpop.f32.mrb[2].mxu1  ;;  %v2878_v12 = vld [vmem:[#allocation4 + $0x30] sm:$0xff]  }
 0x19b   : > { %v2443_v19 = vpop.f32.mrb[3].mxu0  ;;  %v2628_v23 = vpop.f32.mrb[3].mxu1  ;;  %v2879_v13 = vld [vmem:[#allocation4 + $0xb0] sm:$0xff]  }
 0x19c   : > { %v2444_v21 = vadd.f32 %v2443_v19, %v2442_v17  ;;  %v782_v22 = vadd.f32 %v2441_v16, %v2266_v14  ;;  %v2882_v16 = vld [vmem:[#allocation4 + $0xb8] sm:$0xff]  }
 0x19e   : > { %v823_v24 = vadd.f32 %v822_v15, %v782_v22  ;;  %v785_v26 = vadd.f32 %v2444_v21, %v2266_v14  ;;  %v2881_v15 = vld [vmem:[#allocation4 + $0x38] sm:$0xff]  }
 0x1a0   : > { %v829_v27 = vmax.f32 %v823_v24, 0.0  ;;  %v826_v28 = vadd.f32 %v825_v20, %v785_v26  ;;  %v2298_v24 = vld [vmem:[%s3736_s4] ss:$0 sm:$0xff] }
 0x1a2   : > { %v830_v29 = vmax.f32 %v826_v28, 0.0  ;;  %v1000_v30 = vrot.slane %v829_v27, 1 }
 0x1a4   : > { %v1001_v31 = vrot.slane %v830_v29, 1  ;;  %v1007_v32 = vpack.c.bf16 %v830_v29, %v829_v27 }
 0x1a6   : > { %v1002_v33 = vsel %vm833_vm5, %v1000_v30, %v1001_v31  ;;  %1240 = vmatprep.mubr.bf16.mxu0 %v1007_v32 }
 0x1a7   : > { %v2336_v34 = vpack.c.bf16 %v1001_v31, %v1002_v33 }
 0x1a9   : > { %2337 = vmatprep.mubr.msk.bf16.mxu1 %vm3514_vm6, %v2336_v34 }
 0x1b8   : > { %v2470_v35 = vpop.f32.mrb[4].mxu0  ;;  %v916_v37 = vpop.f32.mrb[4].mxu1 }
 0x1b9   : > { %v2471_v36 = vpop.f32.mrb[5].mxu0  ;;  %v2647_v41 = vpop.f32.mrb[5].mxu1 }
 0x1ba   : > { %v2472_v38 = vadd.f32 %v2471_v36, %v2470_v35  ;;  %v2473_v40 = vpop.f32.mrb[6].mxu0  ;;  %v919_v43 = vpop.f32.mrb[6].mxu1 }
 0x1bb   : > { %v2474_v42 = vpop.f32.mrb[7].mxu0  ;;  %v2648_v46 = vpop.f32.mrb[7].mxu1 }
 0x1bc   : > { %v876_v44 = vadd.f32 %v2472_v38, %v2266_v14  ;;  %v2475_v45 = vadd.f32 %v2474_v42, %v2473_v40 }
 0x1be   : > { %v917_v47 = vadd.f32 %v916_v37, %v876_v44  ;;  %v879_v48 = vadd.f32 %v2475_v45, %v2266_v14  ;;  %v2880_v14 = vld [vmem:[#allocation4 + $0x78] sm:$0xff]   ;;  %v2883_v45 = vld [vmem:[%s3739_s7] sm:$0xff]  }
 0x1c0   : > { %v923_v49 = vmax.f32 %v917_v47, 0.0  ;;  %v920_v50 = vadd.f32 %v919_v43, %v879_v48  ;;  %v2884_v48 = vld [vmem:[%s3739_s7 + $0x8] sm:$0xff]  }
 0x1c2   : > { %v924_v51 = vmax.f32 %v920_v50, 0.0  ;;  %v992_v53 = vrot.slane %v923_v49, 7  ;;  %v2888_v50 = vld [vmem:[%s3739_s7 + $0x28] sm:$0xff]  }
 0x1c4   : > { %v993_v54 = vrot.slane %v924_v51, 7  ;;  %v1008_v55 = vpack.c.bf16 %v924_v51, %v923_v49  ;;  %v2885_v49 = vld [vmem:[%s3739_s7 + $0x10] sm:$0xff]  }
 0x1c5   : > { %v2889_v51 = vld [vmem:[%s3739_s7 + $0x30] sm:$0xff]  }
 0x1c6   : > { %v994_v56 = vsel %vm587_vm1, %v992_v53, %v993_v54  ;;  %1282 = vmatmul.mubr.bf16.vlgmr.msra.gmra.mrb[8].mxu1 %v1008_v55  ;;  %v2892_v54 = vld [vmem:[#allocation6] sm:$0xff]   ;;  %v2894_v55 = vld [vmem:[#allocation6 + $0x48] sm:$0xff]  }
 0x1c7   : > { %v2333_v58 = vpack.c.bf16 %v994_v56, %v992_v53  ;;  %2650 = vmatpush3.bf16.msra.mxu1 %v2861_v52  ;;  %2665 = vmatprep.mubr.msk.bf16.mxu1 %vm3124_vm0, %v3123_v0  ;;  %v2890_v52 = vld [vmem:[%s3739_s7 + $0x38] sm:$0xff]   ;;  %v2891_v53 = vld [vmem:[#allocation6 + $0x40] sm:$0xff]   ;;  %v2895_v56 = vld [vmem:[#allocation6 + $0x8] sm:$0xff]  }
 0x1c8   : > { %2651 = vmatprep.subr.bf16.mxu1 %v3123_v0 }
 0x1c9   : > { %2334 = vmatmul.mubr.msk.bf16.vlgmr.msra.gmra.mrb[8].mxu0 %vm3472_vm4, %v2333_v58  ;;  %v2898_v58 = vld [vmem:[#allocation6 + $0x10] sm:$0xff]  }
 0x1ca   : > { %2530 = vmatpush3.bf16.msra.mxu0 %v2860_v57  ;;  %v2897_v57 = vld [vmem:[#allocation6 + $0x50] sm:$0xff]  }
 0x1cb   : > { %2531 = vmatprep.subr.bf16.mxu0 %v2862_v59  ;;  %2652 = vmatpush3.bf16.msra.mxu1 %v2864_v60  ;;  %v2900_v59 = vld [vmem:[#allocation6 + $0x58] sm:$0xff]  }
 0x1cc   : > { %2653 = vmatprep.subr.bf16.mxu1 %v3123_v0  ;;  %v2901_v60 = vld [vmem:[#allocation6 + $0x18] sm:$0xff]  }
 0x1ce   : > { %2532 = vmatpush3.bf16.msra.mxu0 %v2863_v61  ;;  %v2903_v61 = vld [vmem:[#allocation6 + $0x60] sm:$0xff]  }
 0x1cf   : > { %2533 = vmatprep.subr.bf16.mxu0 %v2865_v62  ;;  %2654 = vmatpush3.bf16.msra.mxu1 %v2867_v63  ;;  %v2904_v62 = vld [vmem:[#allocation6 + $0x20] sm:$0xff]  }
 0x1d0   : > { %2655 = vmatprep.subr.bf16.mxu1 %v3123_v0 }
 0x1d2   : > { %2534 = vmatpush3.bf16.msra.mxu0 %v2866_v1 }
 0x1d3   : > { %2535 = vmatprep.subr.bf16.mxu0 %v2868_v2  ;;  %2656 = vmatpush3.bf16.msra.mxu1 %v2870_v4  ;;  %v2338_v2 = vld [vmem:[%s3766_s16] ss:$0 sm:$0xff] }
 0x1d4   : > { %2657 = vmatprep.subr.bf16.mxu1 %v3123_v0 }
 0x1d6   : > { %2536 = vmatpush3.bf16.msra.mxu0 %v2869_v3 }
 0x1d7   : > { %2537 = vmatprep.subr.bf16.mxu0 %v2871_v5  ;;  %2658 = vmatpush3.bf16.msra.mxu1 %v2873_v7 }
 0x1d8   : > { %2659 = vmatprep.subr.bf16.mxu1 %v3123_v0 }
 0x1da   : > { %2538 = vmatpush3.bf16.msra.mxu0 %v2872_v6 }
 0x1db   : > { %2539 = vmatprep.subr.bf16.mxu0 %v2874_v8  ;;  %2660 = vmatpush3.bf16.msra.mxu1 %v2876_v10 }
 0x1dc   : > { %2661 = vmatprep.subr.bf16.mxu1 %v3123_v0 }
 0x1de   : > { %2540 = vmatpush3.bf16.msra.mxu0 %v2875_v9 }
 0x1df   : > { %2541 = vmatprep.subr.bf16.mxu0 %v2877_v11  ;;  %2662 = vmatpush3.bf16.msra.mxu1 %v2879_v13 }
 0x1e0   : > { %2663 = vmatprep.subr.bf16.mxu1 %v3123_v0 }
 0x1e2   : > { %2542 = vmatpush3.bf16.msra.mxu0 %v2878_v12 }
 0x1e3   : > { %2543 = vmatprep.subr.bf16.mxu0 %v2880_v14  ;;  %2664 = vmatpush3.bf16.msra.mxu1 %v2882_v16 }
 0x1e4   : > { %2569 = vmatprep.subr.bf16.mxu1 %v2891_v53  ;;  %v2916_v53 = vld [vmem:[#allocation9 + $0x8] sm:$0xff]  }
 0x1e6   : > { %2544 = vmatpush3.bf16.msra.mxu0 %v2881_v15 }
 0x1e7   : > { %2669 = vmatprep.subr.bf16.mxu0 %v3123_v0 }
 0x299   : > { %v2523_v17 = vpop.f32.mrb[8].mxu1 }
 0x29a   : > { %v2524_v18 = vpop.f32.mrb[9].mxu1 }
 0x29b   : > { %v2525_v19 = vadd.f32 %v2524_v18, %v2523_v17  ;;  %v2526_v20 = vpop.f32.mrb[10].mxu1  ;;  %v2893_v17 = vld [vmem:[#allocation6 + $0x80] sm:$0xff]  }
 0x29c   : > { %v2501_v21 = vpop.f32.mrb[8].mxu0  ;;  %v2527_v22 = vpop.f32.mrb[11].mxu1 }
 0x29d   : > { %v2528_v23 = vadd.f32 %v2527_v22, %v2526_v20  ;;  %v2502_v26 = vpop.f32.mrb[9].mxu0  ;;  %v2899_v20 = vld [vmem:[#allocation6 + $0x90] sm:$0xff]   ;;  %v2905_v22 = vld [vmem:[#allocation6 + $0xa0] sm:$0xff]  }
 0x29e   : > { %v2503_v27 = vadd.f32 %v2502_v26, %v2501_v21  ;;  %v2504_v28 = vpop.f32.mrb[10].mxu0  ;;  %v2902_v21 = vld [vmem:[#allocation6 + $0x98] sm:$0xff]   ;;  %v2908_v26 = vld [vmem:[#allocation6 + $0xa8] sm:$0xff]  }
 0x29f   : > { %v2505_v29 = vpop.f32.mrb[11].mxu0 }
 0x2a0   : > { %v1243_v30 = vadd.f32 %v2503_v27, %v2298_v24  ;;  %v2506_v31 = vadd.f32 %v2505_v29, %v2504_v28  ;;  %v2909_v27 = vld [vmem:[#allocation6 + $0x70] sm:$0xff]  }
 0x2a1   : > { %v2910_v28 = vld [vmem:[#allocation6 + $0x30] sm:$0xff]  }
 0x2a2   : > { %v3642_v32 = vadd.f32 %v2525_v19, %v1243_v30  ;;  %v1246_v33 = vadd.f32 %v2506_v31, %v2298_v24  ;;  %v2896_v19 = vld [vmem:[#allocation6 + $0x88] sm:$0xff]   ;;  %v2911_v29 = vld [vmem:[#allocation6 + $0xb0] sm:$0xff]   ;;  %v2912_v30 = vld [vmem:[#allocation6 + $0x78] sm:$0xff]  }
 0x2a3   : > { %v2907_v24 = vld [vmem:[#allocation6 + $0x28] sm:$0xff]   ;;  %v2913_v31 = vld [vmem:[#allocation6 + $0x38] sm:$0xff]  }
 0x2a4   : > { %v1356_v34 = vmax.f32 %v3642_v32, 0.0  ;;  %v3645_v35 = vadd.f32 %v2528_v23, %v1246_v33  ;;  %v2906_v23 = vld [vmem:[#allocation6 + $0x68] sm:$0xff]   ;;  %v2914_v33 = vld [vmem:[#allocation6 + $0xb8] sm:$0xff]  }
 0x2a6   : > { %v1357_v36 = vmax.f32 %v3645_v35, 0.0  ;;  %v1360_v37 = vrot.slane %v1356_v34, 7  ;;  %v1366_v38 = vrot.slane %v1356_v34, 1 }
 0x2a8   : > { %v1361_v40 = vrot.slane %v1357_v36, 7  ;;  %v1367_v41 = vrot.slane %v1357_v36, 1  ;;  %v1373_v42 = vpack.c.bf16 %v1357_v36, %v1356_v34  ;;  %v2370_v34 = vld [vmem:[%s3767_s20] ss:$0 sm:$0xff] }
 0x2aa   : > { %1557 = vmatprep.mubr.bf16.mxu0 %v1373_v42  ;;  %v1362_v43 = vsel %vm587_vm1, %v1360_v37, %v1361_v40  ;;  %v1368_v44 = vsel %vm833_vm5, %v1366_v38, %v1367_v41 }
 0x2ab   : > { %v2365_v46 = vpack.c.bf16 %v1362_v43, %v1360_v37  ;;  %v2368_v47 = vpack.c.bf16 %v1367_v41, %v1368_v44 }
 0x2ad   : > { %2366 = vmatmul.mubr.msk.bf16.vlgmr.msra.gmra.mrb[12].mxu0 %vm3472_vm4, %v2365_v46  ;;  %2666 = vmatmul.mubr.msk.bf16.vlgmr.msra.gmra.mrb[12].mxu1 %vm3514_vm6, %v2368_v47 }
 0x2ae   : > { %2670 = vmatpush3.bf16.msra.mxu0 %v2883_v45  ;;  %2685 = vmatprep.mubr.msk.bf16.mxu0 %vm3124_vm0, %v3123_v0 }
 0x2af   : > { %2671 = vmatprep.subr.bf16.mxu0 %v3123_v0  ;;  %2570 = vmatpush3.bf16.msra.mxu1 %v2892_v54  ;;  %v2917_v54 = vld [vmem:[#allocation9 + $0x10] sm:$0xff]  }
 0x2b0   : > { %2571 = vmatprep.subr.bf16.mxu1 %v2894_v55  ;;  %v2918_v55 = vld [vmem:[#allocation9 + $0x18] sm:$0xff]  }
 0x2b2   : > { %2672 = vmatpush3.bf16.msra.mxu0 %v2884_v48 }
 0x2b3   : > { %2673 = vmatprep.subr.bf16.mxu0 %v3123_v0  ;;  %2572 = vmatpush3.bf16.msra.mxu1 %v2895_v56  ;;  %v2919_v56 = vld [vmem:[#allocation9 + $0x20] sm:$0xff]  }
 0x2b4   : > { %2573 = vmatprep.subr.bf16.mxu1 %v2897_v57  ;;  %v2920_v57 = vld [vmem:[#allocation9 + $0x28] sm:$0xff]  }
 0x2b6   : > { %2674 = vmatpush3.bf16.msra.mxu0 %v2885_v49 }
 0x2b7   : > { %2675 = vmatprep.subr.bf16.mxu0 %v3123_v0  ;;  %2574 = vmatpush3.bf16.msra.mxu1 %v2898_v58  ;;  %v2921_v58 = vld [vmem:[#allocation9 + $0x30] sm:$0xff]  }
 0x2b8   : > { %2575 = vmatprep.subr.bf16.mxu1 %v2900_v59  ;;  %v2922_v59 = vld [vmem:[#allocation9 + $0x38] sm:$0xff]  }
 0x2ba   : > { %2676 = vmatpush3.bf16.msra.mxu0 %v2886_v25 }
 0x2bb   : > { %2677 = vmatprep.subr.bf16.mxu0 %v3123_v0  ;;  %2576 = vmatpush3.bf16.msra.mxu1 %v2901_v60 }
 0x2bc   : > { %2577 = vmatprep.subr.bf16.mxu1 %v2903_v61 }
 0x2be   : > { %2678 = vmatpush3.bf16.msra.mxu0 %v2887_v39 }
 0x2bf   : > { %2679 = vmatprep.subr.bf16.mxu0 %v3123_v0  ;;  %2578 = vmatpush3.bf16.msra.mxu1 %v2904_v62  ;;  %v2379_v62 = vld [vmem:[#allocation7] ss:$0 sm:$0xff] }
 0x2c0   : > { %2579 = vmatprep.subr.bf16.mxu1 %v2906_v23 }
 0x2c2   : > { %2680 = vmatpush3.bf16.msra.mxu0 %v2888_v50 }
 0x2c3   : > { %2681 = vmatprep.subr.bf16.mxu0 %v3123_v0  ;;  %2580 = vmatpush3.bf16.msra.mxu1 %v2907_v24 }
 0x2c4   : > { %2581 = vmatprep.subr.bf16.mxu1 %v2909_v27 }
 0x2c6   : > { %2682 = vmatpush3.bf16.msra.mxu0 %v2889_v51  ;;  %v2915_v51 = vld [vmem:[#allocation9] sm:$0xff]  }
 0x2c7   : > { %2683 = vmatprep.subr.bf16.mxu0 %v3123_v0  ;;  %2582 = vmatpush3.bf16.msra.mxu1 %v2910_v28 }
 0x2c8   : > { %2583 = vmatprep.subr.bf16.mxu1 %v2912_v30 }
 0x2ca   : > { %2684 = vmatpush3.bf16.msra.mxu0 %v2890_v52 }
 0x2cb   : > { %2689 = vmatprep.subr.bf16.mxu0 %v3123_v0  ;;  %2584 = vmatpush3.bf16.msra.mxu1 %v2913_v31 }
 0x2cc   : > { %2709 = vmatprep.subr.bf16.mxu1 %v3123_v0 }
 0x380   : > { %v2545_v63 = vpop.f32.mrb[12].mxu0  ;;  %v1600_v1 = vpop.f32.mrb[12].mxu1 }
 0x381   : > { %v2546_v3 = vpop.f32.mrb[13].mxu0  ;;  %v2667_v4 = vpop.f32.mrb[13].mxu1 }
 0x382   : > { %v2547_v5 = vadd.f32 %v2546_v3, %v2545_v63  ;;  %v2548_v6 = vpop.f32.mrb[14].mxu0  ;;  %v1603_v7 = vpop.f32.mrb[14].mxu1 }
 0x383   : > { %v2549_v8 = vpop.f32.mrb[15].mxu0  ;;  %v2668_v9 = vpop.f32.mrb[15].mxu1 }
 0x384   : > { %v1560_v10 = vadd.f32 %v2547_v5, %v2338_v2  ;;  %v2550_v11 = vadd.f32 %v2549_v8, %v2548_v6 }
 0x386   : > { %v1601_v12 = vadd.f32 %v1600_v1, %v1560_v10  ;;  %v1563_v13 = vadd.f32 %v2550_v11, %v2338_v2 }
 0x388   : > { %v1604_v14 = vadd.f32 %v1603_v7, %v1563_v13  ;;  %v1607_v15 = vmax.f32 %v1601_v12, 0.0 }
 0x38a   : > { %v1608_v16 = vmax.f32 %v1604_v14, 0.0  ;;  %v2411_v14 = vld [vmem:[#allocation10] ss:$0 sm:$0xff] }
 0x38c   : > { %v1609_v18 = vpack.c.bf16 %v1608_v16, %v1607_v15 }
 0x38e   : > { %2686 = vmatmul.mubr.bf16.vlgmr.msra.gmra.mrb[16].mxu0 %v1609_v18 }
 0x38f   : > { %2690 = vmatpush3.bf16.msra.mxu0 %v2893_v17  ;;  %2705 = vmatprep.mubr.msk.bf16.mxu0 %vm3124_vm0, %v3123_v0 }
 0x390   : > { %2691 = vmatprep.subr.bf16.mxu0 %v3123_v0 }
 0x393   : > { %2692 = vmatpush3.bf16.msra.mxu0 %v2896_v19 }
 0x394   : > { %2693 = vmatprep.subr.bf16.mxu0 %v3123_v0 }
 0x397   : > { %2694 = vmatpush3.bf16.msra.mxu0 %v2899_v20 }
 0x398   : > { %2695 = vmatprep.subr.bf16.mxu0 %v3123_v0 }
 0x39b   : > { %2696 = vmatpush3.bf16.msra.mxu0 %v2902_v21 }
 0x39c   : > { %2697 = vmatprep.subr.bf16.mxu0 %v3123_v0 }
 0x39f   : > { %2698 = vmatpush3.bf16.msra.mxu0 %v2905_v22 }
 0x3a0   : > { %2699 = vmatprep.subr.bf16.mxu0 %v3123_v0 }
 0x3a3   : > { %2700 = vmatpush3.bf16.msra.mxu0 %v2908_v26 }
 0x3a4   : > { %2701 = vmatprep.subr.bf16.mxu0 %v3123_v0 }
 0x3a7   : > { %2702 = vmatpush3.bf16.msra.mxu0 %v2911_v29 }
 0x3a8   : > { %2703 = vmatprep.subr.bf16.mxu0 %v3123_v0 }
 0x3ab   : > { %2704 = vmatpush3.bf16.msra.mxu0 %v2914_v33 }
 0x461   : > { %v1698_v36 = vpop.f32.mrb[16].mxu0 }
 0x462   : > { %v1699_v37 = vadd.f32 %v2370_v34, %v1698_v36  ;;  %v2687_v38 = vpop.f32.mrb[17].mxu0 }
 0x463   : > { %v1701_v40 = vpop.f32.mrb[18].mxu0 }
 0x464   : > { %v3705_v41 = vadd.f32 %v1699_v37, %v3642_v32  ;;  %v1702_v42 = vadd.f32 %v2370_v34, %v1701_v40  ;;  %v2688_v43 = vpop.f32.mrb[19].mxu0 }
 0x466   : > { %v1773_v44 = vmax.f32 %v3705_v41, 0.0  ;;  %v3709_v45 = vadd.f32 %v1702_v42, %v3645_v35 }
 0x468   : > { %v1774_v46 = vmax.f32 %v3709_v45, 0.0  ;;  %v1778_v47 = vrot.slane %v1773_v44, 5  ;;  %v1785_v48 = vrot.slane %v1773_v44, 3 }
 0x46a   : > { %v1779_v49 = vrot.slane %v1774_v46, 5  ;;  %v1786_v25 = vrot.slane %v1774_v46, 3  ;;  %v1792_v39 = vpack.c.bf16 %v1774_v46, %v1773_v44 }
 0x46c   : > { %1976 = vmatprep.mubr.bf16.mxu1 %v1792_v39  ;;  %v1780_v32 = vsel %vm1777_vm7, %v1778_v47, %v1779_v49  ;;  %v1787_v50 = vsel %vm1784_vm9, %v1785_v48, %v1786_v25 }
 0x46d   : > { %v2406_v52 = vpack.c.bf16 %v1780_v32, %v1778_v47  ;;  %v2409_v35 = vpack.c.bf16 %v1786_v25, %v1787_v50 }
 0x46f   : > { %2407 = vmatmul.mubr.msk.bf16.vlgmr.msra.gmra.mrb[16].mxu1 %vm2405_vm10, %v2406_v52  ;;  %2706 = vmatmul.mubr.msk.bf16.vlgmr.msra.gmra.mrb[20].mxu0 %vm2408_vm11, %v2409_v35 }
 0x470   : > { %2710 = vmatpush3.bf16.msra.mxu1 %v2915_v51  ;;  %2725 = vmatprep.mubr.msk.bf16.mxu1 %vm3124_vm0, %v3123_v0 }
 0x471   : > { %2711 = vmatprep.subr.bf16.mxu1 %v3123_v0 }
 0x474   : > { %2712 = vmatpush3.bf16.msra.mxu1 %v2916_v53 }
 0x475   : > { %2713 = vmatprep.subr.bf16.mxu1 %v3123_v0 }
 0x478   : > { %2714 = vmatpush3.bf16.msra.mxu1 %v2917_v54 }
 0x479   : > { %2715 = vmatprep.subr.bf16.mxu1 %v3123_v0 }
 0x47c   : > { %2716 = vmatpush3.bf16.msra.mxu1 %v2918_v55 }
 0x47d   : > { %2717 = vmatprep.subr.bf16.mxu1 %v3123_v0 }
 0x480   : > { %2718 = vmatpush3.bf16.msra.mxu1 %v2919_v56 }
 0x481   : > { %2719 = vmatprep.subr.bf16.mxu1 %v3123_v0 }
 0x484   : > { %2720 = vmatpush3.bf16.msra.mxu1 %v2920_v57 }
 0x485   : > { %2721 = vmatprep.subr.bf16.mxu1 %v3123_v0 }
 0x488   : > { %2722 = vmatpush3.bf16.msra.mxu1 %v2921_v58 }
 0x489   : > { %2723 = vmatprep.subr.bf16.mxu1 %v3123_v0 }
 0x48c   : > { %2724 = vmatpush3.bf16.msra.mxu1 %v2922_v59 }
 0x542   : > { %v2585_v60 = vpop.f32.mrb[16].mxu1  ;;  %v2019_v61 = vpop.f32.mrb[20].mxu0 }
 0x543   : > { %v2586_v63 = vpop.f32.mrb[17].mxu1  ;;  %v2707_v1 = vpop.f32.mrb[21].mxu0 }
 0x544   : > { %v2587_v2 = vadd.f32 %v2586_v63, %v2585_v60  ;;  %v2588_v3 = vpop.f32.mrb[18].mxu1  ;;  %v2022_v4 = vpop.f32.mrb[22].mxu0 }
 0x545   : > { %v2589_v5 = vpop.f32.mrb[19].mxu1  ;;  %v2708_v6 = vpop.f32.mrb[23].mxu0 }
 0x546   : > { %v1979_v7 = vadd.f32 %v2587_v2, %v2379_v62  ;;  %v2590_v8 = vadd.f32 %v2589_v5, %v2588_v3 }
 0x548   : > { %v2020_v9 = vadd.f32 %v2019_v61, %v1979_v7  ;;  %v1982_v10 = vadd.f32 %v2590_v8, %v2379_v62 }
 0x54a   : > { %v2023_v11 = vadd.f32 %v2022_v4, %v1982_v10  ;;  %v2026_v12 = vmax.f32 %v2020_v9, 0.0 }
 0x54c   : > { %v2027_v0 = vmax.f32 %v2023_v11, 0.0 }
 0x54e   : > { %v2028_v13 = vpack.c.bf16 %v2027_v0, %v2026_v12 }
 0x550   : > { %2726 = vmatmul.mubr.bf16.vlgmr.msra.gmra.mrb[20].mxu1 %v2028_v13 }
 0x623   : > { %v2117_v15 = vpop.f32.mrb[20].mxu1 }
 0x624   : > { %v2118_v16 = vadd.f32 %v2411_v14, %v2117_v15  ;;  %v2727_v17 = vpop.f32.mrb[21].mxu1 }
 0x625   : > { %v2120_v18 = vpop.f32.mrb[22].mxu1 }
 0x626   : > { %v2124_v19 = vadd.f32 %v2118_v16, %v3705_v41  ;;  %v2121_v20 = vadd.f32 %v2411_v14, %v2120_v18  ;;  %v2728_v21 = vpop.f32.mrb[23].mxu1 }
 0x628   : > { %2126 = vst [vmem:[%s529_s29] sm:$0xff] %v2124_v19  ;;  %v2125_v22 = vadd.f32 %v2121_v20, %v3709_v45 }
 0x62a   : > { %2127 = vst [vmem:[%s529_s29 + $0x8] sm:$0xff] %v2125_v22 }
 0x62b PF: > { %s27_s25 = sadd.s32 1, %s3113_s25  }
 0x62c   : > { %p24_p7 = scmp.ge.s32.totalorder %s27_s25, 4  }
 0x62e   :  { %26 = sbr.rel (!%p24_p7) target bundleno = 8 (0x8), region = 127 }
 0x635   :  { %2150 = vsyncpa [#allocation3], 1 }
 0x636   :  { %2152 = vsyncpa [#allocation3 + $0x1], 1 }
 0x637   :  { %2153 = vsyncpa [#allocation5], 1 }
 0x638   :  { %2154 = vsyncpa [#allocation8], 1 }
 0x639   :  { %2155 = vsyncpa [#allocation11], 1 }

// kernel: _lambda_.7
= control target key start
LH: loop header
LB: loop body
LE: loop exit
PB: predicated region body
PF: predicated region fallthrough
CT: control target
= control target key end

     0   :  { %s2586_s25 = smov 0   ;;  %s3067_s0 = inlined_call_operand.vmem [shape: f32[16,256], index: 0, kind: input, shape index: {}]   ;;  %s3068_s1 = inlined_call_operand.vmem [shape: bf16[512,128], index: 1, kind: input, shape index: {}]   ;;  %s3069_s2 = inlined_call_operand.vmem [shape: f32[1,128], index: 2, kind: input, shape index: {}]   ;;  %s3070_s3 = inlined_call_operand.vmem [shape: bf16[384,128], index: 3, kind: input, shape index: {}]   ;;  %s3071_s4 = inlined_call_operand.vmem [shape: f32[1,128], index: 4, kind: input, shape index: {}]   ;;  %s3072_s5 = inlined_call_operand.vmem [shape: bf16[128,128], index: 5, kind: input, shape index: {}]   ;;  %s3073_s6 = inlined_call_operand.vmem [shape: f32[1,128], index: 6, kind: input, shape index: {}]   ;;  %s3074_s7 = inlined_call_operand.vmem [shape: bf16[384,128], index: 7, kind: input, shape index: {}]   ;;  %s3075_s8 = inlined_call_operand.vmem [shape: f32[1,128], index: 8, kind: input, shape index: {}]   ;;  %s3076_s9 = inlined_call_operand.vmem [shape: bf16[128,128], index: 9, kind: input, shape index: {}]   ;;  %s3077_s10 = inlined_call_operand.vmem [shape: f32[1,128], index: 10, kind: input, shape index: {}]   ;;  %s3078_s11 = inlined_call_operand.vmem [shape: bf16[384,128], index: 11, kind: input, shape index: {}]   ;;  %s3079_s12 = inlined_call_operand.vmem [shape: f32[1,128], index: 12, kind: input, shape index: {}]   ;;  %s3080_s13 = inlined_call_operand.vmem [shape: f32[16,128], index: 13, kind: output, shape index: {}]  }
   0x1 LB: > { %s1952_s26 = sadd.s32 4294967295, %s2512_s25   ;;  %p1956_p0 = scmp.ge.s32.totalorder %s2512_s25, 1  ;;  %s2512_s25 = sphi %s2586_s25, %s23_s25  }
   0x2   : > { %p387_p1 = scmp.lt.s32.totalorder %s2512_s25, 3 }
   0x4   : > { %p388_p2 = pnand %p1956_p0, %p387_p1 }
   0x5   : > { %v2386_v0 = vld [vmem:[%s3068_s1 + $0x40] sm:$0xff] (!%p388_p2)   ;;  %v2390_v4 = vld [vmem:[%s3068_s1 + $0x48] sm:$0xff] (!%p388_p2)   ;;  %v2394_v8 = vld [vmem:[%s3068_s1 + $0x50] sm:$0xff] (!%p388_p2)   ;;  %p430_p3 = scmp.lt.s32.totalorder (!%p388_p2), %s1952_s26, 1  ;;  %vm515_vm0 = vcmask (!%p388_p2), 1046528   ;;  %vm510_vm1 = vcmask (!%p388_p2), 1040384  }
   0x6   : > { %391 = sbr.rel (%p388_p2) target bundleno = 1372 (0x55c), region = 72  ;;  %v2387_v1 = vld [vmem:[%s3068_s1 + $0xc0] sm:$0xff] (!%p388_p2)   ;;  %2121 = vmatprep.subr.bf16.mxu0 (!%p388_p2), %v2386_v0  ;;  %v2391_v5 = vld [vmem:[%s3068_s1 + $0xc8] sm:$0xff] (!%p388_p2)   ;;  %v2395_v9 = vld [vmem:[%s3068_s1 + $0xd0] sm:$0xff] (!%p388_p2)   ;;  %v2514_v41 = vmov (!%p388_p2), 0.0   ;;  %vm2515_vm5 = vmmov (!%p388_p2), 0  }
   0x7   : > { %v2388_v2 = vld [vmem:[%s3068_s1] sm:$0xff] (!%p388_p2)   ;;  %2143 = vmatprep.subr.bf16.mxu1 (!%p388_p2), %v2387_v1  ;;  %v2392_v6 = vld [vmem:[%s3068_s1 + $0x8] sm:$0xff] (!%p388_p2)   ;;  %v2396_v10 = vld [vmem:[%s3068_s1 + $0x10] sm:$0xff] (!%p388_p2)   ;;  %vm1273_vm6 = vcmask (!%p388_p2), 1042432   ;;  %vm1277_vm8 = vcmask (!%p388_p2), 1044480  }
   0x8   : > { %v2389_v3 = vld [vmem:[%s3068_s1 + $0x80] sm:$0xff] (!%p388_p2)   ;;  %2122 = vmatpush3.bf16.msra.mxu0 (!%p388_p2), %v2388_v2  ;;  %v2393_v7 = vld [vmem:[%s3068_s1 + $0x88] sm:$0xff] (!%p388_p2)   ;;  %v2397_v11 = vld [vmem:[%s3068_s1 + $0x90] sm:$0xff] (!%p388_p2)  }
   0x9   : > { %2144 = vmatpush3.bf16.msra.mxu1 (!%p388_p2), %v2389_v3  ;;  %2123 = vmatprep.subr.bf16.mxu0 (!%p388_p2), %v2390_v4  ;;  %v2398_v12 = vld [vmem:[%s3068_s1 + $0x58] sm:$0xff] (!%p388_p2)   ;;  %v2402_v16 = vld [vmem:[%s3068_s1 + $0x60] sm:$0xff] (!%p388_p2)   ;;  %v2406_v20 = vld [vmem:[%s3068_s1 + $0x68] sm:$0xff] (!%p388_p2)  }
   0xa   : > { %2145 = vmatprep.subr.bf16.mxu1 (!%p388_p2), %v2391_v5  ;;  %v2399_v13 = vld [vmem:[%s3068_s1 + $0xd8] sm:$0xff] (!%p388_p2)   ;;  %v2403_v17 = vld [vmem:[%s3068_s1 + $0xe0] sm:$0xff] (!%p388_p2)   ;;  %v2407_v21 = vld [vmem:[%s3068_s1 + $0xe8] sm:$0xff] (!%p388_p2)  }
   0xb   : > { %v2400_v14 = vld [vmem:[%s3068_s1 + $0x18] sm:$0xff] (!%p388_p2)   ;;  %v2404_v18 = vld [vmem:[%s3068_s1 + $0x20] sm:$0xff] (!%p388_p2)   ;;  %v2408_v22 = vld [vmem:[%s3068_s1 + $0x28] sm:$0xff] (!%p388_p2)  }
   0xc   : > { %2124 = vmatpush3.bf16.msra.mxu0 (!%p388_p2), %v2392_v6  ;;  %v2401_v15 = vld [vmem:[%s3068_s1 + $0x98] sm:$0xff] (!%p388_p2)   ;;  %v2405_v19 = vld [vmem:[%s3068_s1 + $0xa0] sm:$0xff] (!%p388_p2)   ;;  %v2409_v23 = vld [vmem:[%s3068_s1 + $0xa8] sm:$0xff] (!%p388_p2)  }
   0xd   : > { %2146 = vmatpush3.bf16.msra.mxu1 %v2393_v7  ;;  %2125 = vmatprep.subr.bf16.mxu0 %v2394_v8  ;;  %s3086_s26 = smov (!%p430_p3, %s1952_s26), 1  ;;  %v2410_v24 = vld [vmem:[%s3068_s1 + $0x70] sm:$0xff]   ;;  %v2414_v28 = vld [vmem:[%s3068_s1 + $0x78] sm:$0xff]   ;;  %vm2700_vm2 = vmpackc.low %vm515_vm0, %vm515_vm0 }
   0xe   : > { %2147 = vmatprep.subr.bf16.mxu1 %v2395_v9  ;;  %v2411_v25 = vld [vmem:[%s3068_s1 + $0xf0] sm:$0xff]   ;;  %s2120_s19 = sshll.u32 %s3086_s26, 4  ;;  %v2415_v29 = vld [vmem:[%s3068_s1 + $0xf8] sm:$0xff]   ;;  %vm1993_vm3 = vmneg %vm510_vm1  ;;  %s1959_s28 = sshll.u32 %s3086_s26, 3 }
   0xf   : > { %v2412_v26 = vld [vmem:[%s3068_s1 + $0x30] sm:$0xff]   ;;  %s434_s30 = scalar_lea.vmem %s3067_s0, %s2120_s19  ;;  %v2416_v30 = vld [vmem:[%s3068_s1 + $0x38] sm:$0xff]   ;;  %vm2704_vm4 = vmpackc.low %vm1993_vm3, %vm1993_vm3  ;;  %s438_s14 = scalar_lea.vmem %s3080_s13, %s1959_s28 }
  0x10   : > { %2126 = vmatpush3.bf16.msra.mxu0 %v2396_v10  ;;  %v2413_v27 = vld [vmem:[%s3068_s1 + $0xb0] sm:$0xff]   ;;  %v2417_v31 = vld [vmem:[%s3068_s1 + $0xb8] sm:$0xff]   ;;  %v440_v32 = vld [vmem:[%s434_s30] sm:$0xff] }
  0x11   : > { %2148 = vmatpush3.bf16.msra.mxu1 %v2397_v11  ;;  %2127 = vmatprep.subr.bf16.mxu0 %v2398_v12  ;;  %v441_v33 = vld [vmem:[%s434_s30 + $0x8] sm:$0xff]  ;;  %v518_v36 = vpack.c.bf16 %v440_v32, %v440_v32  ;;  %v513_v37 = vrot.slane %v440_v32, 1  ;;  %v2418_v40 = vld [vmem:[%s3070_s3 + $0x40] sm:$0xff]   ;;  %v2424_v49 = vld [vmem:[%s3070_s3 + $0x50] sm:$0xff]  }
  0x12   : > { %2149 = vmatprep.subr.bf16.mxu1 %v2399_v13  ;;  %v508_v35 = vrot.slane %v441_v33, 7  ;;  %v519_v39 = vpack.c.bf16 %v441_v33, %v441_v33  ;;  %v2419_v44 = vld [vmem:[%s3070_s3] sm:$0xff]   ;;  %v2421_v46 = vld [vmem:[%s3070_s3 + $0x48] sm:$0xff]   ;;  %v2425_v50 = vld [vmem:[%s3070_s3 + $0x10] sm:$0xff]  }
  0x13   : > { %751 = vmatprep.mubr.bf16.mxu0 %v518_v36  ;;  %v1999_v43 = vpack.c.bf16 %v513_v37, %v513_v37  ;;  %v2420_v45 = vld [vmem:[%s3070_s3 + $0x80] sm:$0xff]   ;;  %v2422_v47 = vld [vmem:[%s3070_s3 + $0x8] sm:$0xff]   ;;  %v2426_v51 = vld [vmem:[%s3070_s3 + $0x90] sm:$0xff]  }
  0x14   : > { %2128 = vmatpush3.bf16.msra.mxu0 %v2400_v14  ;;  %v1996_v42 = vpack.c.bf16 %v508_v35, %v508_v35  ;;  %v2423_v48 = vld [vmem:[%s3070_s3 + $0x88] sm:$0xff]   ;;  %v2427_v52 = vld [vmem:[%s3070_s3 + $0x58] sm:$0xff]   ;;  %v2430_v55 = vld [vmem:[%s3070_s3 + $0x60] sm:$0xff]  }
  0x15   : > { %2150 = vmatpush3.bf16.msra.mxu1 %v2401_v15  ;;  %2129 = vmatprep.subr.bf16.mxu0 %v2402_v16  ;;  %v2428_v53 = vld [vmem:[%s3070_s3 + $0x18] sm:$0xff]   ;;  %v2431_v56 = vld [vmem:[%s3070_s3 + $0x20] sm:$0xff]   ;;  %v2433_v58 = vld [vmem:[%s3070_s3 + $0x68] sm:$0xff]  }
  0x16   : > { %2151 = vmatprep.subr.bf16.mxu1 %v2403_v17  ;;  %2000 = vmatprep.mubr.msk.bf16.mxu1 %vm2700_vm2, %v1999_v43  ;;  %v2429_v54 = vld [vmem:[%s3070_s3 + $0x98] sm:$0xff]   ;;  %v2432_v57 = vld [vmem:[%s3070_s3 + $0xa0] sm:$0xff]   ;;  %v2434_v59 = vld [vmem:[%s3070_s3 + $0x28] sm:$0xff]  }
  0x17   : > { %v2435_v60 = vld [vmem:[%s3070_s3 + $0xa8] sm:$0xff]   ;;  %v2436_v61 = vld [vmem:[%s3070_s3 + $0x70] sm:$0xff]   ;;  %v2439_v0 = vld [vmem:[%s3070_s3 + $0x78] sm:$0xff]  }
  0x18   : > { %2130 = vmatpush3.bf16.msra.mxu0 %v2404_v18  ;;  %v2437_v62 = vld [vmem:[%s3070_s3 + $0x30] sm:$0xff]   ;;  %v2440_v1 = vld [vmem:[%s3070_s3 + $0x38] sm:$0xff]   ;;  %v1960_v5 = vld [vmem:[%s3069_s2] ss:$0 sm:$0xff] }
  0x19   : > { %2152 = vmatpush3.bf16.msra.mxu1 %v2405_v19  ;;  %2131 = vmatprep.subr.bf16.mxu0 %v2406_v20  ;;  %v2438_v63 = vld [vmem:[%s3070_s3 + $0xb0] sm:$0xff]   ;;  %v2441_v2 = vld [vmem:[%s3070_s3 + $0xb8] sm:$0xff]   ;;  %v2442_v20 = vld [vmem:[%s3072_s5] sm:$0xff]  }
  0x1a   : > { %2153 = vmatprep.subr.bf16.mxu1 %v2407_v21  ;;  %v2453_v32 = vld [vmem:[%s3074_s7 + $0x48] sm:$0xff]   ;;  %v2456_v35 = vld [vmem:[%s3074_s7 + $0x50] sm:$0xff]   ;;  %v2459_v37 = vld [vmem:[%s3074_s7 + $0x58] sm:$0xff]  }
  0x1b   : > { %v2454_v33 = vld [vmem:[%s3074_s7 + $0x8] sm:$0xff]   ;;  %v2457_v36 = vld [vmem:[%s3074_s7 + $0x10] sm:$0xff]   ;;  %vm2068_vm7 = vmneg %vm1273_vm6 }
  0x1c   : > { %2132 = vmatpush3.bf16.msra.mxu0 %v2408_v22  ;;  %v2465_v43 = vld [vmem:[%s3074_s7 + $0x68] sm:$0xff]   ;;  %vm2070_vm9 = vmpackc.low %vm2068_vm7, %vm2068_vm7 }
  0x1d   : > { %2154 = vmatpush3.bf16.msra.mxu1 %v2409_v23  ;;  %2133 = vmatprep.subr.bf16.mxu0 %v2410_v24  ;;  %v2443_v23 = vld [vmem:[%s3072_s5 + $0x8] sm:$0xff]   ;;  %v2444_v24 = vld [vmem:[%s3072_s5 + $0x10] sm:$0xff]   ;;  %vm2073_vm10 = vmpackc.low %vm1277_vm8, %vm1277_vm8 }
  0x1e   : > { %2155 = vmatprep.subr.bf16.mxu1 %v2411_v25  ;;  %v2445_v25 = vld [vmem:[%s3072_s5 + $0x18] sm:$0xff]  }
  0x20   : > { %2134 = vmatpush3.bf16.msra.mxu0 %v2412_v26  ;;  %v2446_v26 = vld [vmem:[%s3072_s5 + $0x20] sm:$0xff]  }
  0x21   : > { %2156 = vmatpush3.bf16.msra.mxu1 %v2413_v27  ;;  %2135 = vmatprep.subr.bf16.mxu0 %v2414_v28  ;;  %v2447_v27 = vld [vmem:[%s3072_s5 + $0x28] sm:$0xff]   ;;  %v2448_v28 = vld [vmem:[%s3072_s5 + $0x30] sm:$0xff]  }
  0x22   : > { %2157 = vmatprep.subr.bf16.mxu1 %v2415_v29  ;;  %v2449_v29 = vld [vmem:[%s3072_s5 + $0x38] sm:$0xff]  }
  0x24   : > { %2136 = vmatpush3.bf16.msra.mxu0 %v2416_v30  ;;  %v2450_v30 = vld [vmem:[%s3074_s7 + $0x40] sm:$0xff]  }
  0x25   : > { %2158 = vmatpush3.bf16.msra.mxu1 %v2417_v31  ;;  %2165 = vmatprep.subr.bf16.mxu0 %v2418_v40  ;;  %v2451_v31 = vld [vmem:[%s3074_s7] sm:$0xff]  }
  0x26   : > { %2276 = vmatprep.subr.bf16.mxu1 %v2514_v41  ;;  %v2462_v40 = vld [vmem:[%s3074_s7 + $0x60] sm:$0xff]  }
  0x27   : > { %1997 = vmatmul.mubr.msk.bf16.vlgmr.msra.gmra.mrb[0].mxu0 %vm2704_vm4, %v1996_v42  ;;  %v2463_v42 = vld [vmem:[%s3074_s7 + $0x20] sm:$0xff]  }
  0x28   : > { %792 = vmatmul.mubr.bf16.vlgmr.msra.gmra.mrb[0].mxu1 %v519_v39  ;;  %2166 = vmatpush3.bf16.msra.mxu0 %v2419_v44  ;;  %v2460_v39 = vld [vmem:[%s3074_s7 + $0x18] sm:$0xff]  }
  0x29   : > { %2277 = vmatpush3.bf16.msra.mxu1 %v2420_v45  ;;  %2167 = vmatprep.subr.bf16.mxu0 %v2421_v46  ;;  %v2001_v46 = vld [vmem:[%s3071_s4] ss:$0 sm:$0xff] }
  0x2a   : > { %2278 = vmatprep.subr.bf16.mxu1 %v2514_v41  ;;  %2292 = vmatprep.mubr.msk.bf16.mxu1 %vm2515_vm5, %v2514_v41 }
  0x2c   : > { %2168 = vmatpush3.bf16.msra.mxu0 %v2422_v47 }
  0x2d   : > { %2279 = vmatpush3.bf16.msra.mxu1 %v2423_v48  ;;  %2169 = vmatprep.subr.bf16.mxu0 %v2424_v49 }
  0x2e   : > { %2280 = vmatprep.subr.bf16.mxu1 %v2514_v41 }
  0x30   : > { %2170 = vmatpush3.bf16.msra.mxu0 %v2425_v50 }
  0x31   : > { %2281 = vmatpush3.bf16.msra.mxu1 %v2426_v51  ;;  %2171 = vmatprep.subr.bf16.mxu0 %v2427_v52 }
  0x32   : > { %2282 = vmatprep.subr.bf16.mxu1 %v2514_v41 }
  0x34   : > { %2172 = vmatpush3.bf16.msra.mxu0 %v2428_v53 }
  0x35   : > { %2283 = vmatpush3.bf16.msra.mxu1 %v2429_v54  ;;  %2173 = vmatprep.subr.bf16.mxu0 %v2430_v55 }
  0x36   : > { %2284 = vmatprep.subr.bf16.mxu1 %v2514_v41 }
  0x38   : > { %2174 = vmatpush3.bf16.msra.mxu0 %v2431_v56 }
  0x39   : > { %2285 = vmatpush3.bf16.msra.mxu1 %v2432_v57  ;;  %2175 = vmatprep.subr.bf16.mxu0 %v2433_v58  ;;  %v2452_v57 = vld [vmem:[%s3074_s7 + $0x80] sm:$0xff]  }
  0x3a   : > { %2286 = vmatprep.subr.bf16.mxu1 %v2514_v41 }
  0x3c   : > { %2176 = vmatpush3.bf16.msra.mxu0 %v2434_v59  ;;  %v2455_v59 = vld [vmem:[%s3074_s7 + $0x88] sm:$0xff]  }
  0x3d   : > { %2287 = vmatpush3.bf16.msra.mxu1 %v2435_v60  ;;  %2177 = vmatprep.subr.bf16.mxu0 %v2436_v61  ;;  %v2458_v60 = vld [vmem:[%s3074_s7 + $0x90] sm:$0xff]   ;;  %v2461_v61 = vld [vmem:[%s3074_s7 + $0x98] sm:$0xff]  }
  0x3e   : > { %2288 = vmatprep.subr.bf16.mxu1 %v2514_v41 }
  0x40   : > { %2178 = vmatpush3.bf16.msra.mxu0 %v2437_v62  ;;  %v2464_v62 = vld [vmem:[%s3074_s7 + $0xa0] sm:$0xff]  }
  0x41   : > { %2289 = vmatpush3.bf16.msra.mxu1 %v2438_v63  ;;  %2179 = vmatprep.subr.bf16.mxu0 %v2439_v0  ;;  %v2466_v63 = vld [vmem:[%s3074_s7 + $0x28] sm:$0xff]  }
  0x42   : > { %2290 = vmatprep.subr.bf16.mxu1 %v2514_v41  ;;  %v2467_v0 = vld [vmem:[%s3074_s7 + $0xa8] sm:$0xff]  }
  0x44   : > { %2180 = vmatpush3.bf16.msra.mxu0 %v2440_v1  ;;  %v2468_v1 = vld [vmem:[%s3074_s7 + $0x70] sm:$0xff]  }
  0x45   : > { %2291 = vmatpush3.bf16.msra.mxu1 %v2441_v2  ;;  %2296 = vmatprep.subr.bf16.mxu0 %v2514_v41  ;;  %v2469_v2 = vld [vmem:[%s3074_s7 + $0x30] sm:$0xff]  }
  0x46   : > { %2205 = vmatprep.subr.bf16.mxu1 %v2450_v30  ;;  %v2485_v30 = vld [vmem:[%s3078_s11 + $0x48] sm:$0xff]  }
  0xfa   : > { %v2137_v3 = vpop.f32.mrb[0].mxu0 }
  0xfb   : > { %v2159_v4 = vpop.f32.mrb[0].mxu1  ;;  %v2138_v6 = vpop.f32.mrb[1].mxu0 }
  0xfc   : > { %v2139_v7 = vadd.f32 %v2138_v6, %v2137_v3  ;;  %v2160_v8 = vpop.f32.mrb[1].mxu1  ;;  %v2140_v9 = vpop.f32.mrb[2].mxu0  ;;  %v2470_v3 = vld [vmem:[%s3074_s7 + $0xb0] sm:$0xff]   ;;  %v2473_v6 = vld [vmem:[%s3074_s7 + $0xb8] sm:$0xff]  }
  0xfd   : > { %v2161_v10 = vadd.f32 %v2160_v8, %v2159_v4  ;;  %v2162_v11 = vpop.f32.mrb[2].mxu1  ;;  %v2141_v12 = vpop.f32.mrb[3].mxu0  ;;  %v2471_v4 = vld [vmem:[%s3074_s7 + $0x78] sm:$0xff]  }
  0xfe   : > { %v754_v13 = vadd.f32 %v2139_v7, %v1960_v5  ;;  %v2163_v14 = vpop.f32.mrb[3].mxu1  ;;  %v2472_v5 = vld [vmem:[%s3074_s7 + $0x38] sm:$0xff]   ;;  %v2034_v7 = vld [vmem:[%s3073_s6] ss:$0 sm:$0xff] }
 0x100   : > { %v2798_v15 = vadd.f32 %v2161_v10, %v754_v13 }
 0x102   : > { %v865_v16 = vmax.f32 %v2798_v15, 0.0 }
 0x104   : > { %v867_v17 = vrot.slane %v865_v16, 7  ;;  %v870_v18 = vrot.slane %v865_v16, 1  ;;  %v874_v19 = vpack.c.bf16 %v865_v16, %v865_v16 }
 0x106   : > { %v2029_v21 = vpack.c.bf16 %v867_v17, %v867_v17  ;;  %v2032_v22 = vpack.c.bf16 %v870_v18, %v870_v18  ;;  %1058 = vmatprep.mubr.bf16.mxu0 %v874_v19  ;;  %v2474_v19 = vld [vmem:[%s3076_s9] sm:$0xff]  }
 0x108   : > { %2030 = vmatmul.mubr.msk.bf16.vlgmr.msra.gmra.mrb[4].mxu0 %vm2704_vm4, %v2029_v21  ;;  %2293 = vmatmul.mubr.msk.bf16.vlgmr.msra.gmra.mrb[4].mxu1 %vm2700_vm2, %v2032_v22  ;;  %v2476_v22 = vld [vmem:[%s3076_s9 + $0x10] sm:$0xff]  }
 0x109   : > { %2297 = vmatpush3.bf16.msra.mxu0 %v2442_v20  ;;  %2312 = vmatprep.mubr.msk.bf16.mxu0 %vm2515_vm5, %v2514_v41 }
 0x10a   : > { %2298 = vmatprep.subr.bf16.mxu0 %v2514_v41  ;;  %2206 = vmatpush3.bf16.msra.mxu1 %v2451_v31  ;;  %v2486_v31 = vld [vmem:[%s3078_s11 + $0x8] sm:$0xff]  }
 0x10b   : > { %2207 = vmatprep.subr.bf16.mxu1 %v2453_v32  ;;  %v2488_v32 = vld [vmem:[%s3078_s11 + $0x50] sm:$0xff]  }
 0x10d   : > { %2299 = vmatpush3.bf16.msra.mxu0 %v2443_v23  ;;  %v2477_v23 = vld [vmem:[%s3076_s9 + $0x18] sm:$0xff]  }
 0x10e   : > { %2300 = vmatprep.subr.bf16.mxu0 %v2514_v41  ;;  %2208 = vmatpush3.bf16.msra.mxu1 %v2454_v33  ;;  %v2489_v33 = vld [vmem:[%s3078_s11 + $0x10] sm:$0xff]  }
 0x10f   : > { %2209 = vmatprep.subr.bf16.mxu1 %v2456_v35  ;;  %v2491_v35 = vld [vmem:[%s3078_s11 + $0x58] sm:$0xff]  }
 0x111   : > { %2301 = vmatpush3.bf16.msra.mxu0 %v2444_v24  ;;  %v2478_v24 = vld [vmem:[%s3076_s9 + $0x20] sm:$0xff]  }
 0x112   : > { %2302 = vmatprep.subr.bf16.mxu0 %v2514_v41  ;;  %2210 = vmatpush3.bf16.msra.mxu1 %v2457_v36  ;;  %v2492_v36 = vld [vmem:[%s3078_s11 + $0x18] sm:$0xff]  }
 0x113   : > { %2211 = vmatprep.subr.bf16.mxu1 %v2459_v37  ;;  %v2494_v37 = vld [vmem:[%s3078_s11 + $0x60] sm:$0xff]  }
 0x115   : > { %2303 = vmatpush3.bf16.msra.mxu0 %v2445_v25  ;;  %v2479_v25 = vld [vmem:[%s3076_s9 + $0x28] sm:$0xff]  }
 0x116   : > { %2304 = vmatprep.subr.bf16.mxu0 %v2514_v41  ;;  %2212 = vmatpush3.bf16.msra.mxu1 %v2460_v39  ;;  %v2495_v39 = vld [vmem:[%s3078_s11 + $0x20] sm:$0xff]  }
 0x117   : > { %2213 = vmatprep.subr.bf16.mxu1 %v2462_v40  ;;  %v2497_v40 = vld [vmem:[%s3078_s11 + $0x68] sm:$0xff]  }
 0x119   : > { %2305 = vmatpush3.bf16.msra.mxu0 %v2446_v26  ;;  %v2480_v26 = vld [vmem:[%s3076_s9 + $0x30] sm:$0xff]  }
 0x11a   : > { %2306 = vmatprep.subr.bf16.mxu0 %v2514_v41  ;;  %2214 = vmatpush3.bf16.msra.mxu1 %v2463_v42  ;;  %v2498_v42 = vld [vmem:[%s3078_s11 + $0x28] sm:$0xff]  }
 0x11b   : > { %2215 = vmatprep.subr.bf16.mxu1 %v2465_v43 }
 0x11d   : > { %2307 = vmatpush3.bf16.msra.mxu0 %v2447_v27  ;;  %v2481_v27 = vld [vmem:[%s3076_s9 + $0x38] sm:$0xff]  }
 0x11e   : > { %2308 = vmatprep.subr.bf16.mxu0 %v2514_v41  ;;  %2216 = vmatpush3.bf16.msra.mxu1 %v2466_v63  ;;  %v2500_v63 = vld [vmem:[%s3078_s11 + $0x70] sm:$0xff]  }
 0x11f   : > { %2217 = vmatprep.subr.bf16.mxu1 %v2468_v1  ;;  %v2502_v1 = vld [vmem:[%s3078_s11 + $0xb0] sm:$0xff]  }
 0x121   : > { %2309 = vmatpush3.bf16.msra.mxu0 %v2448_v28  ;;  %v2482_v28 = vld [vmem:[%s3078_s11 + $0x40] sm:$0xff]  }
 0x122   : > { %2310 = vmatprep.subr.bf16.mxu0 %v2514_v41  ;;  %2218 = vmatpush3.bf16.msra.mxu1 %v2469_v2  ;;  %v2503_v2 = vld [vmem:[%s3078_s11 + $0x78] sm:$0xff]  }
 0x123   : > { %2219 = vmatprep.subr.bf16.mxu1 %v2471_v4  ;;  %v2505_v4 = vld [vmem:[%s3078_s11 + $0xb8] sm:$0xff]  }
 0x125   : > { %2311 = vmatpush3.bf16.msra.mxu0 %v2449_v29  ;;  %v2483_v29 = vld [vmem:[%s3078_s11] sm:$0xff]  }
 0x126   : > { %2316 = vmatprep.subr.bf16.mxu0 %v2514_v41  ;;  %2220 = vmatpush3.bf16.msra.mxu1 %v2472_v5  ;;  %v2076_v5 = vld [vmem:[%s3077_s10] ss:$0 sm:$0xff] }
 0x127   : > { %2336 = vmatprep.subr.bf16.mxu1 %v2514_v41 }
 0x1db   : > { %v2181_v44 = vpop.f32.mrb[4].mxu0  ;;  %v1100_v45 = vpop.f32.mrb[4].mxu1 }
 0x1dc   : > { %v2182_v47 = vpop.f32.mrb[5].mxu0  ;;  %v2294_v48 = vpop.f32.mrb[5].mxu1 }
 0x1dd   : > { %v2183_v49 = vadd.f32 %v2182_v47, %v2181_v44  ;;  %v2184_v50 = vpop.f32.mrb[6].mxu0  ;;  %v1103_v51 = vpop.f32.mrb[6].mxu1 }
 0x1de   : > { %v2185_v52 = vpop.f32.mrb[7].mxu0  ;;  %v2295_v53 = vpop.f32.mrb[7].mxu1 }
 0x1df   : > { %v1061_v54 = vadd.f32 %v2183_v49, %v2001_v46 }
 0x1e1   : > { %v1101_v55 = vadd.f32 %v1100_v45, %v1061_v54  ;;  %v2043_v45 = vld [vmem:[%s3075_s8] ss:$0 sm:$0xff] }
 0x1e3   : > { %v1106_v56 = vmax.f32 %v1101_v55, 0.0 }
 0x1e5   : > { %v1107_v58 = vpack.c.bf16 %v1106_v56, %v1106_v56  ;;  %v2484_v56 = vld [vmem:[%s3078_s11 + $0x80] sm:$0xff]  }
 0x1e7   : > { %2313 = vmatmul.mubr.bf16.vlgmr.msra.gmra.mrb[8].mxu0 %v1107_v58  ;;  %v2487_v58 = vld [vmem:[%s3078_s11 + $0x88] sm:$0xff]  }
 0x1e8   : > { %2317 = vmatpush3.bf16.msra.mxu0 %v2452_v57  ;;  %2332 = vmatprep.mubr.msk.bf16.mxu0 %vm2515_vm5, %v2514_v41 }
 0x1e9   : > { %2318 = vmatprep.subr.bf16.mxu0 %v2514_v41 }
 0x1ec   : > { %2319 = vmatpush3.bf16.msra.mxu0 %v2455_v59  ;;  %v2490_v59 = vld [vmem:[%s3078_s11 + $0x90] sm:$0xff]  }
 0x1ed   : > { %2320 = vmatprep.subr.bf16.mxu0 %v2514_v41 }
 0x1f0   : > { %2321 = vmatpush3.bf16.msra.mxu0 %v2458_v60  ;;  %v2493_v60 = vld [vmem:[%s3078_s11 + $0x98] sm:$0xff]  }
 0x1f1   : > { %2322 = vmatprep.subr.bf16.mxu0 %v2514_v41 }
 0x1f4   : > { %2323 = vmatpush3.bf16.msra.mxu0 %v2461_v61  ;;  %v2496_v61 = vld [vmem:[%s3078_s11 + $0xa0] sm:$0xff]  }
 0x1f5   : > { %2324 = vmatprep.subr.bf16.mxu0 %v2514_v41 }
 0x1f8   : > { %2325 = vmatpush3.bf16.msra.mxu0 %v2464_v62  ;;  %v2499_v62 = vld [vmem:[%s3078_s11 + $0xa8] sm:$0xff]  }
 0x1f9   : > { %2326 = vmatprep.subr.bf16.mxu0 %v2514_v41 }
 0x1fc   : > { %2327 = vmatpush3.bf16.msra.mxu0 %v2467_v0  ;;  %v2501_v0 = vld [vmem:[%s3078_s11 + $0x30] sm:$0xff]  }
 0x1fd   : > { %2328 = vmatprep.subr.bf16.mxu0 %v2514_v41 }
 0x200   : > { %2329 = vmatpush3.bf16.msra.mxu0 %v2470_v3  ;;  %v2504_v3 = vld [vmem:[%s3078_s11 + $0x38] sm:$0xff]  }
 0x201   : > { %2330 = vmatprep.subr.bf16.mxu0 %v2514_v41 }
 0x204   : > { %2331 = vmatpush3.bf16.msra.mxu0 %v2473_v6 }
 0x205   : > { %2245 = vmatprep.subr.bf16.mxu0 %v2482_v28 }
 0x2ba   : > { %v1196_v8 = vpop.f32.mrb[8].mxu0 }
 0x2bb   : > { %v1197_v9 = vadd.f32 %v2034_v7, %v1196_v8  ;;  %v2314_v10 = vpop.f32.mrb[9].mxu0 }
 0x2bc   : > { %v1199_v11 = vpop.f32.mrb[10].mxu0 }
 0x2bd   : > { %v2928_v12 = vadd.f32 %v1197_v9, %v2798_v15  ;;  %v2315_v13 = vpop.f32.mrb[11].mxu0  ;;  %v2475_v15 = vld [vmem:[%s3076_s9 + $0x8] sm:$0xff]  }
 0x2bf   : > { %v1269_v14 = vmax.f32 %v2928_v12, 0.0 }
 0x2c1   : > { %v1271_v16 = vrot.slane %v1269_v14, 5  ;;  %v1275_v17 = vrot.slane %v1269_v14, 3  ;;  %v1280_v18 = vpack.c.bf16 %v1269_v14, %v1269_v14 }
 0x2c3   : > { %v2071_v20 = vpack.c.bf16 %v1271_v16, %v1271_v16  ;;  %v2074_v21 = vpack.c.bf16 %v1275_v17, %v1275_v17  ;;  %1464 = vmatprep.mubr.bf16.mxu1 %v1280_v18 }
 0x2c5   : > { %2072 = vmatmul.mubr.msk.bf16.vlgmr.msra.gmra.mrb[8].mxu1 %vm2070_vm9, %v2071_v20  ;;  %2333 = vmatmul.mubr.msk.bf16.vlgmr.msra.gmra.mrb[12].mxu0 %vm2073_vm10, %v2074_v21  ;;  %v2085_v20 = vld [vmem:[%s3079_s12] ss:$0 sm:$0xff] }
 0x2c6   : > { %2337 = vmatpush3.bf16.msra.mxu1 %v2474_v19  ;;  %2352 = vmatprep.mubr.msk.bf16.mxu1 %vm2515_vm5, %v2514_v41 }
 0x2c7   : > { %2338 = vmatprep.subr.bf16.mxu1 %v2514_v41  ;;  %2246 = vmatpush3.bf16.msra.mxu0 %v2483_v29 }
 0x2c8   : > { %2247 = vmatprep.subr.bf16.mxu0 %v2485_v30 }
 0x2ca   : > { %2339 = vmatpush3.bf16.msra.mxu1 %v2475_v15 }
 0x2cb   : > { %2340 = vmatprep.subr.bf16.mxu1 %v2514_v41  ;;  %2248 = vmatpush3.bf16.msra.mxu0 %v2486_v31 }
 0x2cc   : > { %2249 = vmatprep.subr.bf16.mxu0 %v2488_v32 }
 0x2ce   : > { %2341 = vmatpush3.bf16.msra.mxu1 %v2476_v22 }
 0x2cf   : > { %2342 = vmatprep.subr.bf16.mxu1 %v2514_v41  ;;  %2250 = vmatpush3.bf16.msra.mxu0 %v2489_v33 }
 0x2d0   : > { %2251 = vmatprep.subr.bf16.mxu0 %v2491_v35 }
 0x2d2   : > { %2343 = vmatpush3.bf16.msra.mxu1 %v2477_v23 }
 0x2d3   : > { %2344 = vmatprep.subr.bf16.mxu1 %v2514_v41  ;;  %2252 = vmatpush3.bf16.msra.mxu0 %v2492_v36 }
 0x2d4   : > { %2253 = vmatprep.subr.bf16.mxu0 %v2494_v37 }
 0x2d6   : > { %2345 = vmatpush3.bf16.msra.mxu1 %v2478_v24 }
 0x2d7   : > { %2346 = vmatprep.subr.bf16.mxu1 %v2514_v41  ;;  %2254 = vmatpush3.bf16.msra.mxu0 %v2495_v39 }
 0x2d8   : > { %2255 = vmatprep.subr.bf16.mxu0 %v2497_v40 }
 0x2da   : > { %2347 = vmatpush3.bf16.msra.mxu1 %v2479_v25 }
 0x2db   : > { %2348 = vmatprep.subr.bf16.mxu1 %v2514_v41  ;;  %2256 = vmatpush3.bf16.msra.mxu0 %v2498_v42 }
 0x2dc   : > { %2257 = vmatprep.subr.bf16.mxu0 %v2500_v63 }
 0x2de   : > { %2349 = vmatpush3.bf16.msra.mxu1 %v2480_v26 }
 0x2df   : > { %2350 = vmatprep.subr.bf16.mxu1 %v2514_v41  ;;  %2258 = vmatpush3.bf16.msra.mxu0 %v2501_v0 }
 0x2e0   : > { %2259 = vmatprep.subr.bf16.mxu0 %v2503_v2 }
 0x2e2   : > { %2351 = vmatpush3.bf16.msra.mxu1 %v2481_v27 }
 0x2e3   : > { %2356 = vmatprep.subr.bf16.mxu1 %v2514_v41  ;;  %2260 = vmatpush3.bf16.msra.mxu0 %v2504_v3 }
 0x398   : > { %v2221_v43 = vpop.f32.mrb[8].mxu1  ;;  %v1506_v44 = vpop.f32.mrb[12].mxu0 }
 0x399   : > { %v2222_v46 = vpop.f32.mrb[9].mxu1  ;;  %v2334_v47 = vpop.f32.mrb[13].mxu0 }
 0x39a   : > { %v2223_v48 = vadd.f32 %v2222_v46, %v2221_v43  ;;  %v2224_v49 = vpop.f32.mrb[10].mxu1  ;;  %v1509_v50 = vpop.f32.mrb[14].mxu0 }
 0x39b   : > { %v2225_v51 = vpop.f32.mrb[11].mxu1  ;;  %v2335_v52 = vpop.f32.mrb[15].mxu0 }
 0x39c   : > { %v1467_v53 = vadd.f32 %v2223_v48, %v2043_v45 }
 0x39e   : > { %v1507_v54 = vadd.f32 %v1506_v44, %v1467_v53 }
 0x3a0   : > { %v1512_v55 = vmax.f32 %v1507_v54, 0.0 }
 0x3a2   : > { %v1513_v57 = vpack.c.bf16 %v1512_v55, %v1512_v55 }
 0x3a4   : > { %2353 = vmatmul.mubr.bf16.vlgmr.msra.gmra.mrb[12].mxu1 %v1513_v57 }
 0x3a5   : > { %2357 = vmatpush3.bf16.msra.mxu1 %v2484_v56  ;;  %2372 = vmatprep.mubr.msk.bf16.mxu1 %vm2515_vm5, %v2514_v41 }
 0x3a6   : > { %2358 = vmatprep.subr.bf16.mxu1 %v2514_v41 }
 0x3a9   : > { %2359 = vmatpush3.bf16.msra.mxu1 %v2487_v58 }
 0x3aa   : > { %2360 = vmatprep.subr.bf16.mxu1 %v2514_v41 }
 0x3ad   : > { %2361 = vmatpush3.bf16.msra.mxu1 %v2490_v59 }
 0x3ae   : > { %2362 = vmatprep.subr.bf16.mxu1 %v2514_v41 }
 0x3b1   : > { %2363 = vmatpush3.bf16.msra.mxu1 %v2493_v60 }
 0x3b2   : > { %2364 = vmatprep.subr.bf16.mxu1 %v2514_v41 }
 0x3b5   : > { %2365 = vmatpush3.bf16.msra.mxu1 %v2496_v61 }
 0x3b6   : > { %2366 = vmatprep.subr.bf16.mxu1 %v2514_v41 }
 0x3b9   : > { %2367 = vmatpush3.bf16.msra.mxu1 %v2499_v62 }
 0x3ba   : > { %2368 = vmatprep.subr.bf16.mxu1 %v2514_v41 }
 0x3bd   : > { %2369 = vmatpush3.bf16.msra.mxu1 %v2502_v1 }
 0x3be   : > { %2370 = vmatprep.subr.bf16.mxu1 %v2514_v41 }
 0x3c1   : > { %2371 = vmatpush3.bf16.msra.mxu1 %v2505_v4 }
 0x477   : > { %v1602_v6 = vpop.f32.mrb[12].mxu1 }
 0x478   : > { %v1603_v7 = vadd.f32 %v2076_v5, %v1602_v6  ;;  %v2354_v8 = vpop.f32.mrb[13].mxu1 }
 0x479   : > { %v1605_v9 = vpop.f32.mrb[14].mxu1 }
 0x47a   : > { %v1608_v41 = vadd.f32 %v1603_v7, %v2928_v12  ;;  %v2355_v10 = vpop.f32.mrb[15].mxu1 }
 0x47c   : > { %v1659_v11 = vrot.slane %v1608_v41, 7  ;;  %v1662_v13 = vrot.slane %v1608_v41, 1  ;;  %v1666_v14 = vpack.c.bf16 %v1608_v41, %v1608_v41 }
 0x47e   : > { %v2113_v16 = vpack.c.bf16 %v1659_v11, %v1659_v11  ;;  %v2116_v17 = vpack.c.bf16 %v1662_v13, %v1662_v13  ;;  %1850 = vmatprep.mubr.bf16.mxu0 %v1666_v14 }
 0x480   : > { %2114 = vmatmul.mubr.msk.bf16.vlgmr.msra.gmra.mrb[16].mxu0 %vm2704_vm4, %v2113_v16  ;;  %2373 = vmatmul.mubr.msk.bf16.vlgmr.msra.gmra.mrb[16].mxu1 %vm2700_vm2, %v2116_v17 }
 0x553   : > { %v2261_v18 = vpop.f32.mrb[16].mxu0  ;;  %v1892_v19 = vpop.f32.mrb[16].mxu1 }
 0x554   : > { %v2262_v12 = vpop.f32.mrb[17].mxu0  ;;  %v2374_v21 = vpop.f32.mrb[17].mxu1 }
 0x555   : > { %v2263_v15 = vadd.f32 %v2262_v12, %v2261_v18  ;;  %v2264_v22 = vpop.f32.mrb[18].mxu0  ;;  %v1895_v23 = vpop.f32.mrb[18].mxu1 }
 0x556   : > { %v2265_v24 = vpop.f32.mrb[19].mxu0  ;;  %v2375_v25 = vpop.f32.mrb[19].mxu1 }
 0x557   : > { %v1853_v26 = vadd.f32 %v2263_v15, %v2085_v20 }
 0x559   : > { %v1893_v34 = vadd.f32 %v1892_v19, %v1853_v26 }
 0x55b   : > { %1898 = vst [vmem:[%s438_s14] sm:$0xff] %v1893_v34 }
 0x55c PF: > { %s23_s25 = sadd.s32 1, %s2512_s25  }
 0x55d   : > { %p20_p4 = scmp.ge.s32.totalorder %s23_s25, 4  }
 0x55f   :  { %22 = sbr.rel (!%p20_p4) target bundleno = 1 (0x1), region = 102 }

// kernel: _lambda_.9
= control target key start
LH: loop header
LB: loop body
LE: loop exit
PB: predicated region body
PF: predicated region fallthrough
CT: control target
= control target key end

     0   :  { %s2618_s29 = smov 0   ;;  %s3102_s0 = inlined_call_operand.vmem [shape: f32[16,128], index: 0, kind: input, shape index: {}]   ;;  %s3103_s1 = inlined_call_operand.vmem [shape: bf16[384,128], index: 1, kind: input, shape index: {}]   ;;  %s3104_s2 = inlined_call_operand.vmem [shape: f32[1,128], index: 2, kind: input, shape index: {}]   ;;  %s3105_s3 = inlined_call_operand.vmem [shape: bf16[384,128], index: 3, kind: input, shape index: {}]   ;;  %s3106_s4 = inlined_call_operand.vmem [shape: f32[1,128], index: 4, kind: input, shape index: {}]   ;;  %s3107_s5 = inlined_call_operand.vmem [shape: bf16[128,128], index: 5, kind: input, shape index: {}]   ;;  %s3108_s6 = inlined_call_operand.vmem [shape: f32[1,128], index: 6, kind: input, shape index: {}]   ;;  %s3109_s7 = inlined_call_operand.vmem [shape: bf16[384,128], index: 7, kind: input, shape index: {}]   ;;  %s3110_s8 = inlined_call_operand.vmem [shape: f32[1,128], index: 8, kind: input, shape index: {}]   ;;  %s3111_s9 = inlined_call_operand.vmem [shape: bf16[128,128], index: 9, kind: input, shape index: {}]   ;;  %s3112_s10 = inlined_call_operand.vmem [shape: f32[1,128], index: 10, kind: input, shape index: {}]   ;;  %s3113_s11 = inlined_call_operand.vmem [shape: bf16[256,128], index: 11, kind: input, shape index: {}]   ;;  %s3114_s12 = inlined_call_operand.vmem [shape: bf16[256,128], index: 12, kind: input, shape index: {}]   ;;  %s3115_s13 = inlined_call_operand.vmem [shape: f32[1,128], index: 13, kind: input, shape index: {}]   ;;  %s3116_s14 = inlined_call_operand.vmem [shape: f32[16,256], index: 14, kind: output, shape index: {}]  }
   0x1 LB: > { %s1979_s30 = sadd.s32 4294967295, %s2539_s29   ;;  %p1983_p0 = scmp.ge.s32.totalorder %s2539_s29, 1  ;;  %s2539_s29 = sphi %s2618_s29, %s24_s29  }
   0x2   : > { %p411_p1 = scmp.lt.s32.totalorder %s2539_s29, 3 }
   0x4   : > { %p412_p2 = pnand %p1983_p0, %p411_p1 }
   0x5   : > { %v2413_v0 = vld [vmem:[%s3103_s1 + $0x40] sm:$0xff] (!%p412_p2)   ;;  %v2541_v2 = vmov (!%p412_p2), 0.0   ;;  %v2416_v4 = vld [vmem:[%s3103_s1 + $0x48] sm:$0xff] (!%p412_p2)   ;;  %v2419_v7 = vld [vmem:[%s3103_s1 + $0x50] sm:$0xff] (!%p412_p2)   ;;  %vm2542_vm0 = vmmov (!%p412_p2), 0   ;;  %p456_p3 = scmp.lt.s32.totalorder (!%p412_p2), %s1979_s30, 1 }
   0x6   : > { %415 = sbr.rel (%p412_p2) target bundleno = 1372 (0x55c), region = 76  ;;  %v2414_v1 = vld [vmem:[%s3103_s1] sm:$0xff] (!%p412_p2)   ;;  %2303 = vmatprep.subr.bf16.mxu1 (!%p412_p2), %v2541_v2  ;;  %2148 = vmatprep.subr.bf16.mxu0 (!%p412_p2), %v2413_v0  ;;  %v2417_v5 = vld [vmem:[%s3103_s1 + $0x8] sm:$0xff] (!%p412_p2)   ;;  %v2420_v8 = vld [vmem:[%s3103_s1 + $0x10] sm:$0xff] (!%p412_p2)   ;;  %vm519_vm1 = vcmask (!%p412_p2), 1040384   ;;  %vm523_vm3 = vcmask (!%p412_p2), 1046528  }
   0x7   : > { %v2415_v3 = vld [vmem:[%s3103_s1 + $0x80] sm:$0xff] (!%p412_p2)   ;;  %2149 = vmatpush3.bf16.msra.mxu0 (!%p412_p2), %v2414_v1  ;;  %v2418_v6 = vld [vmem:[%s3103_s1 + $0x88] sm:$0xff] (!%p412_p2)   ;;  %2319 = vmatprep.mubr.msk.bf16.mxu1 (!%p412_p2), %vm2542_vm0, %v2541_v2  ;;  %v2421_v9 = vld [vmem:[%s3103_s1 + $0x90] sm:$0xff] (!%p412_p2)   ;;  %vm829_vm6 = vcmask (!%p412_p2), 1042432   ;;  %vm833_vm8 = vcmask (!%p412_p2), 1044480  }
   0x8   : > { %2304 = vmatpush3.bf16.msra.mxu1 (!%p412_p2), %v2415_v3  ;;  %2150 = vmatprep.subr.bf16.mxu0 (!%p412_p2), %v2416_v4  ;;  %v2422_v10 = vld [vmem:[%s3103_s1 + $0x58] sm:$0xff] (!%p412_p2)   ;;  %v2425_v13 = vld [vmem:[%s3103_s1 + $0x60] sm:$0xff] (!%p412_p2)   ;;  %v2428_v16 = vld [vmem:[%s3103_s1 + $0x68] sm:$0xff] (!%p412_p2)  }
   0x9   : > { %2305 = vmatprep.subr.bf16.mxu1 (!%p412_p2), %v2541_v2  ;;  %v2423_v11 = vld [vmem:[%s3103_s1 + $0x18] sm:$0xff] (!%p412_p2)   ;;  %v2426_v14 = vld [vmem:[%s3103_s1 + $0x20] sm:$0xff] (!%p412_p2)   ;;  %v2429_v17 = vld [vmem:[%s3103_s1 + $0x28] sm:$0xff] (!%p412_p2)  }
   0xa   : > { %v2424_v12 = vld [vmem:[%s3103_s1 + $0x98] sm:$0xff] (!%p412_p2)   ;;  %v2427_v15 = vld [vmem:[%s3103_s1 + $0xa0] sm:$0xff] (!%p412_p2)   ;;  %v2430_v18 = vld [vmem:[%s3103_s1 + $0xa8] sm:$0xff] (!%p412_p2)  }
   0xb   : > { %2151 = vmatpush3.bf16.msra.mxu0 (!%p412_p2), %v2417_v5  ;;  %v2431_v19 = vld [vmem:[%s3103_s1 + $0x70] sm:$0xff] (!%p412_p2)   ;;  %v2434_v23 = vld [vmem:[%s3103_s1 + $0x78] sm:$0xff] (!%p412_p2)   ;;  %vm2012_vm2 = vmneg (!%p412_p2), %vm519_vm1 }
   0xc   : > { %2306 = vmatpush3.bf16.msra.mxu1 (!%p412_p2), %v2418_v6  ;;  %2152 = vmatprep.subr.bf16.mxu0 (!%p412_p2), %v2419_v7  ;;  %v2432_v20 = vld [vmem:[%s3103_s1 + $0x30] sm:$0xff] (!%p412_p2)   ;;  %v2435_v25 = vld [vmem:[%s3103_s1 + $0x38] sm:$0xff] (!%p412_p2)   ;;  %vm2717_vm4 = vmpackc.low (!%p412_p2), %vm2012_vm2, %vm2012_vm2 }
   0xd   : > { %2307 = vmatprep.subr.bf16.mxu1 %v2541_v2  ;;  %s3122_s30 = smov (!%p456_p3, %s1979_s30), 1  ;;  %v2433_v21 = vld [vmem:[%s3103_s1 + $0xb0] sm:$0xff]   ;;  %v2436_v27 = vld [vmem:[%s3103_s1 + $0xb8] sm:$0xff]   ;;  %v2437_v30 = vld [vmem:[%s3105_s3 + $0x40] sm:$0xff]  }
   0xe   : > { %s1984_s19 = sshll.u32 %s3122_s30, 3  ;;  %vm2725_vm5 = vmpackc.low %vm523_vm3, %vm523_vm3  ;;  %v2438_v33 = vld [vmem:[%s3105_s3] sm:$0xff]   ;;  %v2440_v36 = vld [vmem:[%s3105_s3 + $0x48] sm:$0xff]   ;;  %s2147_s17 = sshll.u32 %s3122_s30, 4 }
   0xf   : > { %2153 = vmatpush3.bf16.msra.mxu0 %v2420_v8  ;;  %s459_s28 = scalar_lea.vmem %s3102_s0, %s1984_s19  ;;  %v2439_v35 = vld [vmem:[%s3105_s3 + $0x80] sm:$0xff]   ;;  %v2441_v37 = vld [vmem:[%s3105_s3 + $0x8] sm:$0xff]   ;;  %v2443_v39 = vld [vmem:[%s3105_s3 + $0x50] sm:$0xff]   ;;  %s464_s22 = scalar_lea.vmem %s3116_s14, %s2147_s17 }
  0x10   : > { %2308 = vmatpush3.bf16.msra.mxu1 %v2421_v9  ;;  %2154 = vmatprep.subr.bf16.mxu0 %v2422_v10  ;;  %v466_v22 = vld [vmem:[%s459_s28] sm:$0xff]  ;;  %v2442_v38 = vld [vmem:[%s3105_s3 + $0x88] sm:$0xff]   ;;  %v2444_v40 = vld [vmem:[%s3105_s3 + $0x10] sm:$0xff]  }
  0x11   : > { %2309 = vmatprep.subr.bf16.mxu1 %v2541_v2  ;;  %v526_v24 = vpack.c.bf16 %v466_v22, %v466_v22  ;;  %v517_v26 = vrot.slane %v466_v22, 7  ;;  %v521_v28 = vrot.slane %v466_v22, 1  ;;  %v2445_v41 = vld [vmem:[%s3105_s3 + $0x90] sm:$0xff]   ;;  %v2446_v42 = vld [vmem:[%s3105_s3 + $0x58] sm:$0xff]   ;;  %v2449_v45 = vld [vmem:[%s3105_s3 + $0x60] sm:$0xff]  }
  0x12   : > { %v2447_v43 = vld [vmem:[%s3105_s3 + $0x18] sm:$0xff]   ;;  %v2450_v46 = vld [vmem:[%s3105_s3 + $0x20] sm:$0xff]   ;;  %v2452_v48 = vld [vmem:[%s3105_s3 + $0x68] sm:$0xff]  }
  0x13   : > { %2155 = vmatpush3.bf16.msra.mxu0 %v2423_v11  ;;  %710 = vmatprep.mubr.bf16.mxu0 %v526_v24  ;;  %v2015_v32 = vpack.c.bf16 %v517_v26, %v517_v26  ;;  %v2018_v34 = vpack.c.bf16 %v521_v28, %v521_v28  ;;  %v2448_v44 = vld [vmem:[%s3105_s3 + $0x98] sm:$0xff]   ;;  %v2451_v47 = vld [vmem:[%s3105_s3 + $0xa0] sm:$0xff]   ;;  %v2453_v49 = vld [vmem:[%s3105_s3 + $0x28] sm:$0xff]  }
  0x14   : > { %2310 = vmatpush3.bf16.msra.mxu1 %v2424_v12  ;;  %2156 = vmatprep.subr.bf16.mxu0 %v2425_v13  ;;  %v2454_v50 = vld [vmem:[%s3105_s3 + $0xa8] sm:$0xff]   ;;  %v2455_v51 = vld [vmem:[%s3105_s3 + $0x70] sm:$0xff]   ;;  %v2458_v54 = vld [vmem:[%s3105_s3 + $0x78] sm:$0xff]  }
  0x15   : > { %2311 = vmatprep.subr.bf16.mxu1 %v2541_v2  ;;  %v2456_v52 = vld [vmem:[%s3105_s3 + $0x30] sm:$0xff]   ;;  %v2459_v55 = vld [vmem:[%s3105_s3 + $0x38] sm:$0xff]   ;;  %v1987_v59 = vld [vmem:[%s3104_s2] ss:$0 sm:$0xff] }
  0x16   : > { %v2457_v53 = vld [vmem:[%s3105_s3 + $0xb0] sm:$0xff]   ;;  %v2460_v56 = vld [vmem:[%s3105_s3 + $0xb8] sm:$0xff]   ;;  %vm2045_vm7 = vmneg %vm829_vm6 }
  0x17   : > { %2157 = vmatpush3.bf16.msra.mxu0 %v2426_v14  ;;  %vm2047_vm9 = vmpackc.low %vm2045_vm7, %vm2045_vm7  ;;  %v2461_v11 = vld [vmem:[%s3107_s5] sm:$0xff]   ;;  %v2462_v14 = vld [vmem:[%s3107_s5 + $0x8] sm:$0xff]  }
  0x18   : > { %2312 = vmatpush3.bf16.msra.mxu1 %v2427_v15  ;;  %2158 = vmatprep.subr.bf16.mxu0 %v2428_v16  ;;  %vm2050_vm10 = vmpackc.low %vm833_vm8, %vm833_vm8  ;;  %v2463_v15 = vld [vmem:[%s3107_s5 + $0x10] sm:$0xff]   ;;  %v2464_v16 = vld [vmem:[%s3107_s5 + $0x18] sm:$0xff]  }
  0x19   : > { %2313 = vmatprep.subr.bf16.mxu1 %v2541_v2  ;;  %v2470_v22 = vld [vmem:[%s3109_s7] sm:$0xff]   ;;  %v2473_v24 = vld [vmem:[%s3109_s7 + $0x8] sm:$0xff]   ;;  %v2476_v26 = vld [vmem:[%s3109_s7 + $0x10] sm:$0xff]  }
  0x1a   : > { %v2479_v28 = vld [vmem:[%s3109_s7 + $0x18] sm:$0xff]  }
  0x1b   : > { %2159 = vmatpush3.bf16.msra.mxu0 %v2429_v17  ;;  %v2465_v17 = vld [vmem:[%s3107_s5 + $0x20] sm:$0xff]  }
  0x1c   : > { %2314 = vmatpush3.bf16.msra.mxu1 %v2430_v18  ;;  %2160 = vmatprep.subr.bf16.mxu0 %v2431_v19  ;;  %v2466_v18 = vld [vmem:[%s3107_s5 + $0x28] sm:$0xff]   ;;  %v2467_v19 = vld [vmem:[%s3107_s5 + $0x30] sm:$0xff]  }
  0x1d   : > { %2315 = vmatprep.subr.bf16.mxu1 %v2541_v2 }
  0x1f   : > { %2161 = vmatpush3.bf16.msra.mxu0 %v2432_v20  ;;  %v2468_v20 = vld [vmem:[%s3107_s5 + $0x38] sm:$0xff]  }
  0x20   : > { %2316 = vmatpush3.bf16.msra.mxu1 %v2433_v21  ;;  %2162 = vmatprep.subr.bf16.mxu0 %v2434_v23  ;;  %v2469_v21 = vld [vmem:[%s3109_s7 + $0x40] sm:$0xff]   ;;  %v2472_v23 = vld [vmem:[%s3109_s7 + $0x48] sm:$0xff]  }
  0x21   : > { %2317 = vmatprep.subr.bf16.mxu1 %v2541_v2 }
  0x23   : > { %2163 = vmatpush3.bf16.msra.mxu0 %v2435_v25  ;;  %v2475_v25 = vld [vmem:[%s3109_s7 + $0x50] sm:$0xff]  }
  0x24   : > { %2318 = vmatpush3.bf16.msra.mxu1 %v2436_v27  ;;  %2179 = vmatprep.subr.bf16.mxu0 %v2437_v30  ;;  %v2478_v27 = vld [vmem:[%s3109_s7 + $0x58] sm:$0xff]   ;;  %v2481_v30 = vld [vmem:[%s3109_s7 + $0x60] sm:$0xff]  }
  0x25   : > { %2323 = vmatprep.subr.bf16.mxu1 %v2541_v2 }
  0x26   : > { %2016 = vmatmul.mubr.msk.bf16.vlgmr.msra.gmra.mrb[0].mxu0 %vm2717_vm4, %v2015_v32  ;;  %v2482_v32 = vld [vmem:[%s3109_s7 + $0x20] sm:$0xff]  }
  0x27   : > { %2320 = vmatmul.mubr.msk.bf16.vlgmr.msra.gmra.mrb[0].mxu1 %vm2725_vm5, %v2018_v34  ;;  %2180 = vmatpush3.bf16.msra.mxu0 %v2438_v33  ;;  %v2484_v33 = vld [vmem:[%s3109_s7 + $0x68] sm:$0xff]  }
  0x28   : > { %2324 = vmatpush3.bf16.msra.mxu1 %v2439_v35  ;;  %2181 = vmatprep.subr.bf16.mxu0 %v2440_v36  ;;  %v2020_v36 = vld [vmem:[%s3106_s4] ss:$0 sm:$0xff] }
  0x29   : > { %2325 = vmatprep.subr.bf16.mxu1 %v2541_v2  ;;  %2339 = vmatprep.mubr.msk.bf16.mxu1 %vm2542_vm0, %v2541_v2 }
  0x2b   : > { %2182 = vmatpush3.bf16.msra.mxu0 %v2441_v37 }
  0x2c   : > { %2326 = vmatpush3.bf16.msra.mxu1 %v2442_v38  ;;  %2183 = vmatprep.subr.bf16.mxu0 %v2443_v39 }
  0x2d   : > { %2327 = vmatprep.subr.bf16.mxu1 %v2541_v2 }
  0x2f   : > { %2184 = vmatpush3.bf16.msra.mxu0 %v2444_v40 }
  0x30   : > { %2328 = vmatpush3.bf16.msra.mxu1 %v2445_v41  ;;  %2185 = vmatprep.subr.bf16.mxu0 %v2446_v42 }
  0x31   : > { %2329 = vmatprep.subr.bf16.mxu1 %v2541_v2 }
  0x33   : > { %2186 = vmatpush3.bf16.msra.mxu0 %v2447_v43 }
  0x34   : > { %2330 = vmatpush3.bf16.msra.mxu1 %v2448_v44  ;;  %2187 = vmatprep.subr.bf16.mxu0 %v2449_v45 }
  0x35   : > { %2331 = vmatprep.subr.bf16.mxu1 %v2541_v2 }
  0x37   : > { %2188 = vmatpush3.bf16.msra.mxu0 %v2450_v46 }
  0x38   : > { %2332 = vmatpush3.bf16.msra.mxu1 %v2451_v47  ;;  %2189 = vmatprep.subr.bf16.mxu0 %v2452_v48  ;;  %v2471_v47 = vld [vmem:[%s3109_s7 + $0x80] sm:$0xff]  }
  0x39   : > { %2333 = vmatprep.subr.bf16.mxu1 %v2541_v2 }
  0x3b   : > { %2190 = vmatpush3.bf16.msra.mxu0 %v2453_v49  ;;  %v2474_v49 = vld [vmem:[%s3109_s7 + $0x88] sm:$0xff]  }
  0x3c   : > { %2334 = vmatpush3.bf16.msra.mxu1 %v2454_v50  ;;  %2191 = vmatprep.subr.bf16.mxu0 %v2455_v51  ;;  %v2477_v50 = vld [vmem:[%s3109_s7 + $0x90] sm:$0xff]   ;;  %v2480_v51 = vld [vmem:[%s3109_s7 + $0x98] sm:$0xff]  }
  0x3d   : > { %2335 = vmatprep.subr.bf16.mxu1 %v2541_v2 }
  0x3f   : > { %2192 = vmatpush3.bf16.msra.mxu0 %v2456_v52  ;;  %v2483_v52 = vld [vmem:[%s3109_s7 + $0xa0] sm:$0xff]  }
  0x40   : > { %2336 = vmatpush3.bf16.msra.mxu1 %v2457_v53  ;;  %2193 = vmatprep.subr.bf16.mxu0 %v2458_v54  ;;  %v2485_v53 = vld [vmem:[%s3109_s7 + $0x28] sm:$0xff]  }
  0x41   : > { %2337 = vmatprep.subr.bf16.mxu1 %v2541_v2  ;;  %v2486_v54 = vld [vmem:[%s3109_s7 + $0xa8] sm:$0xff]  }
  0x43   : > { %2194 = vmatpush3.bf16.msra.mxu0 %v2459_v55  ;;  %v2487_v55 = vld [vmem:[%s3109_s7 + $0x70] sm:$0xff]  }
  0x44   : > { %2338 = vmatpush3.bf16.msra.mxu1 %v2460_v56  ;;  %2343 = vmatprep.subr.bf16.mxu0 %v2541_v2  ;;  %v2488_v56 = vld [vmem:[%s3109_s7 + $0x30] sm:$0xff]  }
  0x45   : > { %2219 = vmatprep.subr.bf16.mxu1 %v2469_v21  ;;  %v2503_v21 = vld [vmem:[%s3114_s12 + $0x40] sm:$0xff]  }
  0xf9   : > { %v2164_v57 = vpop.f32.mrb[0].mxu0 }
  0xfa   : > { %v2165_v58 = vpop.f32.mrb[1].mxu0  ;;  %v752_v60 = vpop.f32.mrb[0].mxu1 }
  0xfb   : > { %v2166_v61 = vadd.f32 %v2165_v58, %v2164_v57  ;;  %v2167_v62 = vpop.f32.mrb[2].mxu0  ;;  %v2321_v63 = vpop.f32.mrb[1].mxu1  ;;  %v2489_v57 = vld [vmem:[%s3109_s7 + $0xb0] sm:$0xff]   ;;  %v2490_v58 = vld [vmem:[%s3109_s7 + $0x78] sm:$0xff]  }
  0xfc   : > { %v2168_v0 = vpop.f32.mrb[3].mxu0  ;;  %v755_v1 = vpop.f32.mrb[2].mxu1 }
  0xfd   : > { %v713_v3 = vadd.f32 %v2166_v61, %v1987_v59  ;;  %v2322_v4 = vpop.f32.mrb[3].mxu1  ;;  %v2491_v59 = vld [vmem:[%s3109_s7 + $0x38] sm:$0xff]   ;;  %v2053_v61 = vld [vmem:[%s3108_s6] ss:$0 sm:$0xff] }
  0xff   : > { %v2816_v5 = vadd.f32 %v752_v60, %v713_v3  ;;  %v2492_v60 = vld [vmem:[%s3109_s7 + $0xb8] sm:$0xff]  }
 0x101   : > { %v758_v6 = vmax.f32 %v2816_v5, 0.0  ;;  %v2494_v5 = vld [vmem:[%s3111_s9 + $0x8] sm:$0xff]  }
 0x103   : > { %v825_v7 = vmax.f32 %v758_v6, 0.0 }
 0x105   : > { %v827_v8 = vrot.slane %v825_v7, 5  ;;  %v831_v9 = vrot.slane %v825_v7, 3  ;;  %v836_v10 = vpack.c.bf16 %v825_v7, %v825_v7 }
 0x107   : > { %v2048_v12 = vpack.c.bf16 %v827_v8, %v827_v8  ;;  %v2051_v13 = vpack.c.bf16 %v831_v9, %v831_v9  ;;  %1020 = vmatprep.mubr.bf16.mxu0 %v836_v10 }
 0x109   : > { %2049 = vmatmul.mubr.msk.bf16.vlgmr.msra.gmra.mrb[4].mxu0 %vm2047_vm9, %v2048_v12  ;;  %2340 = vmatmul.mubr.msk.bf16.vlgmr.msra.gmra.mrb[4].mxu1 %vm2050_vm10, %v2051_v13 }
 0x10a   : > { %2344 = vmatpush3.bf16.msra.mxu0 %v2461_v11  ;;  %2359 = vmatprep.mubr.msk.bf16.mxu0 %vm2542_vm0, %v2541_v2  ;;  %v2493_v11 = vld [vmem:[%s3111_s9] sm:$0xff]  }
 0x10b   : > { %2345 = vmatprep.subr.bf16.mxu0 %v2541_v2  ;;  %2220 = vmatpush3.bf16.msra.mxu1 %v2470_v22  ;;  %v2506_v22 = vld [vmem:[%s3113_s11 + $0x8] sm:$0xff]  }
 0x10c   : > { %2221 = vmatprep.subr.bf16.mxu1 %v2472_v23  ;;  %v2509_v23 = vld [vmem:[%s3113_s11 + $0x50] sm:$0xff]  }
 0x10e   : > { %2346 = vmatpush3.bf16.msra.mxu0 %v2462_v14  ;;  %v2496_v14 = vld [vmem:[%s3111_s9 + $0x18] sm:$0xff]  }
 0x10f   : > { %2347 = vmatprep.subr.bf16.mxu0 %v2541_v2  ;;  %2222 = vmatpush3.bf16.msra.mxu1 %v2473_v24  ;;  %v2510_v24 = vld [vmem:[%s3113_s11 + $0x10] sm:$0xff]  }
 0x110   : > { %2223 = vmatprep.subr.bf16.mxu1 %v2475_v25  ;;  %v2513_v25 = vld [vmem:[%s3113_s11 + $0x58] sm:$0xff]  }
 0x112   : > { %2348 = vmatpush3.bf16.msra.mxu0 %v2463_v15  ;;  %v2497_v15 = vld [vmem:[%s3111_s9 + $0x20] sm:$0xff]  }
 0x113   : > { %2349 = vmatprep.subr.bf16.mxu0 %v2541_v2  ;;  %2224 = vmatpush3.bf16.msra.mxu1 %v2476_v26  ;;  %v2514_v26 = vld [vmem:[%s3113_s11 + $0x18] sm:$0xff]  }
 0x114   : > { %2225 = vmatprep.subr.bf16.mxu1 %v2478_v27  ;;  %v2517_v27 = vld [vmem:[%s3113_s11 + $0x60] sm:$0xff]  }
 0x116   : > { %2350 = vmatpush3.bf16.msra.mxu0 %v2464_v16  ;;  %v2498_v16 = vld [vmem:[%s3111_s9 + $0x28] sm:$0xff]  }
 0x117   : > { %2351 = vmatprep.subr.bf16.mxu0 %v2541_v2  ;;  %2226 = vmatpush3.bf16.msra.mxu1 %v2479_v28  ;;  %v2518_v28 = vld [vmem:[%s3113_s11 + $0x20] sm:$0xff]  }
 0x118   : > { %2227 = vmatprep.subr.bf16.mxu1 %v2481_v30  ;;  %v2521_v30 = vld [vmem:[%s3113_s11 + $0x68] sm:$0xff]  }
 0x11a   : > { %2352 = vmatpush3.bf16.msra.mxu0 %v2465_v17  ;;  %v2499_v17 = vld [vmem:[%s3111_s9 + $0x30] sm:$0xff]  }
 0x11b   : > { %2353 = vmatprep.subr.bf16.mxu0 %v2541_v2  ;;  %2228 = vmatpush3.bf16.msra.mxu1 %v2482_v32  ;;  %v2522_v32 = vld [vmem:[%s3113_s11 + $0x28] sm:$0xff]  }
 0x11c   : > { %2229 = vmatprep.subr.bf16.mxu1 %v2484_v33 }
 0x11e   : > { %2354 = vmatpush3.bf16.msra.mxu0 %v2466_v18  ;;  %v2500_v18 = vld [vmem:[%s3111_s9 + $0x38] sm:$0xff]  }
 0x11f   : > { %2355 = vmatprep.subr.bf16.mxu0 %v2541_v2  ;;  %2230 = vmatpush3.bf16.msra.mxu1 %v2485_v53  ;;  %v2516_v53 = vld [vmem:[%s3114_s12 + $0x18] sm:$0xff]  }
 0x120   : > { %2231 = vmatprep.subr.bf16.mxu1 %v2487_v55  ;;  %v2520_v55 = vld [vmem:[%s3114_s12 + $0x20] sm:$0xff]  }
 0x122   : > { %2356 = vmatpush3.bf16.msra.mxu0 %v2467_v19  ;;  %v2501_v19 = vld [vmem:[%s3113_s11 + $0x40] sm:$0xff]  }
 0x123   : > { %2357 = vmatprep.subr.bf16.mxu0 %v2541_v2  ;;  %2232 = vmatpush3.bf16.msra.mxu1 %v2488_v56  ;;  %v2523_v56 = vld [vmem:[%s3114_s12 + $0x68] sm:$0xff]  }
 0x124   : > { %2233 = vmatprep.subr.bf16.mxu1 %v2490_v58  ;;  %v2525_v58 = vld [vmem:[%s3113_s11 + $0x70] sm:$0xff]  }
 0x126   : > { %2358 = vmatpush3.bf16.msra.mxu0 %v2468_v20  ;;  %v2502_v20 = vld [vmem:[%s3113_s11] sm:$0xff]  }
 0x127   : > { %2363 = vmatprep.subr.bf16.mxu0 %v2541_v2  ;;  %2234 = vmatpush3.bf16.msra.mxu1 %v2491_v59  ;;  %v2526_v59 = vld [vmem:[%s3113_s11 + $0x30] sm:$0xff]  }
 0x128   : > { %2383 = vmatprep.subr.bf16.mxu1 %v2541_v2 }
 0x1dc   : > { %v2195_v34 = vpop.f32.mrb[4].mxu0  ;;  %v1062_v35 = vpop.f32.mrb[4].mxu1 }
 0x1dd   : > { %v2196_v37 = vpop.f32.mrb[5].mxu0  ;;  %v2341_v38 = vpop.f32.mrb[5].mxu1 }
 0x1de   : > { %v2197_v39 = vadd.f32 %v2196_v37, %v2195_v34  ;;  %v2198_v40 = vpop.f32.mrb[6].mxu0  ;;  %v1065_v41 = vpop.f32.mrb[6].mxu1 }
 0x1df   : > { %v2199_v42 = vpop.f32.mrb[7].mxu0  ;;  %v2342_v43 = vpop.f32.mrb[7].mxu1 }
 0x1e0   : > { %v1023_v44 = vadd.f32 %v2197_v39, %v2020_v36 }
 0x1e2   : > { %v1063_v45 = vadd.f32 %v1062_v35, %v1023_v44  ;;  %v2062_v35 = vld [vmem:[%s3110_s8] ss:$0 sm:$0xff] }
 0x1e4   : > { %v1068_v46 = vmax.f32 %v1063_v45, 0.0 }
 0x1e6   : > { %v1069_v48 = vpack.c.bf16 %v1068_v46, %v1068_v46  ;;  %v2504_v46 = vld [vmem:[%s3114_s12] sm:$0xff]  }
 0x1e8   : > { %2360 = vmatmul.mubr.bf16.vlgmr.msra.gmra.mrb[8].mxu0 %v1069_v48  ;;  %v2507_v48 = vld [vmem:[%s3114_s12 + $0x48] sm:$0xff]  }
 0x1e9   : > { %2364 = vmatpush3.bf16.msra.mxu0 %v2471_v47  ;;  %2379 = vmatprep.mubr.msk.bf16.mxu0 %vm2542_vm0, %v2541_v2 }
 0x1ea   : > { %2365 = vmatprep.subr.bf16.mxu0 %v2541_v2 }
 0x1ed   : > { %2366 = vmatpush3.bf16.msra.mxu0 %v2474_v49  ;;  %v2508_v49 = vld [vmem:[%s3114_s12 + $0x8] sm:$0xff]  }
 0x1ee   : > { %2367 = vmatprep.subr.bf16.mxu0 %v2541_v2 }
 0x1f1   : > { %2368 = vmatpush3.bf16.msra.mxu0 %v2477_v50  ;;  %v2511_v50 = vld [vmem:[%s3114_s12 + $0x50] sm:$0xff]  }
 0x1f2   : > { %2369 = vmatprep.subr.bf16.mxu0 %v2541_v2 }
 0x1f5   : > { %2370 = vmatpush3.bf16.msra.mxu0 %v2480_v51  ;;  %v2512_v51 = vld [vmem:[%s3114_s12 + $0x10] sm:$0xff]  }
 0x1f6   : > { %2371 = vmatprep.subr.bf16.mxu0 %v2541_v2 }
 0x1f9   : > { %2372 = vmatpush3.bf16.msra.mxu0 %v2483_v52  ;;  %v2515_v52 = vld [vmem:[%s3114_s12 + $0x58] sm:$0xff]  }
 0x1fa   : > { %2373 = vmatprep.subr.bf16.mxu0 %v2541_v2 }
 0x1fd   : > { %2374 = vmatpush3.bf16.msra.mxu0 %v2486_v54  ;;  %v2519_v54 = vld [vmem:[%s3114_s12 + $0x60] sm:$0xff]  }
 0x1fe   : > { %2375 = vmatprep.subr.bf16.mxu0 %v2541_v2 }
 0x201   : > { %2376 = vmatpush3.bf16.msra.mxu0 %v2489_v57  ;;  %v2524_v57 = vld [vmem:[%s3114_s12 + $0x28] sm:$0xff]  }
 0x202   : > { %2377 = vmatprep.subr.bf16.mxu0 %v2541_v2 }
 0x205   : > { %2378 = vmatpush3.bf16.msra.mxu0 %v2492_v60  ;;  %v2527_v60 = vld [vmem:[%s3114_s12 + $0x70] sm:$0xff]  }
 0x206   : > { %2259 = vmatprep.subr.bf16.mxu0 %v2501_v19 }
 0x2bb   : > { %v1158_v62 = vpop.f32.mrb[8].mxu0 }
 0x2bc   : > { %v1159_v63 = vadd.f32 %v2053_v61, %v1158_v62  ;;  %v2361_v0 = vpop.f32.mrb[9].mxu0  ;;  %v2528_v61 = vld [vmem:[%s3114_s12 + $0x30] sm:$0xff]   ;;  %v2529_v62 = vld [vmem:[%s3113_s11 + $0x78] sm:$0xff]  }
 0x2bd   : > { %v1161_v1 = vpop.f32.mrb[10].mxu0  ;;  %v2531_v0 = vld [vmem:[%s3114_s12 + $0x78] sm:$0xff]  }
 0x2be   : > { %v2945_v3 = vadd.f32 %v1159_v63, %v758_v6  ;;  %v2362_v4 = vpop.f32.mrb[11].mxu0  ;;  %v2495_v6 = vld [vmem:[%s3111_s9 + $0x10] sm:$0xff]   ;;  %v2530_v63 = vld [vmem:[%s3113_s11 + $0x38] sm:$0xff]  }
 0x2bf   : > { %v2532_v1 = vld [vmem:[%s3114_s12 + $0x38] sm:$0xff]   ;;  %v2095_v4 = vld [vmem:[%s3112_s10] ss:$0 sm:$0xff] }
 0x2c0   : > { %v1231_v7 = vmax.f32 %v2945_v3, 0.0 }
 0x2c2   : > { %v1233_v8 = vrot.slane %v1231_v7, 7  ;;  %v1236_v9 = vrot.slane %v1231_v7, 1  ;;  %v1240_v10 = vpack.c.bf16 %v1231_v7, %v1231_v7 }
 0x2c4   : > { %v2090_v12 = vpack.c.bf16 %v1233_v8, %v1233_v8  ;;  %v2093_v13 = vpack.c.bf16 %v1236_v9, %v1236_v9  ;;  %1424 = vmatprep.mubr.bf16.mxu1 %v1240_v10 }
 0x2c6   : > { %2091 = vmatmul.mubr.msk.bf16.vlgmr.msra.gmra.mrb[8].mxu1 %vm2717_vm4, %v2090_v12  ;;  %2380 = vmatmul.mubr.msk.bf16.vlgmr.msra.gmra.mrb[12].mxu0 %vm2725_vm5, %v2093_v13 }
 0x2c7   : > { %2384 = vmatpush3.bf16.msra.mxu1 %v2493_v11  ;;  %2399 = vmatprep.mubr.msk.bf16.mxu1 %vm2542_vm0, %v2541_v2 }
 0x2c8   : > { %2385 = vmatprep.subr.bf16.mxu1 %v2541_v2  ;;  %2260 = vmatpush3.bf16.msra.mxu0 %v2502_v20 }
 0x2cb   : > { %2386 = vmatpush3.bf16.msra.mxu1 %v2494_v5 }
 0x2cc   : > { %2387 = vmatprep.subr.bf16.mxu1 %v2541_v2 }
 0x2cf   : > { %2388 = vmatpush3.bf16.msra.mxu1 %v2495_v6 }
 0x2d0   : > { %2389 = vmatprep.subr.bf16.mxu1 %v2541_v2 }
 0x2d3   : > { %2390 = vmatpush3.bf16.msra.mxu1 %v2496_v14 }
 0x2d4   : > { %2391 = vmatprep.subr.bf16.mxu1 %v2541_v2 }
 0x2d7   : > { %2392 = vmatpush3.bf16.msra.mxu1 %v2497_v15 }
 0x2d8   : > { %2393 = vmatprep.subr.bf16.mxu1 %v2541_v2 }
 0x2db   : > { %2394 = vmatpush3.bf16.msra.mxu1 %v2498_v16 }
 0x2dc   : > { %2395 = vmatprep.subr.bf16.mxu1 %v2541_v2 }
 0x2df   : > { %2396 = vmatpush3.bf16.msra.mxu1 %v2499_v17 }
 0x2e0   : > { %2397 = vmatprep.subr.bf16.mxu1 %v2541_v2  ;;  %v2505_v2 = vld [vmem:[%s3113_s11 + $0x48] sm:$0xff]  }
 0x2e1   : > { %2261 = vmatprep.subr.bf16.mxu0 %v2505_v2 }
 0x2e2   : > { %2262 = vmatpush3.bf16.msra.mxu0 %v2506_v22 }
 0x2e3   : > { %2398 = vmatpush3.bf16.msra.mxu1 %v2500_v18  ;;  %2263 = vmatprep.subr.bf16.mxu0 %v2509_v23 }
 0x2e4   : > { %2281 = vmatprep.subr.bf16.mxu1 %v2503_v21 }
 0x2e6   : > { %2264 = vmatpush3.bf16.msra.mxu0 %v2510_v24 }
 0x2e7   : > { %2265 = vmatprep.subr.bf16.mxu0 %v2513_v25 }
 0x2ea   : > { %2266 = vmatpush3.bf16.msra.mxu0 %v2514_v26 }
 0x2eb   : > { %2267 = vmatprep.subr.bf16.mxu0 %v2517_v27 }
 0x2ee   : > { %2268 = vmatpush3.bf16.msra.mxu0 %v2518_v28 }
 0x2ef   : > { %2269 = vmatprep.subr.bf16.mxu0 %v2521_v30 }
 0x2f2   : > { %2270 = vmatpush3.bf16.msra.mxu0 %v2522_v32 }
 0x2f3   : > { %2271 = vmatprep.subr.bf16.mxu0 %v2525_v58 }
 0x2f6   : > { %2272 = vmatpush3.bf16.msra.mxu0 %v2526_v59 }
 0x2f7   : > { %2273 = vmatprep.subr.bf16.mxu0 %v2529_v62 }
 0x2fa   : > { %2274 = vmatpush3.bf16.msra.mxu0 %v2530_v63 }
 0x399   : > { %v2235_v33 = vpop.f32.mrb[8].mxu1  ;;  %v1466_v34 = vpop.f32.mrb[12].mxu0 }
 0x39a   : > { %v2236_v36 = vpop.f32.mrb[9].mxu1  ;;  %v2381_v37 = vpop.f32.mrb[13].mxu0 }
 0x39b   : > { %v2237_v38 = vadd.f32 %v2236_v36, %v2235_v33  ;;  %v2238_v39 = vpop.f32.mrb[10].mxu1  ;;  %v1469_v40 = vpop.f32.mrb[14].mxu0 }
 0x39c   : > { %v2239_v41 = vpop.f32.mrb[11].mxu1  ;;  %v2382_v42 = vpop.f32.mrb[15].mxu0 }
 0x39d   : > { %v1427_v43 = vadd.f32 %v2237_v38, %v2062_v35 }
 0x39f   : > { %v1467_v44 = vadd.f32 %v1466_v34, %v1427_v43 }
 0x3a1   : > { %v1472_v45 = vmax.f32 %v1467_v44, 0.0 }
 0x3a3   : > { %v1473_v47 = vpack.c.bf16 %v1472_v45, %v1472_v45 }
 0x3a5   : > { %2400 = vmatmul.mubr.bf16.vlgmr.msra.gmra.mrb[12].mxu1 %v1473_v47 }
 0x3a6   : > { %2282 = vmatpush3.bf16.msra.mxu1 %v2504_v46 }
 0x3a7   : > { %2283 = vmatprep.subr.bf16.mxu1 %v2507_v48 }
 0x3aa   : > { %2284 = vmatpush3.bf16.msra.mxu1 %v2508_v49 }
 0x3ab   : > { %2285 = vmatprep.subr.bf16.mxu1 %v2511_v50 }
 0x3ae   : > { %2286 = vmatpush3.bf16.msra.mxu1 %v2512_v51 }
 0x3af   : > { %2287 = vmatprep.subr.bf16.mxu1 %v2515_v52 }
 0x3b2   : > { %2288 = vmatpush3.bf16.msra.mxu1 %v2516_v53 }
 0x3b3   : > { %2289 = vmatprep.subr.bf16.mxu1 %v2519_v54 }
 0x3b6   : > { %2290 = vmatpush3.bf16.msra.mxu1 %v2520_v55 }
 0x3b7   : > { %2291 = vmatprep.subr.bf16.mxu1 %v2523_v56 }
 0x3ba   : > { %2292 = vmatpush3.bf16.msra.mxu1 %v2524_v57 }
 0x3bb   : > { %2293 = vmatprep.subr.bf16.mxu1 %v2527_v60 }
 0x3be   : > { %2294 = vmatpush3.bf16.msra.mxu1 %v2528_v61 }
 0x3bf   : > { %2295 = vmatprep.subr.bf16.mxu1 %v2531_v0 }
 0x3c2   : > { %2296 = vmatpush3.bf16.msra.mxu1 %v2532_v1 }
 0x478   : > { %v1562_v7 = vpop.f32.mrb[12].mxu1 }
 0x479   : > { %v1563_v8 = vadd.f32 %v2095_v4, %v1562_v7  ;;  %v2401_v9 = vpop.f32.mrb[13].mxu1 }
 0x47a   : > { %v1565_v10 = vpop.f32.mrb[14].mxu1 }
 0x47b   : > { %v1568_v11 = vadd.f32 %v1563_v8, %v2945_v3  ;;  %v2402_v12 = vpop.f32.mrb[15].mxu1  ;;  %v2104_v3 = vld [vmem:[%s3115_s13] ss:$0 sm:$0xff] }
 0x47d   : > { %v1571_v13 = vrot.slane %v1568_v11, 7  ;;  %v1574_v5 = vrot.slane %v1568_v11, 1  ;;  %v1610_v6 = vpack.c.bf16 %v1568_v11, %v1568_v11 }
 0x47f   : > { %v2124_v14 = vpack.c.bf16 %v1571_v13, %v1571_v13  ;;  %1745 = vmatprep.mubr.bf16.mxu0 %v1610_v6  ;;  %v2143_v15 = vpack.c.bf16 %v1574_v5, %v1574_v5 }
 0x481   : > { %2125 = vmatmul.mubr.msk.bf16.vlgmr.msra.gmra.mrb[16].mxu0 %vm2717_vm4, %v2124_v14  ;;  %2144 = vmatprep.mubr.msk.bf16.mxu1 %vm2725_vm5, %v2143_v15 }
 0x482   : > { %1916 = vmatmul.mubr.bf16.vlgmr.msra.gmra.mrb[16].mxu1 %v1610_v6 }
 0x554   : > { %v2275_v16 = vpop.f32.mrb[16].mxu0 }
 0x555   : > { %v2276_v17 = vpop.f32.mrb[17].mxu0  ;;  %v2297_v18 = vpop.f32.mrb[16].mxu1 }
 0x556   : > { %v2277_v19 = vadd.f32 %v2276_v17, %v2275_v16  ;;  %v2278_v20 = vpop.f32.mrb[18].mxu0  ;;  %v2298_v21 = vpop.f32.mrb[17].mxu1 }
 0x557   : > { %v2299_v29 = vadd.f32 %v2298_v21, %v2297_v18  ;;  %v2279_v2 = vpop.f32.mrb[19].mxu0  ;;  %v2300_v31 = vpop.f32.mrb[18].mxu1 }
 0x558   : > { %v1748_v22 = vadd.f32 %v2277_v19, %v2104_v3  ;;  %v2301_v23 = vpop.f32.mrb[19].mxu1 }
 0x559   : > { %v1918_v24 = vadd.f32 %v2299_v29, %v2104_v3 }
 0x55a   : > { %1753 = vst [vmem:[%s464_s22] sm:$0xff] %v1748_v22 }
 0x55b   : > { %1923 = vst [vmem:[%s464_s22 + $0x8] sm:$0xff] %v1918_v24 }
 0x55c PF: > { %s24_s29 = sadd.s32 1, %s2539_s29  }
 0x55d   : > { %p21_p4 = scmp.ge.s32.totalorder %s24_s29, 4  }
 0x55f   :  { %23 = sbr.rel (!%p21_p4) target bundleno = 1 (0x1), region = 106 }

// kernel: _lambda_.10
= control target key start
LH: loop header
LB: loop body
LE: loop exit
PB: predicated region body
PF: predicated region fallthrough
CT: control target
= control target key end

     0   :  { %s2206_s21 = smov 0   ;;  %s2616_s0 = inlined_call_operand.vmem [shape: f32[32,128], index: 0, kind: input, shape index: {}]   ;;  %s2617_s1 = inlined_call_operand.vmem [shape: bf16[384,128], index: 1, kind: input, shape index: {}]   ;;  %s2618_s2 = inlined_call_operand.vmem [shape: f32[1,128], index: 2, kind: input, shape index: {}]   ;;  %s2619_s3 = inlined_call_operand.vmem [shape: bf16[128,128], index: 3, kind: input, shape index: {}]   ;;  %s2620_s4 = inlined_call_operand.vmem [shape: f32[1,128], index: 4, kind: input, shape index: {}]   ;;  %s2621_s5 = inlined_call_operand.vmem [shape: bf16[384,128], index: 5, kind: input, shape index: {}]   ;;  %s2622_s6 = inlined_call_operand.vmem [shape: f32[1,128], index: 6, kind: input, shape index: {}]   ;;  %s2623_s7 = inlined_call_operand.vmem [shape: bf16[128,128], index: 7, kind: input, shape index: {}]   ;;  %s2624_s8 = inlined_call_operand.vmem [shape: f32[1,128], index: 8, kind: input, shape index: {}]   ;;  %s2625_s9 = inlined_call_operand.vmem [shape: bf16[256,128], index: 9, kind: input, shape index: {}]   ;;  %s2626_s10 = inlined_call_operand.vmem [shape: bf16[256,128], index: 10, kind: input, shape index: {}]   ;;  %s2627_s11 = inlined_call_operand.vmem [shape: f32[1,128], index: 11, kind: input, shape index: {}]   ;;  %s2628_s12 = inlined_call_operand.vmem [shape: f32[32,256], index: 12, kind: output, shape index: {}]  }
   0x1 LB: > { %s1684_s22 = sadd.s32 4294967295, %s2136_s21   ;;  %p1688_p0 = scmp.ge.s32.totalorder %s2136_s21, 1  ;;  %s2136_s21 = sphi %s2206_s21, %s22_s21  }
   0x2   : > { %p363_p1 = scmp.lt.s32.totalorder %s2136_s21, 3 }
   0x4   : > { %p364_p2 = pnand %p1688_p0, %p363_p1 }
   0x5   : > { %v2034_v0 = vld [vmem:[%s2617_s1 + $0x40] sm:$0xff] (!%p364_p2)   ;;  %v2138_v2 = vmov (!%p364_p2), 0.0   ;;  %v2037_v4 = vld [vmem:[%s2617_s1 + $0x48] sm:$0xff] (!%p364_p2)   ;;  %v2040_v7 = vld [vmem:[%s2617_s1 + $0x50] sm:$0xff] (!%p364_p2)   ;;  %s1689_s19 = sshll.u32 (!%p364_p2), %s1684_s22, 1  ;;  %vm2139_vm0 = vmmov (!%p364_p2), 0  }
   0x6   : > { %367 = sbr.rel (%p364_p2) target bundleno = 1157 (0x485), region = 68  ;;  %v2035_v1 = vld [vmem:[%s2617_s1] sm:$0xff] (!%p364_p2)   ;;  %1943 = vmatprep.subr.bf16.mxu1 (!%p364_p2), %v2138_v2  ;;  %1819 = vmatprep.subr.bf16.mxu0 (!%p364_p2), %v2034_v0  ;;  %v2038_v5 = vld [vmem:[%s2617_s1 + $0x8] sm:$0xff] (!%p364_p2)   ;;  %v2041_v8 = vld [vmem:[%s2617_s1 + $0x10] sm:$0xff] (!%p364_p2)   ;;  %p407_p3 = scmp.lt.s32.totalorder (!%p364_p2), %s1689_s19, 3  ;;  %vm492_vm1 = vcmask (!%p364_p2), 1042432  }
   0x7   : > { %v2036_v3 = vld [vmem:[%s2617_s1 + $0x80] sm:$0xff] (!%p364_p2)   ;;  %1820 = vmatpush3.bf16.msra.mxu0 (!%p364_p2), %v2035_v1  ;;  %v2039_v6 = vld [vmem:[%s2617_s1 + $0x88] sm:$0xff] (!%p364_p2)   ;;  %v2042_v9 = vld [vmem:[%s2617_s1 + $0x90] sm:$0xff] (!%p364_p2)   ;;  %1959 = vmatprep.mubr.msk.bf16.mxu1 (!%p364_p2), %vm2139_vm0, %v2138_v2  ;;  %vm499_vm3 = vcmask (!%p364_p2), 1044480   ;;  %vm2140_vm4 = vmmov (!%p364_p2), 1   ;;  %vm911_vm7 = vcmask (!%p364_p2), 1040384  }
   0x8   : > { %1944 = vmatpush3.bf16.msra.mxu1 (!%p364_p2), %v2036_v3  ;;  %1821 = vmatprep.subr.bf16.mxu0 (!%p364_p2), %v2037_v4  ;;  %v2043_v10 = vld [vmem:[%s2617_s1 + $0x58] sm:$0xff] (!%p364_p2)   ;;  %v2046_v13 = vld [vmem:[%s2617_s1 + $0x60] sm:$0xff] (!%p364_p2)   ;;  %v2049_v16 = vld [vmem:[%s2617_s1 + $0x68] sm:$0xff] (!%p364_p2)   ;;  %vm918_vm9 = vcmask (!%p364_p2), 1046528  }
   0x9   : > { %1945 = vmatprep.subr.bf16.mxu1 (!%p364_p2), %v2138_v2  ;;  %v2044_v11 = vld [vmem:[%s2617_s1 + $0x18] sm:$0xff] (!%p364_p2)   ;;  %v2047_v14 = vld [vmem:[%s2617_s1 + $0x20] sm:$0xff] (!%p364_p2)   ;;  %v2050_v17 = vld [vmem:[%s2617_s1 + $0x28] sm:$0xff] (!%p364_p2)  }
   0xa   : > { %v2045_v12 = vld [vmem:[%s2617_s1 + $0x98] sm:$0xff] (!%p364_p2)   ;;  %v2048_v15 = vld [vmem:[%s2617_s1 + $0xa0] sm:$0xff] (!%p364_p2)   ;;  %v2051_v18 = vld [vmem:[%s2617_s1 + $0xa8] sm:$0xff] (!%p364_p2)  }
   0xb   : > { %1822 = vmatpush3.bf16.msra.mxu0 (!%p364_p2), %v2038_v5  ;;  %v2052_v19 = vld [vmem:[%s2617_s1 + $0x70] sm:$0xff] (!%p364_p2)   ;;  %v2055_v24 = vld [vmem:[%s2617_s1 + $0x78] sm:$0xff] (!%p364_p2)   ;;  %vm1719_vm2 = vmneg (!%p364_p2), %vm492_vm1 }
   0xc   : > { %1946 = vmatpush3.bf16.msra.mxu1 (!%p364_p2), %v2039_v6  ;;  %1823 = vmatprep.subr.bf16.mxu0 (!%p364_p2), %v2040_v7  ;;  %v2053_v20 = vld [vmem:[%s2617_s1 + $0x30] sm:$0xff] (!%p364_p2)   ;;  %v2056_v27 = vld [vmem:[%s2617_s1 + $0x38] sm:$0xff] (!%p364_p2)   ;;  %vm1720_vm5 = vmpackc.low (!%p364_p2), %vm2140_vm4, %vm1719_vm2 }
   0xd   : > { %1947 = vmatprep.subr.bf16.mxu1 %v2138_v2  ;;  %s2634_s19 = smov (!%p407_p3, %s1689_s19), 3  ;;  %v2054_v23 = vld [vmem:[%s2617_s1 + $0xb0] sm:$0xff]   ;;  %v2057_v32 = vld [vmem:[%s2617_s1 + $0xb8] sm:$0xff]   ;;  %vm1723_vm6 = vmpackc.low %vm499_vm3, %vm2140_vm4 }
   0xe   : > { %s1690_s24 = sshll.u32 %s2634_s19, 3  ;;  %v2058_v37 = vld [vmem:[%s2619_s3] sm:$0xff]   ;;  %v2059_v39 = vld [vmem:[%s2619_s3 + $0x8] sm:$0xff]   ;;  %v2060_v40 = vld [vmem:[%s2619_s3 + $0x10] sm:$0xff]   ;;  %s1818_s17 = sshll.u32 %s2634_s19, 4 }
   0xf   : > { %1824 = vmatpush3.bf16.msra.mxu0 %v2041_v8  ;;  %s410_s14 = scalar_lea.vmem %s2616_s0, %s1690_s24  ;;  %v2061_v41 = vld [vmem:[%s2619_s3 + $0x18] sm:$0xff]   ;;  %v2062_v42 = vld [vmem:[%s2619_s3 + $0x20] sm:$0xff]   ;;  %v2063_v43 = vld [vmem:[%s2619_s3 + $0x28] sm:$0xff]   ;;  %s417_s25 = scalar_lea.vmem %s2628_s12, %s1818_s17 }
  0x10   : > { %1948 = vmatpush3.bf16.msra.mxu1 %v2042_v9  ;;  %1825 = vmatprep.subr.bf16.mxu0 %v2043_v10  ;;  %v2288_v21 = vld [vmem:[%s410_s14] sm:$0xff]  ;;  %v2290_v22 = vld [vmem:[%s410_s14 + $0x8] sm:$0xff]  ;;  %v2064_v44 = vld [vmem:[%s2619_s3 + $0x30] sm:$0xff]  }
  0x11   : > { %1949 = vmatprep.subr.bf16.mxu1 %v2138_v2  ;;  %v488_v25 = vmax.f32 %v2288_v21, 0.0  ;;  %v489_v26 = vmax.f32 %v2290_v22, 0.0  ;;  %v2065_v45 = vld [vmem:[%s2619_s3 + $0x38] sm:$0xff]   ;;  %v2066_v46 = vld [vmem:[%s2621_s5 + $0x40] sm:$0xff]   ;;  %v2069_v48 = vld [vmem:[%s2621_s5 + $0x48] sm:$0xff]  }
  0x12   : > { %v2067_v47 = vld [vmem:[%s2621_s5] sm:$0xff]   ;;  %v2070_v49 = vld [vmem:[%s2621_s5 + $0x8] sm:$0xff]   ;;  %v2072_v50 = vld [vmem:[%s2621_s5 + $0x50] sm:$0xff]  }
  0x13   : > { %1826 = vmatpush3.bf16.msra.mxu0 %v2044_v11  ;;  %v493_v28 = vrot.slane %v488_v25, 5  ;;  %v494_v29 = vrot.slane %v489_v26, 5  ;;  %v500_v30 = vrot.slane %v488_v25, 3  ;;  %v501_v31 = vrot.slane %v489_v26, 3  ;;  %v2073_v51 = vld [vmem:[%s2621_s5 + $0x10] sm:$0xff]   ;;  %v2075_v52 = vld [vmem:[%s2621_s5 + $0x58] sm:$0xff]   ;;  %vm1760_vm8 = vmneg %vm911_vm7 }
  0x14   : > { %1950 = vmatpush3.bf16.msra.mxu1 %v2045_v12  ;;  %1827 = vmatprep.subr.bf16.mxu0 %v2046_v13  ;;  %v507_v33 = vpack.c.bf16 %v489_v26, %v488_v25  ;;  %v2076_v53 = vld [vmem:[%s2621_s5 + $0x18] sm:$0xff]   ;;  %v2078_v54 = vld [vmem:[%s2621_s5 + $0x60] sm:$0xff]   ;;  %v2071_v12 = vld [vmem:[%s2621_s5 + $0x88] sm:$0xff]  }
  0x15   : > { %1951 = vmatprep.subr.bf16.mxu1 %v2138_v2  ;;  %v495_v34 = vsel %vm492_vm1, %v493_v28, %v494_v29  ;;  %v502_v35 = vsel %vm499_vm3, %v500_v30, %v501_v31  ;;  %v2079_v55 = vld [vmem:[%s2621_s5 + $0x20] sm:$0xff]   ;;  %v2074_v13 = vld [vmem:[%s2621_s5 + $0x90] sm:$0xff]   ;;  %v2088_v25 = vld [vmem:[%s2621_s5 + $0x38] sm:$0xff]  }
  0x16   : > { %691 = vmatprep.mubr.bf16.mxu0 %v507_v33  ;;  %v1721_v36 = vpack.c.bf16 %v495_v34, %v493_v28  ;;  %v1724_v38 = vpack.c.bf16 %v501_v31, %v502_v35  ;;  %v1694_v58 = vld [vmem:[%s2618_s2] ss:$0 sm:$0xff]  ;;  %v2089_v26 = vld [vmem:[%s2621_s5 + $0xb8] sm:$0xff]   ;;  %vm2447_vm10 = vmpackc.low %vm2140_vm4, %vm1760_vm8 }
  0x17   : > { %1828 = vmatpush3.bf16.msra.mxu0 %v2047_v14  ;;  %v2068_v10 = vld [vmem:[%s2621_s5 + $0x80] sm:$0xff]   ;;  %v2077_v14 = vld [vmem:[%s2621_s5 + $0x98] sm:$0xff]   ;;  %vm2455_vm11 = vmpackc.low %vm918_vm9, %vm2140_vm4 }
  0x18   : > { %1952 = vmatpush3.bf16.msra.mxu1 %v2048_v15  ;;  %1829 = vmatprep.subr.bf16.mxu0 %v2049_v16  ;;  %v2080_v15 = vld [vmem:[%s2621_s5 + $0xa0] sm:$0xff]   ;;  %v2081_v16 = vld [vmem:[%s2621_s5 + $0x68] sm:$0xff]  }
  0x19   : > { %1953 = vmatprep.subr.bf16.mxu1 %v2138_v2 }
  0x1b   : > { %1830 = vmatpush3.bf16.msra.mxu0 %v2050_v17  ;;  %v2082_v17 = vld [vmem:[%s2621_s5 + $0x28] sm:$0xff]  }
  0x1c   : > { %1954 = vmatpush3.bf16.msra.mxu1 %v2051_v18  ;;  %1831 = vmatprep.subr.bf16.mxu0 %v2052_v19  ;;  %v2083_v18 = vld [vmem:[%s2621_s5 + $0xa8] sm:$0xff]   ;;  %v2084_v19 = vld [vmem:[%s2621_s5 + $0x70] sm:$0xff]  }
  0x1d   : > { %1955 = vmatprep.subr.bf16.mxu1 %v2138_v2 }
  0x1f   : > { %1832 = vmatpush3.bf16.msra.mxu0 %v2053_v20  ;;  %v2085_v20 = vld [vmem:[%s2621_s5 + $0x30] sm:$0xff]  }
  0x20   : > { %1956 = vmatpush3.bf16.msra.mxu1 %v2054_v23  ;;  %1833 = vmatprep.subr.bf16.mxu0 %v2055_v24  ;;  %v2086_v23 = vld [vmem:[%s2621_s5 + $0xb0] sm:$0xff]   ;;  %v2087_v24 = vld [vmem:[%s2621_s5 + $0x78] sm:$0xff]  }
  0x21   : > { %1957 = vmatprep.subr.bf16.mxu1 %v2138_v2 }
  0x23   : > { %1834 = vmatpush3.bf16.msra.mxu0 %v2056_v27  ;;  %v1726_v27 = vld [vmem:[%s2620_s4] ss:$0 sm:$0xff] }
  0x24   : > { %1958 = vmatpush3.bf16.msra.mxu1 %v2057_v32  ;;  %1963 = vmatprep.subr.bf16.mxu0 %v2138_v2 }
  0x25   : > { %1859 = vmatprep.subr.bf16.mxu1 %v2066_v46 }
  0x26   : > { %1722 = vmatmul.mubr.msk.bf16.vlgmr.msra.gmra.mrb[0].mxu0 %vm1720_vm5, %v1721_v36 }
  0x27   : > { %1960 = vmatmul.mubr.msk.bf16.vlgmr.msra.gmra.mrb[0].mxu1 %vm1723_vm6, %v1724_v38  ;;  %1964 = vmatpush3.bf16.msra.mxu0 %v2058_v37 }
  0x28   : > { %1965 = vmatprep.subr.bf16.mxu0 %v2138_v2  ;;  %1979 = vmatprep.mubr.msk.bf16.mxu0 %vm2139_vm0, %v2138_v2 }
  0x29   : > { %1860 = vmatpush3.bf16.msra.mxu1 %v2067_v47 }
  0x2a   : > { %1861 = vmatprep.subr.bf16.mxu1 %v2069_v48  ;;  %v2091_v48 = vld [vmem:[%s2623_s7 + $0x8] sm:$0xff]  }
  0x2b   : > { %1966 = vmatpush3.bf16.msra.mxu0 %v2059_v39 }
  0x2c   : > { %1967 = vmatprep.subr.bf16.mxu0 %v2138_v2 }
  0x2d   : > { %1862 = vmatpush3.bf16.msra.mxu1 %v2070_v49  ;;  %v2092_v49 = vld [vmem:[%s2623_s7 + $0x10] sm:$0xff]  }
  0x2e   : > { %1863 = vmatprep.subr.bf16.mxu1 %v2072_v50  ;;  %v2093_v50 = vld [vmem:[%s2623_s7 + $0x18] sm:$0xff]  }
  0x2f   : > { %1968 = vmatpush3.bf16.msra.mxu0 %v2060_v40 }
  0x30   : > { %1969 = vmatprep.subr.bf16.mxu0 %v2138_v2 }
  0x31   : > { %1864 = vmatpush3.bf16.msra.mxu1 %v2073_v51  ;;  %v2094_v51 = vld [vmem:[%s2623_s7 + $0x20] sm:$0xff]  }
  0x32   : > { %1865 = vmatprep.subr.bf16.mxu1 %v2075_v52  ;;  %v2095_v52 = vld [vmem:[%s2623_s7 + $0x28] sm:$0xff]  }
  0x33   : > { %1970 = vmatpush3.bf16.msra.mxu0 %v2061_v41 }
  0x34   : > { %1971 = vmatprep.subr.bf16.mxu0 %v2138_v2 }
  0x35   : > { %1866 = vmatpush3.bf16.msra.mxu1 %v2076_v53  ;;  %v2096_v53 = vld [vmem:[%s2623_s7 + $0x30] sm:$0xff]  }
  0x36   : > { %1867 = vmatprep.subr.bf16.mxu1 %v2078_v54  ;;  %v2097_v54 = vld [vmem:[%s2623_s7 + $0x38] sm:$0xff]  }
  0x37   : > { %1972 = vmatpush3.bf16.msra.mxu0 %v2062_v42 }
  0x38   : > { %1973 = vmatprep.subr.bf16.mxu0 %v2138_v2 }
  0x39   : > { %1868 = vmatpush3.bf16.msra.mxu1 %v2079_v55  ;;  %v2098_v55 = vld [vmem:[%s2625_s9 + $0x40] sm:$0xff]  }
  0x3a   : > { %1869 = vmatprep.subr.bf16.mxu1 %v2081_v16 }
  0x3b   : > { %1974 = vmatpush3.bf16.msra.mxu0 %v2063_v43 }
  0x3c   : > { %1975 = vmatprep.subr.bf16.mxu0 %v2138_v2 }
  0x3d   : > { %1870 = vmatpush3.bf16.msra.mxu1 %v2082_v17 }
  0x3e   : > { %1871 = vmatprep.subr.bf16.mxu1 %v2084_v19  ;;  %v2101_v19 = vld [vmem:[%s2626_s10] sm:$0xff]  }
  0x3f   : > { %1976 = vmatpush3.bf16.msra.mxu0 %v2064_v44 }
  0x40   : > { %1977 = vmatprep.subr.bf16.mxu0 %v2138_v2 }
  0x41   : > { %1872 = vmatpush3.bf16.msra.mxu1 %v2085_v20 }
  0x42   : > { %1873 = vmatprep.subr.bf16.mxu1 %v2087_v24  ;;  %v2105_v24 = vld [vmem:[%s2626_s10 + $0x8] sm:$0xff]  }
  0x43   : > { %1978 = vmatpush3.bf16.msra.mxu0 %v2065_v45  ;;  %v2090_v45 = vld [vmem:[%s2623_s7] sm:$0xff]  }
  0x44   : > { %1983 = vmatprep.subr.bf16.mxu0 %v2138_v2 }
  0x45   : > { %1874 = vmatpush3.bf16.msra.mxu1 %v2088_v25  ;;  %v2108_v25 = vld [vmem:[%s2626_s10 + $0x50] sm:$0xff]  }
  0x46   : > { %2003 = vmatprep.subr.bf16.mxu1 %v2138_v2 }
  0xf9   : > { %v1835_v56 = vpop.f32.mrb[0].mxu0 }
  0xfa   : > { %v1836_v57 = vpop.f32.mrb[1].mxu0  ;;  %v734_v59 = vpop.f32.mrb[0].mxu1 }
  0xfb   : > { %v1837_v60 = vadd.f32 %v1836_v57, %v1835_v56  ;;  %v1838_v61 = vpop.f32.mrb[2].mxu0  ;;  %v1961_v62 = vpop.f32.mrb[1].mxu1  ;;  %v2099_v56 = vld [vmem:[%s2625_s9] sm:$0xff]  }
  0xfc   : > { %v1839_v63 = vpop.f32.mrb[3].mxu0  ;;  %v737_v0 = vpop.f32.mrb[2].mxu1  ;;  %v2100_v57 = vld [vmem:[%s2626_s10 + $0x40] sm:$0xff]   ;;  %v2111_v62 = vld [vmem:[%s2625_s9 + $0x18] sm:$0xff]  }
  0xfd   : > { %v694_v1 = vadd.f32 %v1837_v60, %v1694_v58  ;;  %v1840_v3 = vadd.f32 %v1839_v63, %v1838_v61  ;;  %v1962_v4 = vpop.f32.mrb[3].mxu1  ;;  %v2107_v60 = vld [vmem:[%s2625_s9 + $0x10] sm:$0xff]   ;;  %v2110_v61 = vld [vmem:[%s2625_s9 + $0x58] sm:$0xff]   ;;  %v2114_v63 = vld [vmem:[%s2625_s9 + $0x60] sm:$0xff]  }
  0xfe   : > { %v1735_v4 = vld [vmem:[%s2622_s6] ss:$0 sm:$0xff] }
  0xff   : > { %v735_v5 = vadd.f32 %v734_v59, %v694_v1  ;;  %v697_v6 = vadd.f32 %v1840_v3, %v1694_v58  ;;  %v2103_v58 = vld [vmem:[%s2625_s9 + $0x8] sm:$0xff]   ;;  %v2106_v59 = vld [vmem:[%s2625_s9 + $0x50] sm:$0xff]  }
 0x101   : > { %v738_v7 = vadd.f32 %v737_v0, %v697_v6  ;;  %v741_v8 = vmax.f32 %v735_v5, 0.0  ;;  %v2115_v0 = vld [vmem:[%s2625_s9 + $0x20] sm:$0xff]  }
 0x103   : > { %v742_v9 = vmax.f32 %v738_v7, 0.0 }
 0x105   : > { %v743_v11 = vpack.c.bf16 %v742_v9, %v741_v8 }
 0x107   : > { %1980 = vmatmul.mubr.bf16.vlgmr.msra.gmra.mrb[4].mxu0 %v743_v11 }
 0x108   : > { %1984 = vmatpush3.bf16.msra.mxu0 %v2068_v10  ;;  %1999 = vmatprep.mubr.msk.bf16.mxu0 %vm2139_vm0, %v2138_v2 }
 0x109   : > { %1985 = vmatprep.subr.bf16.mxu0 %v2138_v2 }
 0x10c   : > { %1986 = vmatpush3.bf16.msra.mxu0 %v2071_v12 }
 0x10d   : > { %1987 = vmatprep.subr.bf16.mxu0 %v2138_v2 }
 0x110   : > { %1988 = vmatpush3.bf16.msra.mxu0 %v2074_v13 }
 0x111   : > { %1989 = vmatprep.subr.bf16.mxu0 %v2138_v2 }
 0x114   : > { %1990 = vmatpush3.bf16.msra.mxu0 %v2077_v14 }
 0x115   : > { %1991 = vmatprep.subr.bf16.mxu0 %v2138_v2 }
 0x118   : > { %1992 = vmatpush3.bf16.msra.mxu0 %v2080_v15 }
 0x119   : > { %1993 = vmatprep.subr.bf16.mxu0 %v2138_v2 }
 0x11c   : > { %1994 = vmatpush3.bf16.msra.mxu0 %v2083_v18 }
 0x11d   : > { %1995 = vmatprep.subr.bf16.mxu0 %v2138_v2 }
 0x120   : > { %1996 = vmatpush3.bf16.msra.mxu0 %v2086_v23  ;;  %v2104_v23 = vld [vmem:[%s2626_s10 + $0x48] sm:$0xff]  }
 0x121   : > { %1997 = vmatprep.subr.bf16.mxu0 %v2138_v2 }
 0x124   : > { %1998 = vmatpush3.bf16.msra.mxu0 %v2089_v26  ;;  %v2109_v26 = vld [vmem:[%s2626_s10 + $0x10] sm:$0xff]  }
 0x125   : > { %1899 = vmatprep.subr.bf16.mxu0 %v2098_v55 }
 0x1da   : > { %v832_v28 = vpop.f32.mrb[4].mxu0 }
 0x1db   : > { %v833_v29 = vadd.f32 %v1726_v27, %v832_v28  ;;  %v1981_v30 = vpop.f32.mrb[5].mxu0  ;;  %v2113_v28 = vld [vmem:[%s2626_s10 + $0x18] sm:$0xff]  }
 0x1dc   : > { %v835_v31 = vpop.f32.mrb[6].mxu0  ;;  %v2117_v30 = vld [vmem:[%s2626_s10 + $0x20] sm:$0xff]  }
 0x1dd   : > { %v2438_v32 = vadd.f32 %v833_v29, %v2288_v21  ;;  %v836_v33 = vadd.f32 %v1726_v27, %v835_v31  ;;  %v1982_v34 = vpop.f32.mrb[7].mxu0  ;;  %v2112_v27 = vld [vmem:[%s2626_s10 + $0x58] sm:$0xff]   ;;  %v2116_v29 = vld [vmem:[%s2626_s10 + $0x60] sm:$0xff]   ;;  %v2118_v31 = vld [vmem:[%s2625_s9 + $0x68] sm:$0xff]  }
 0x1de   : > { %v2120_v34 = vld [vmem:[%s2626_s10 + $0x68] sm:$0xff]  }
 0x1df   : > { %v907_v35 = vmax.f32 %v2438_v32, 0.0  ;;  %v2442_v36 = vadd.f32 %v836_v33, %v2290_v22  ;;  %v2119_v33 = vld [vmem:[%s2625_s9 + $0x28] sm:$0xff]  }
 0x1e1   : > { %v908_v37 = vmax.f32 %v2442_v36, 0.0  ;;  %v912_v38 = vrot.slane %v907_v35, 7  ;;  %v919_v39 = vrot.slane %v907_v35, 1 }
 0x1e3   : > { %v913_v40 = vrot.slane %v908_v37, 7  ;;  %v920_v41 = vrot.slane %v908_v37, 1  ;;  %v926_v42 = vpack.c.bf16 %v908_v37, %v907_v35  ;;  %v2121_v35 = vld [vmem:[%s2626_s10 + $0x28] sm:$0xff]   ;;  %v2122_v37 = vld [vmem:[%s2625_s9 + $0x70] sm:$0xff]  }
 0x1e5   : > { %1110 = vmatprep.mubr.bf16.mxu1 %v926_v42  ;;  %v914_v43 = vsel %vm911_vm7, %v912_v38, %v913_v40  ;;  %v921_v22 = vsel %vm918_vm9, %v919_v39, %v920_v41  ;;  %v2124_v39 = vld [vmem:[%s2626_s10 + $0x70] sm:$0xff]   ;;  %v2127_v42 = vld [vmem:[%s2625_s9 + $0x38] sm:$0xff]  }
 0x1e6   : > { %v1762_v46 = vpack.c.bf16 %v914_v43, %v912_v38  ;;  %v1765_v47 = vpack.c.bf16 %v920_v41, %v921_v22  ;;  %v2123_v38 = vld [vmem:[%s2625_s9 + $0x30] sm:$0xff]   ;;  %v2126_v41 = vld [vmem:[%s2625_s9 + $0x78] sm:$0xff]  }
 0x1e7   : > { %v2125_v40 = vld [vmem:[%s2626_s10 + $0x30] sm:$0xff]   ;;  %v2128_v43 = vld [vmem:[%s2626_s10 + $0x78] sm:$0xff]  }
 0x1e8   : > { %1763 = vmatmul.mubr.msk.bf16.vlgmr.msra.gmra.mrb[4].mxu1 %vm2447_vm10, %v1762_v46  ;;  %2000 = vmatmul.mubr.msk.bf16.vlgmr.msra.gmra.mrb[8].mxu0 %vm2455_vm11, %v1765_v47  ;;  %v2129_v22 = vld [vmem:[%s2626_s10 + $0x38] sm:$0xff]  }
 0x1e9   : > { %2004 = vmatpush3.bf16.msra.mxu1 %v2090_v45  ;;  %2019 = vmatprep.mubr.msk.bf16.mxu1 %vm2139_vm0, %v2138_v2  ;;  %v1767_v45 = vld [vmem:[%s2624_s8] ss:$0 sm:$0xff] }
 0x1ea   : > { %2005 = vmatprep.subr.bf16.mxu1 %v2138_v2  ;;  %1900 = vmatpush3.bf16.msra.mxu0 %v2099_v56 }
 0x1ed   : > { %2006 = vmatpush3.bf16.msra.mxu1 %v2091_v48 }
 0x1ee   : > { %2007 = vmatprep.subr.bf16.mxu1 %v2138_v2 }
 0x1f1   : > { %2008 = vmatpush3.bf16.msra.mxu1 %v2092_v49 }
 0x1f2   : > { %2009 = vmatprep.subr.bf16.mxu1 %v2138_v2 }
 0x1f5   : > { %2010 = vmatpush3.bf16.msra.mxu1 %v2093_v50 }
 0x1f6   : > { %2011 = vmatprep.subr.bf16.mxu1 %v2138_v2 }
 0x1f9   : > { %2012 = vmatpush3.bf16.msra.mxu1 %v2094_v51 }
 0x1fa   : > { %2013 = vmatprep.subr.bf16.mxu1 %v2138_v2 }
 0x1fd   : > { %2014 = vmatpush3.bf16.msra.mxu1 %v2095_v52 }
 0x1fe   : > { %2015 = vmatprep.subr.bf16.mxu1 %v2138_v2 }
 0x201   : > { %2016 = vmatpush3.bf16.msra.mxu1 %v2096_v53 }
 0x202   : > { %2017 = vmatprep.subr.bf16.mxu1 %v2138_v2  ;;  %v2102_v2 = vld [vmem:[%s2625_s9 + $0x48] sm:$0xff]  }
 0x203   : > { %1901 = vmatprep.subr.bf16.mxu0 %v2102_v2 }
 0x204   : > { %1902 = vmatpush3.bf16.msra.mxu0 %v2103_v58 }
 0x205   : > { %2018 = vmatpush3.bf16.msra.mxu1 %v2097_v54  ;;  %1903 = vmatprep.subr.bf16.mxu0 %v2106_v59 }
 0x206   : > { %1921 = vmatprep.subr.bf16.mxu1 %v2100_v57 }
 0x208   : > { %1904 = vmatpush3.bf16.msra.mxu0 %v2107_v60 }
 0x209   : > { %1905 = vmatprep.subr.bf16.mxu0 %v2110_v61 }
 0x20c   : > { %1906 = vmatpush3.bf16.msra.mxu0 %v2111_v62 }
 0x20d   : > { %1907 = vmatprep.subr.bf16.mxu0 %v2114_v63 }
 0x210   : > { %1908 = vmatpush3.bf16.msra.mxu0 %v2115_v0 }
 0x211   : > { %1909 = vmatprep.subr.bf16.mxu0 %v2118_v31 }
 0x214   : > { %1910 = vmatpush3.bf16.msra.mxu0 %v2119_v33 }
 0x215   : > { %1911 = vmatprep.subr.bf16.mxu0 %v2122_v37 }
 0x218   : > { %1912 = vmatpush3.bf16.msra.mxu0 %v2123_v38 }
 0x219   : > { %1913 = vmatprep.subr.bf16.mxu0 %v2126_v41 }
 0x21c   : > { %1914 = vmatpush3.bf16.msra.mxu0 %v2127_v42 }
 0x2bb   : > { %v1875_v1 = vpop.f32.mrb[4].mxu1  ;;  %v1153_v3 = vpop.f32.mrb[8].mxu0 }
 0x2bc   : > { %v1876_v5 = vpop.f32.mrb[5].mxu1  ;;  %v2001_v6 = vpop.f32.mrb[9].mxu0 }
 0x2bd   : > { %v1877_v7 = vadd.f32 %v1876_v5, %v1875_v1  ;;  %v1878_v8 = vpop.f32.mrb[6].mxu1  ;;  %v1156_v9 = vpop.f32.mrb[10].mxu0 }
 0x2be   : > { %v1879_v10 = vpop.f32.mrb[7].mxu1  ;;  %v2002_v11 = vpop.f32.mrb[11].mxu0 }
 0x2bf   : > { %v1113_v12 = vadd.f32 %v1877_v7, %v1735_v4  ;;  %v1880_v13 = vadd.f32 %v1879_v10, %v1878_v8 }
 0x2c1   : > { %v1154_v14 = vadd.f32 %v1153_v3, %v1113_v12  ;;  %v1116_v15 = vadd.f32 %v1880_v13, %v1735_v4 }
 0x2c3   : > { %v1157_v16 = vadd.f32 %v1156_v9, %v1116_v15  ;;  %v1160_v17 = vmax.f32 %v1154_v14, 0.0 }
 0x2c5   : > { %v1161_v18 = vmax.f32 %v1157_v16, 0.0 }
 0x2c7   : > { %v1162_v20 = vpack.c.bf16 %v1161_v18, %v1160_v17 }
 0x2c9   : > { %2020 = vmatmul.mubr.bf16.vlgmr.msra.gmra.mrb[8].mxu1 %v1162_v20 }
 0x2ca   : > { %1922 = vmatpush3.bf16.msra.mxu1 %v2101_v19 }
 0x2cb   : > { %1923 = vmatprep.subr.bf16.mxu1 %v2104_v23 }
 0x2ce   : > { %1924 = vmatpush3.bf16.msra.mxu1 %v2105_v24 }
 0x2cf   : > { %1925 = vmatprep.subr.bf16.mxu1 %v2108_v25 }
 0x2d2   : > { %1926 = vmatpush3.bf16.msra.mxu1 %v2109_v26 }
 0x2d3   : > { %1927 = vmatprep.subr.bf16.mxu1 %v2112_v27 }
 0x2d6   : > { %1928 = vmatpush3.bf16.msra.mxu1 %v2113_v28 }
 0x2d7   : > { %1929 = vmatprep.subr.bf16.mxu1 %v2116_v29 }
 0x2da   : > { %1930 = vmatpush3.bf16.msra.mxu1 %v2117_v30 }
 0x2db   : > { %1931 = vmatprep.subr.bf16.mxu1 %v2120_v34 }
 0x2de   : > { %1932 = vmatpush3.bf16.msra.mxu1 %v2121_v35 }
 0x2df   : > { %1933 = vmatprep.subr.bf16.mxu1 %v2124_v39 }
 0x2e2   : > { %1934 = vmatpush3.bf16.msra.mxu1 %v2125_v40 }
 0x2e3   : > { %1935 = vmatprep.subr.bf16.mxu1 %v2128_v43 }
 0x2e6   : > { %1936 = vmatpush3.bf16.msra.mxu1 %v2129_v22 }
 0x39c   : > { %v1251_v46 = vpop.f32.mrb[8].mxu1 }
 0x39d   : > { %v1252_v47 = vadd.f32 %v1767_v45, %v1251_v46  ;;  %v2021_v48 = vpop.f32.mrb[9].mxu1 }
 0x39e   : > { %v1254_v49 = vpop.f32.mrb[10].mxu1 }
 0x39f   : > { %v1258_v50 = vadd.f32 %v1252_v47, %v2438_v32  ;;  %v1255_v51 = vadd.f32 %v1767_v45, %v1254_v49  ;;  %v2022_v52 = vpop.f32.mrb[11].mxu1 }
 0x3a1   : > { %v1259_v53 = vadd.f32 %v1255_v51, %v2442_v36  ;;  %v1263_v54 = vrot.slane %v1258_v50, 7  ;;  %v1269_v55 = vrot.slane %v1258_v50, 1  ;;  %v1776_v36 = vld [vmem:[%s2627_s11] ss:$0 sm:$0xff] }
 0x3a3   : > { %v1264_v56 = vrot.slane %v1259_v53, 7  ;;  %v1270_v57 = vrot.slane %v1259_v53, 1  ;;  %v1308_v2 = vpack.c.bf16 %v1259_v53, %v1258_v50 }
 0x3a5   : > { %v1265_v58 = vsel %vm911_vm7, %v1263_v54, %v1264_v56  ;;  %1443 = vmatprep.mubr.bf16.mxu0 %v1308_v2  ;;  %v1271_v59 = vsel %vm918_vm9, %v1269_v55, %v1270_v57 }
 0x3a6   : > { %v1795_v60 = vpack.c.bf16 %v1265_v58, %v1263_v54  ;;  %v1814_v61 = vpack.c.bf16 %v1270_v57, %v1271_v59 }
 0x3a8   : > { %1796 = vmatmul.mubr.msk.bf16.vlgmr.msra.gmra.mrb[12].mxu0 %vm2447_vm10, %v1795_v60  ;;  %1815 = vmatprep.mubr.msk.bf16.mxu1 %vm2455_vm11, %v1814_v61 }
 0x3a9   : > { %1616 = vmatmul.mubr.bf16.vlgmr.msra.gmra.mrb[12].mxu1 %v1308_v2 }
 0x47b   : > { %v1915_v32 = vpop.f32.mrb[12].mxu0 }
 0x47c   : > { %v1916_v62 = vpop.f32.mrb[13].mxu0  ;;  %v1937_v63 = vpop.f32.mrb[12].mxu1 }
 0x47d   : > { %v1917_v0 = vadd.f32 %v1916_v62, %v1915_v32  ;;  %v1918_v1 = vpop.f32.mrb[14].mxu0  ;;  %v1938_v3 = vpop.f32.mrb[13].mxu1 }
 0x47e   : > { %v1939_v21 = vadd.f32 %v1938_v3, %v1937_v63  ;;  %v1919_v4 = vpop.f32.mrb[15].mxu0  ;;  %v1940_v44 = vpop.f32.mrb[14].mxu1 }
 0x47f   : > { %v1446_v5 = vadd.f32 %v1917_v0, %v1776_v36  ;;  %v1920_v6 = vadd.f32 %v1919_v4, %v1918_v1  ;;  %v1941_v7 = vpop.f32.mrb[15].mxu1 }
 0x480   : > { %v1618_v8 = vadd.f32 %v1939_v21, %v1776_v36  ;;  %v1942_v9 = vadd.f32 %v1941_v7, %v1940_v44 }
 0x481   : > { %1452 = vst [vmem:[%s417_s25] sm:$0xff] %v1446_v5  ;;  %v1449_v10 = vadd.f32 %v1920_v6, %v1776_v36 }
 0x482   : > { %1624 = vst [vmem:[%s417_s25 + $0x8] sm:$0xff] %v1618_v8  ;;  %v1621_v11 = vadd.f32 %v1942_v9, %v1776_v36 }
 0x483   : > { %1453 = vst [vmem:[%s417_s25 + $0x10] sm:$0xff] %v1449_v10 }
 0x484   : > { %1625 = vst [vmem:[%s417_s25 + $0x18] sm:$0xff] %v1621_v11 }
 0x485 PF: > { %s22_s21 = sadd.s32 1, %s2136_s21  }
 0x486   : > { %p19_p4 = scmp.ge.s32.totalorder %s22_s21, 4  }
 0x488   :  { %21 = sbr.rel (!%p19_p4) target bundleno = 1 (0x1), region = 98 }

// kernel: _lambda_.11
= control target key start
LH: loop header
LB: loop body
LE: loop exit
PB: predicated region body
PF: predicated region fallthrough
CT: control target
= control target key end

     0   :  { %10 = vsyncpa [#allocation3], 0  ;;  %s1648_s0 = inlined_call_operand.vmem [shape: f32[64,128], index: 0, kind: input, shape index: {}]   ;;  %s1649_s1 = inlined_call_operand.vmem [shape: bf16[384,128], index: 1, kind: input, shape index: {}]   ;;  %s1650_s2 = inlined_call_operand.vmem [shape: f32[1,128], index: 2, kind: input, shape index: {}]   ;;  %s1651_s3 = inlined_call_operand.vmem [shape: bf16[384,128], index: 3, kind: input, shape index: {}]   ;;  %s1652_s4 = inlined_call_operand.vmem [shape: f32[1,128], index: 4, kind: input, shape index: {}]   ;;  %s1653_s5 = inlined_call_operand.hbm [shape: f32[64,128], index: 5, kind: output, shape index: {}]  }
   0x1   :  { %12 = vsyncpa [#allocation3 + $0x1], 0  ;;  %s1360_s18 = smov 0   ;;  %s1362_s19 = smov 0  }
   0x2   :  { %s1364_s20 = smov 0   ;;  %s1366_s21 = smov 0  }
   0x3 LB: > { %s1381_s22 = sadd.s32 4294967295, %s1324_s21   ;;  %s979_s23 = sadd.s32 4294967294, %s1324_s21   ;;  %s1324_s21 = sphi %s1366_s21, %s1663_s21   ;;  %s1320_s20 = sphi %s1364_s20, %s1662_s20   ;;  %s1316_s19 = sphi %s1362_s19, %s1661_s19   ;;  %s1312_s18 = sphi %s1360_s18, %s1660_s18  }
   0x4   : > { %s1385_s24 = sadd.s32 1, %s1324_s21   ;;  %s135_s25 = sadd.s32 1, %s1320_s20 }
   0x5   : > { %s132_s26 = ssub.s32 %s1324_s21, %s1385_s24  ;;  %p145_p0 = scmp.ne.s32.totalorder %s1320_s20, %s1316_s19 }
   0x6   : > { %p133_p1 = scmp.eq.s32.totalorder %s132_s26, 0  ;;  %p146_p2 = scmp.eq.s32.totalorder %s1381_s22, 1 }
   0x7   : > { %p151_p3 = scmp.ne.s32.totalorder %s1316_s19, %s1312_s18  ;;  %p152_p4 = scmp.eq.s32.totalorder %s979_s23, 1 }
   0x8   : > { %s1396_s27 = scalar_select %p133_p1, %s1320_s20, %s135_s25  }
   0x9   : > { %p1398_p5 = por %p146_p2, %p145_p0  ;;  %p1402_p6 = por %p152_p4, %p151_p3 }
   0xa   : > { %p982_p7 = scmp.ge.s32.totalorder %s1324_s21, 1  ;;  %p191_p8 = scmp.lt.s32.totalorder %s1324_s21, 3 }
   0xc   : > { %p192_p9 = pnand %p982_p7, %p191_p8 }
   0xd   : > { %v1214_v0 = vld [vmem:[%s1649_s1 + $0x40] sm:$0xff] (!%p192_p9)   ;;  %v1217_v3 = vld [vmem:[%s1649_s1 + $0x48] sm:$0xff] (!%p192_p9)   ;;  %v1220_v6 = vld [vmem:[%s1649_s1 + $0x50] sm:$0xff] (!%p192_p9)   ;;  %s984_s30 = sshll.u32 (!%p192_p9), %s1381_s22, 2  ;;  %vm284_vm0 = vcmask (!%p192_p9), 1040384   ;;  %vm297_vm1 = vcmask (!%p192_p9), 1046528  }
   0xe   : > { %195 = sbr.rel (%p192_p9) target bundleno = 519 (0x207), region = 40  ;;  %v1215_v1 = vld [vmem:[%s1649_s1] sm:$0xff] (!%p192_p9)   ;;  %1056 = vmatprep.subr.bf16.mxu0 (!%p192_p9), %v1214_v0  ;;  %v1218_v4 = vld [vmem:[%s1649_s1 + $0x8] sm:$0xff] (!%p192_p9)   ;;  %v1221_v7 = vld [vmem:[%s1649_s1 + $0x10] sm:$0xff] (!%p192_p9)   ;;  %p220_p10 = scmp.lt.s32.totalorder (!%p192_p9), %s984_s30, 7  ;;  %vm1326_vm3 = vmmov (!%p192_p9), 1  }
   0xf   : > { %v1216_v2 = vld [vmem:[%s1649_s1 + $0x80] sm:$0xff] (!%p192_p9)   ;;  %1057 = vmatpush3.bf16.msra.mxu0 (!%p192_p9), %v1215_v1  ;;  %v1219_v5 = vld [vmem:[%s1649_s1 + $0x88] sm:$0xff] (!%p192_p9)   ;;  %v1222_v8 = vld [vmem:[%s1649_s1 + $0x90] sm:$0xff] (!%p192_p9)   ;;  %s216_s13 = sand.u32 (!%p192_p9), 1, %s1316_s19   ;;  %s1327_s8 = smov (!%p192_p9), [#allocation2]  }
  0x10   : > { %1132 = vmatprep.subr.bf16.mxu1 (!%p192_p9), %v1216_v2  ;;  %1058 = vmatprep.subr.bf16.mxu0 (!%p192_p9), %v1217_v3  ;;  %v1223_v9 = vld [vmem:[%s1649_s1 + $0x58] sm:$0xff] (!%p192_p9)   ;;  %v1226_v12 = vld [vmem:[%s1649_s1 + $0x60] sm:$0xff] (!%p192_p9)   ;;  %v1229_v15 = vld [vmem:[%s1649_s1 + $0x68] sm:$0xff] (!%p192_p9)   ;;  %s983_s16 = sshll.u32 (!%p192_p9), %s216_s13, 5  ;;  %s1607_s7 = scalar_lea.sflag (!%p192_p9), [#allocation3], %s216_s13 }
  0x11   : > { %1133 = vmatpush3.bf16.msra.mxu1 (!%p192_p9), %v1216_v2  ;;  %v1224_v10 = vld [vmem:[%s1649_s1 + $0x18] sm:$0xff] (!%p192_p9)   ;;  %v1228_v13 = vld [vmem:[%s1649_s1 + $0xa0] sm:$0xff] (!%p192_p9)   ;;  %v1231_v16 = vld [vmem:[%s1649_s1 + $0xa8] sm:$0xff] (!%p192_p9)   ;;  %s218_s17 = scalar_lea.vmem (!%p192_p9), [#allocation2], %s983_s16 }
  0x12   : > { %1134 = vmatprep.subr.bf16.mxu1 (!%p192_p9), %v1219_v5  ;;  %v1225_v11 = vld [vmem:[%s1649_s1 + $0x98] sm:$0xff] (!%p192_p9)   ;;  %v1227_v14 = vld [vmem:[%s1649_s1 + $0x20] sm:$0xff] (!%p192_p9)   ;;  %v1230_v17 = vld [vmem:[%s1649_s1 + $0x28] sm:$0xff] (!%p192_p9)  }
  0x13   : > { %1059 = vmatpush3.bf16.msra.mxu0 (!%p192_p9), %v1218_v4  ;;  %v1232_v18 = vld [vmem:[%s1649_s1 + $0x70] sm:$0xff] (!%p192_p9)   ;;  %v1235_v21 = vld [vmem:[%s1649_s1 + $0x78] sm:$0xff] (!%p192_p9)   ;;  %vm1011_vm2 = vmneg (!%p192_p9), %vm284_vm0 }
  0x14   : > { %1060 = vmatprep.subr.bf16.mxu0 (!%p192_p9), %v1220_v6  ;;  %v1233_v19 = vld [vmem:[%s1649_s1 + $0x30] sm:$0xff] (!%p192_p9)   ;;  %v1237_v25 = vld [vmem:[%s1649_s1 + $0xb8] sm:$0xff] (!%p192_p9)   ;;  %v1238_v38 = vld [vmem:[%s1651_s3 + $0x40] sm:$0xff] (!%p192_p9)  }
  0x15   : > { %1135 = vmatpush3.bf16.msra.mxu1 %v1219_v5  ;;  %s1665_s30 = smov (!%p220_p10, %s984_s30), 7  ;;  %v1234_v20 = vld [vmem:[%s1649_s1 + $0xb0] sm:$0xff]   ;;  %v1236_v34 = vld [vmem:[%s1649_s1 + $0x38] sm:$0xff]   ;;  %vm1492_vm4 = vmpackc.low %vm1326_vm3, %vm1011_vm2 }
  0x16   : > { %1136 = vmatprep.subr.bf16.mxu1 %v1222_v8  ;;  %s985_s9 = sshll.u32 %s1665_s30, 3  ;;  %v1239_v44 = vld [vmem:[%s1651_s3] sm:$0xff]   ;;  %v1240_v47 = vld [vmem:[%s1651_s3 + $0x48] sm:$0xff]   ;;  %vm1508_vm5 = vmpackc.low %vm297_vm1, %vm1326_vm3  ;;  %s1055_s30 = sshll.u32 %s1381_s22, 9 }
  0x17   : > { %1061 = vmatpush3.bf16.msra.mxu0 %v1221_v7  ;;  %s223_s23 = scalar_lea.vmem %s1648_s0, %s985_s9  ;;  %v1243_v49 = vld [vmem:[%s1651_s3 + $0x80] sm:$0xff]   ;;  %v1241_v51 = vld [vmem:[%s1651_s3 + $0x8] sm:$0xff]   ;;  %v1242_v55 = vld [vmem:[%s1651_s3 + $0x50] sm:$0xff]   ;;  %s1603_s6 = scalar_lea.hbm %s1653_s5, %s1055_s30 }
  0x18   : > { %1062 = vmatprep.subr.bf16.mxu0 %v1223_v9  ;;  %v227_v22 = vld [vmem:[%s223_s23] sm:$0xff]  ;;  %v228_v23 = vld [vmem:[%s223_s23 + $0x8] sm:$0xff]  ;;  %v230_v24 = vld [vmem:[%s223_s23 + $0x18] sm:$0xff]  ;;  %s1266_s9 = sshll.u32 %s1327_s8, 4  ;;  %s1267_s9 = int_to_ptr.vmem [resolvable:$false] %s1266_s9 }
  0x19   : > { %1137 = vmatpush3.bf16.msra.mxu1 %v1222_v8  ;;  %v285_v26 = vrot.slane %v227_v22, 7  ;;  %v286_v27 = vrot.slane %v228_v23, 7  ;;  %v298_v28 = vrot.slane %v227_v22, 1  ;;  %v299_v29 = vrot.slane %v228_v23, 1  ;;  %v229_v30 = vld [vmem:[%s223_s23 + $0x10] sm:$0xff]  ;;  %v1246_v54 = vld [vmem:[%s1651_s3 + $0x88] sm:$0xff]  }
  0x1a   : > { %1138 = vmatprep.subr.bf16.mxu1 %v1225_v11  ;;  %v311_v31 = vpack.c.bf16 %v228_v23, %v227_v22  ;;  %v301_v32 = vrot.slane %v229_v30, 1  ;;  %v303_v33 = vrot.slane %v230_v24, 1  ;;  %v288_v43 = vrot.slane %v229_v30, 7  ;;  %v1244_v56 = vld [vmem:[%s1651_s3 + $0x10] sm:$0xff]   ;;  %v1245_v58 = vld [vmem:[%s1651_s3 + $0x58] sm:$0xff]   ;;  %v1248_v60 = vld [vmem:[%s1651_s3 + $0x60] sm:$0xff]  }
  0x1b   : > { %1063 = vmatpush3.bf16.msra.mxu0 %v1224_v10  ;;  %v287_v35 = vsel %vm284_vm0, %v285_v26, %v286_v27  ;;  %v300_v36 = vsel %vm297_vm1, %v298_v28, %v299_v29  ;;  %v314_v45 = vpack.c.bf16 %v230_v24, %v229_v30  ;;  %v290_v46 = vrot.slane %v230_v24, 7  ;;  %v1247_v59 = vld [vmem:[%s1651_s3 + $0x18] sm:$0xff]   ;;  %v1249_v61 = vld [vmem:[%s1651_s3 + $0x90] sm:$0xff]   ;;  %v1250_v62 = vld [vmem:[%s1651_s3 + $0x20] sm:$0xff]   ;;  %s917_s23 = sshll.u32 %s218_s17, 4  ;;  %s1268_s10 = scalar_lea.vmem %s1267_s9, 1024  ;;  %s1598_s23 = int_to_ptr.vmem [resolvable:$true] %s917_s23 }
  0x1c   : > { %1064 = vmatprep.subr.bf16.mxu0 %v1226_v12  ;;  %498 = vmatprep.mubr.bf16.mxu0 %v311_v31  ;;  %v302_v37 = vsel %vm297_vm1, %v299_v29, %v301_v32  ;;  %v304_v41 = vsel %vm297_vm1, %v301_v32, %v303_v33  ;;  %v1013_v42 = vpack.c.bf16 %v287_v35, %v285_v26  ;;  %v1251_v63 = vld [vmem:[%s1651_s3 + $0x68] sm:$0xff]   ;;  %v1252_v0 = vld [vmem:[%s1651_s3 + $0x98] sm:$0xff]   ;;  %v1254_v2 = vld [vmem:[%s1651_s3 + $0x70] sm:$0xff]   ;;  %s1262_s22 = scalar_lea.vmem %s1598_s23, 512  ;;  %p1269_p0 = scmp.lt.s32.totalorder %s1598_s23, %s1267_s9 }
  0x1d   : > { %1139 = vmatpush3.bf16.msra.mxu1 %v1225_v11  ;;  %v312_v40 = vpack.c.bf16 %v302_v37, %v300_v36  ;;  %v1016_v48 = vpack.c.bf16 %v303_v33, %v304_v41  ;;  %v289_v52 = vsel %vm284_vm0, %v286_v27, %v288_v43  ;;  %v291_v53 = vsel %vm284_vm0, %v288_v43, %v290_v46  ;;  %v1253_v1 = vld [vmem:[%s1651_s3 + $0x28] sm:$0xff]   ;;  %v1255_v3 = vld [vmem:[%s1651_s3 + $0xa0] sm:$0xff]   ;;  %v1256_v4 = vld [vmem:[%s1651_s3 + $0x30] sm:$0xff]   ;;  %p1263_p11 = scmp.ne.s32.totalorder %s1598_s23, %s1262_s22  ;;  %p1270_p1 = scmp.lt.s32.totalorder %s1268_s10, %s1262_s22 }
  0x1e   : > { %1140 = vmatprep.subr.bf16.mxu1 %v1228_v13  ;;  %v313_v57 = vpack.c.bf16 %v291_v53, %v289_v52  ;;  %v1257_v5 = vld [vmem:[%s1651_s3 + $0x78] sm:$0xff]   ;;  %v1258_v6 = vld [vmem:[%s1651_s3 + $0xa8] sm:$0xff]   ;;  %v1260_v8 = vld [vmem:[%s1651_s3 + $0xb0] sm:$0xff]  }
  0x1f   : > { %1065 = vmatpush3.bf16.msra.mxu0 %v1227_v14  ;;  %1148 = vmatprep.mubr.bf16.mxu1 %v312_v40  ;;  %v1259_v7 = vld [vmem:[%s1651_s3 + $0x38] sm:$0xff]   ;;  %v986_v12 = vld [vmem:[%s1650_s2] ss:$0 sm:$0xff]  ;;  %p1264_p12 = pnand %p1263_p11, %p1398_p5  ;;  %p1271_p2 = por %p1270_p1, %p1269_p0 }
  0x20   : > { %1066 = vmatprep.subr.bf16.mxu0 %v1229_v15  ;;  %v1261_v9 = vld [vmem:[%s1651_s3 + $0xb8] sm:$0xff]  }
  0x21   : > { %1141 = vmatpush3.bf16.msra.mxu1 %v1228_v13  ;;  %p1265_p13 = pneg %p1264_p12 }
  0x22   : > { %1142 = vmatprep.subr.bf16.mxu1 %v1231_v16 }
  0x23   : > { %1067 = vmatpush3.bf16.msra.mxu0 %v1230_v17  ;;  %p1272_p3 = pnand %p1271_p2, %p1265_p13 }
  0x24   : > { %1068 = vmatprep.subr.bf16.mxu0 %v1232_v18 }
  0x25   : > { %1143 = vmatpush3.bf16.msra.mxu1 %v1231_v16 }
  0x26   : > { %1144 = vmatprep.subr.bf16.mxu1 %v1234_v20 }
  0x27   : > { %1069 = vmatpush3.bf16.msra.mxu0 %v1233_v19 }
  0x28   : > { %1070 = vmatprep.subr.bf16.mxu0 %v1235_v21 }
  0x29   : > { %1145 = vmatpush3.bf16.msra.mxu1 %v1234_v20 }
  0x2a   : > { %1146 = vmatprep.subr.bf16.mxu1 %v1237_v25 }
  0x2b   : > { %1071 = vmatpush3.bf16.msra.mxu0 %v1236_v34 }
  0x2c   : > { %1094 = vmatprep.subr.bf16.mxu0 %v1238_v38 }
  0x2d   : > { %1147 = vmatpush3.bf16.msra.mxu1 %v1237_v25 }
  0x2e   : > { %1014 = vmatmul.mubr.msk.bf16.vlgmr.msra.gmra.mrb[0].mxu0 %vm1492_vm4, %v1013_v42  ;;  %1152 = vmatprep.subr.bf16.mxu1 %v1243_v49 }
  0x2f   : > { %506 = vmatprep.mubr.bf16.mxu0 %v314_v45  ;;  %1095 = vmatpush3.bf16.msra.mxu0 %v1239_v44 }
  0x30   : > { %1149 = vmatmul.mubr.msk.bf16.vlgmr.msra.gmra.mrb[0].mxu1 %vm1508_vm5, %v1016_v48  ;;  %1096 = vmatprep.subr.bf16.mxu0 %v1240_v47 }
  0x31   : > { %1153 = vmatpush3.bf16.msra.mxu1 %v1243_v49 }
  0x32   : > { %1154 = vmatprep.subr.bf16.mxu1 %v1246_v54 }
  0x33   : > { %1097 = vmatpush3.bf16.msra.mxu0 %v1241_v51 }
  0x34   : > { %1098 = vmatprep.subr.bf16.mxu0 %v1242_v55 }
  0x35   : > { %1155 = vmatpush3.bf16.msra.mxu1 %v1246_v54 }
  0x36   : > { %507 = vmatmul.mubr.bf16.gmra.mrb[4].mxu0 %v313_v57  ;;  %1156 = vmatprep.subr.bf16.mxu1 %v1249_v61 }
  0x37   : > { %1099 = vmatpush3.bf16.msra.mxu0 %v1244_v56 }
  0x38   : > { %1100 = vmatprep.subr.bf16.mxu0 %v1245_v58 }
  0x39   : > { %1157 = vmatpush3.bf16.msra.mxu1 %v1249_v61 }
  0x3a   : > { %1158 = vmatprep.subr.bf16.mxu1 %v1252_v0 }
  0x3b   : > { %1101 = vmatpush3.bf16.msra.mxu0 %v1247_v59 }
  0x3c   : > { %1102 = vmatprep.subr.bf16.mxu0 %v1248_v60 }
  0x3d   : > { %1159 = vmatpush3.bf16.msra.mxu1 %v1252_v0 }
  0x3e   : > { %1160 = vmatprep.subr.bf16.mxu1 %v1255_v3 }
  0x3f   : > { %1103 = vmatpush3.bf16.msra.mxu0 %v1250_v62 }
  0x40   : > { %1104 = vmatprep.subr.bf16.mxu0 %v1251_v63 }
  0x41   : > { %1161 = vmatpush3.bf16.msra.mxu1 %v1255_v3 }
  0x42   : > { %1162 = vmatprep.subr.bf16.mxu1 %v1258_v6 }
  0x43   : > { %1105 = vmatpush3.bf16.msra.mxu0 %v1253_v1 }
  0x44   : > { %1106 = vmatprep.subr.bf16.mxu0 %v1254_v2  ;;  %v1018_v2 = vld [vmem:[%s1652_s4] ss:$0 sm:$0xff] }
  0x45   : > { %1163 = vmatpush3.bf16.msra.mxu1 %v1258_v6 }
  0x46   : > { %1164 = vmatprep.subr.bf16.mxu1 %v1260_v8 }
  0x47   : > { %1107 = vmatpush3.bf16.msra.mxu0 %v1256_v4 }
  0x48   : > { %1108 = vmatprep.subr.bf16.mxu0 %v1257_v5 }
  0x49   : > { %1165 = vmatpush3.bf16.msra.mxu1 %v1260_v8 }
  0x4a   : > { %1166 = vmatprep.subr.bf16.mxu1 %v1261_v9 }
  0x4b   : > { %1109 = vmatpush3.bf16.msra.mxu0 %v1259_v7 }
  0x4d   : > { %1167 = vmatpush3.bf16.msra.mxu1 %v1261_v9 }
 0x101   : > { %v1072_v10 = vpop.f32.mrb[0].mxu0 }
 0x102   : > { %v1073_v11 = vpop.f32.mrb[1].mxu0 }
 0x103   : > { %v1074_v13 = vadd.f32 %v1073_v11, %v1072_v10  ;;  %v1150_v14 = vpop.f32.mrb[0].mxu1  ;;  %v1075_v15 = vpop.f32.mrb[2].mxu0 }
 0x104   : > { %v549_v16 = vpop.f32.mrb[1].mxu1  ;;  %v1076_v17 = vpop.f32.mrb[3].mxu0 }
 0x105   : > { %v501_v18 = vadd.f32 %v1074_v13, %v986_v12  ;;  %v1077_v19 = vadd.f32 %v1076_v17, %v1075_v15  ;;  %v1151_v20 = vpop.f32.mrb[2].mxu1 }
 0x106   : > { %v552_v21 = vpop.f32.mrb[3].mxu1 }
 0x107   : > { %v550_v22 = vadd.f32 %v549_v16, %v501_v18  ;;  %v504_v23 = vadd.f32 %v1077_v19, %v986_v12 }
 0x109   : > { %v564_v24 = vmax.f32 %v550_v22, 0.0  ;;  %v553_v25 = vadd.f32 %v552_v21, %v504_v23  ;;  %v1078_v26 = vpop.f32.mrb[4].mxu0 }
 0x10a   : > { %v1079_v27 = vpop.f32.mrb[5].mxu0 }
 0x10b   : > { %v565_v28 = vmax.f32 %v553_v25, 0.0  ;;  %v1080_v29 = vadd.f32 %v1079_v27, %v1078_v26  ;;  %v1081_v30 = vpop.f32.mrb[6].mxu0  ;;  %v621_v31 = vrot.slane %v564_v24, 7  ;;  %v633_v32 = vrot.slane %v564_v24, 1 }
 0x10c   : > { %v1082_v33 = vpop.f32.mrb[7].mxu0 }
 0x10d   : > { %v622_v34 = vrot.slane %v565_v28, 7  ;;  %v634_v35 = vrot.slane %v565_v28, 1  ;;  %v509_v36 = vadd.f32 %v1080_v29, %v986_v12  ;;  %v1083_v37 = vadd.f32 %v1082_v33, %v1081_v30 }
 0x10e   : > { %v646_v38 = vpack.c.bf16 %v565_v28, %v564_v24 }
 0x10f   : > { %v623_v40 = vsel %vm284_vm0, %v621_v31, %v622_v34  ;;  %v558_v41 = vadd.f32 %v1150_v14, %v509_v36  ;;  %v512_v42 = vadd.f32 %v1083_v37, %v986_v12  ;;  %v635_v43 = vsel %vm297_vm1, %v633_v32, %v634_v35 }
 0x110   : > { %v1045_v44 = vpack.c.bf16 %v623_v40, %v621_v31  ;;  %833 = vmatprep.mubr.bf16.mxu0 %v646_v38 }
 0x111   : > { %v566_v45 = vmax.f32 %v558_v41, 0.0  ;;  %v561_v46 = vadd.f32 %v1151_v20, %v512_v42 }
 0x112   : > { %1046 = vmatmul.mubr.msk.bf16.vlgmr.msra.gmra.mrb[8].mxu0 %vm1492_vm4, %v1045_v44 }
 0x113   : > { %v567_v47 = vmax.f32 %v561_v46, 0.0  ;;  %v636_v48 = vrot.slane %v566_v45, 1  ;;  %v624_v49 = vrot.slane %v566_v45, 7 }
 0x115   : > { %v638_v51 = vrot.slane %v567_v47, 1  ;;  %v649_v52 = vpack.c.bf16 %v567_v47, %v566_v45  ;;  %v637_v53 = vsel %vm297_vm1, %v634_v35, %v636_v48  ;;  %v625_v54 = vsel %vm284_vm0, %v622_v34, %v624_v49 }
 0x116   : > { %v647_v55 = vpack.c.bf16 %v637_v53, %v635_v43  ;;  %v626_v56 = vrot.slane %v567_v47, 7 }
 0x117   : > { %841 = vmatprep.mubr.bf16.mxu0 %v649_v52  ;;  %v639_v57 = vsel %vm297_vm1, %v636_v48, %v638_v51 }
 0x118   : > { %1168 = vmatprep.mubr.bf16.mxu1 %v647_v55  ;;  %v627_v39 = vsel %vm284_vm0, %v624_v49, %v626_v56  ;;  %v1048_v58 = vpack.c.bf16 %v638_v51, %v639_v57 }
 0x119   : > { %v648_v59 = vpack.c.bf16 %v627_v39, %v625_v54 }
 0x11a   : > { %1169 = vmatmul.mubr.msk.bf16.vlgmr.msra.gmra.mrb[4].mxu1 %vm1508_vm5, %v1048_v58 }
 0x11b   : > { %842 = vmatmul.mubr.bf16.gmra.mrb[12].mxu0 %v648_v59 }
 0x1e5   : > { %v1110_v60 = vpop.f32.mrb[8].mxu0 }
 0x1e6   : > { %v1111_v61 = vpop.f32.mrb[9].mxu0 }
 0x1e7   : > { %v1112_v62 = vadd.f32 %v1111_v61, %v1110_v60  ;;  %v1113_v63 = vpop.f32.mrb[10].mxu0 }
 0x1e8   : > { %v1114_v0 = vpop.f32.mrb[11].mxu0 }
 0x1e9   : > { %v1115_v1 = vadd.f32 %v1114_v0, %v1113_v63  ;;  %v836_v4 = vadd.f32 %v1112_v62, %v1018_v2 }
 0x1eb   : > { %v839_v9 = vadd.f32 %v1115_v1, %v1018_v2 }
 0x1ed   : > { %v1170_v3 = vpop.f32.mrb[4].mxu1 }
 0x1ee   : > { %v1116_v5 = vpop.f32.mrb[12].mxu0  ;;  %v884_v50 = vpop.f32.mrb[5].mxu1 }
 0x1ef   : > { %v1117_v6 = vpop.f32.mrb[13].mxu0  ;;  %v885_v7 = vadd.f32 %v884_v50, %v836_v4  ;;  %v1171_v8 = vpop.f32.mrb[6].mxu1 }
 0x1f0   : > { %v1118_v10 = vadd.f32 %v1117_v6, %v1116_v5  ;;  %v1119_v11 = vpop.f32.mrb[14].mxu0  ;;  %v887_v12 = vpop.f32.mrb[7].mxu1 }
 0x1f1   : > { %899 = vst [vmem:[%s218_s17] sm:$0xff] %v885_v7  ;;  %v1120_v13 = vpop.f32.mrb[15].mxu0  ;;  %v888_v14 = vadd.f32 %v887_v12, %v839_v9 }
 0x1f2   : > { %v844_v15 = vadd.f32 %v1118_v10, %v1018_v2  ;;  %v1121_v16 = vadd.f32 %v1120_v13, %v1119_v11 }
 0x1f3   : > { %900 = vst [vmem:[%s218_s17 + $0x8] sm:$0xff] %v888_v14 }
 0x1f4   : > { %v893_v17 = vadd.f32 %v1170_v3, %v844_v15  ;;  %v847_v18 = vadd.f32 %v1121_v16, %v1018_v2 }
 0x1f6   : > { %901 = vst [vmem:[%s218_s17 + $0x10] sm:$0xff] %v893_v17  ;;  %v896_v19 = vadd.f32 %v1171_v8, %v847_v18 }
 0x1f8   : > { %902 = vst [vmem:[%s218_s17 + $0x18] sm:$0xff] %v896_v19 }
 0x1f9   : > { %1275 = shalt.err (!%p1272_p3)
}
 0x1fa   : > { %s1276_s11 = scalar_lea.hbm %s1603_s6, 512  ;;  %s1280_s14 = scalar_lea.hbm %s1653_s5, 1024 }
 0x1fb   : > { %p1277_p4 = scmp.ne.s32.totalorder %s1603_s6, %s1276_s11  ;;  %p1281_p9 = scmp.lt.u32.totalorder %s1603_s6, %s1653_s5 }
 0x1fc   : > { %p1282_p10 = scmp.lt.u32.totalorder %s1280_s14, %s1276_s11  ;;  %p1284_p12 = scmp.lt.u32.totalorder %s1276_s11, %s1603_s6 }
 0x1fd   : > { %p1278_p7 = pnand %p1277_p4, %p1398_p5 }
 0x1fe   : > { %p1283_p11 = por %p1282_p10, %p1281_p9 }
 0x1ff   : > { %p1279_p8 = pneg %p1278_p7 }
 0x200   : > { %p1285_p13 = por %p1284_p12, %p1283_p11 }
 0x202   : > { %p1286_p0 = pnand %p1285_p13, %p1279_p8 }
 0x204   : > { %1289 = shalt.err (!%p1286_p0)
}
 0x205   : > { %s1328_s17 = smov 128   ;;  %s1329_s30 = smov 8  }
 0x206   : > { %1172 = dma.vmem_to_hbm [thread:$0]  (%p1398_p5), %s1598_s23, 512, %s1603_s6, %s1607_s7, %s1328_s17, %s1328_s17, %s1329_s30  }
 0x207 PF: > { %p1178_p1 = scmp.ge.s32.totalorder %s1324_s21, 2  ;;  %s932_s25 = sand.u32 1, %s1312_s18  }
 0x208   : > { %s933_s26 = scalar_lea.sflag [#allocation3], %s932_s25 }
 0x209   : > { %p1175_p2 = pnand %p1178_p1, %p1402_p6 }
 0x20b   : > { %1307 = dma.done.wait (!%p1175_p2), %s933_s26, 512  }
 0x20c   : > { %1309 = vsyncadd (!%p1175_p2), %s933_s26, 4294966784  ;;  %p15_p3 = scmp.ge.s32.totalorder %s1385_s24, 4   ;;  %s1660_s18 = smov %s1316_s19 }
 0x20d   : > { %s1661_s19 = smov %s1320_s20  ;;  %s1662_s20 = smov %s1396_s27 }
 0x20e   : > { %s1663_s21 = smov %s1385_s24  ;;  %17 = sbr.rel (!%p15_p3) target bundleno = 3 (0x3), region = 75 }
 0x215   :  { %938 = vsyncpa [#allocation3], 1 }
 0x216   :  { %940 = vsyncpa [#allocation3 + $0x1], 1 }

</bundles_post_ra>
